<compile_context>
chip_gen: v7x
topology: tpu7x:2x2x1
jax: 0.10.0
libtpu: 0.0.40
codegen_flags: <defaults>
</compile_context>

<pallas_src>
import numpy as np
import jax
import jax.numpy as jnp
from jax import lax
from jax.experimental import pallas as pl
from jax.experimental.pallas import tpu as pltpu

LRELU_SLOPE = 0.2
BN_EPS = 1e-5
_TARGET_MXU_K = 256   # v6e/v7x systolic depth; v5e (128) is still fully fed.


def _leaky_relu(x):
    return jnp.maximum(x, LRELU_SLOPE * x)


def _upsample_x2_align_corners(x_nhwc):
    """Bilinear x2 upsample, align_corners=True (matches nn.Upsample)."""
    n, h, w, c = x_nhwc.shape
    ho, wo = 2 * h, 2 * w

    def coords(sin, sout):
        src = jnp.arange(sout, dtype=jnp.float32) * (sin - 1) / (sout - 1)
        i0 = jnp.clip(jnp.floor(src).astype(jnp.int32), 0, sin - 1)
        i1 = jnp.clip(i0 + 1, 0, sin - 1)
        return i0, i1, src - i0.astype(jnp.float32)

    r0, r1, rf = coords(h, ho)
    c0, c1, cf = coords(w, wo)
    xr = (x_nhwc[:, r0] * (1.0 - rf)[None, :, None, None]
          + x_nhwc[:, r1] * rf[None, :, None, None])
    return (xr[:, :, c0] * (1.0 - cf)[None, None, :, None]
            + xr[:, :, c1] * cf[None, None, :, None])


# ------------------------------- Pallas kernel -------------------------------
def _make_gatedconv_kernel(S, H2, W2, Cin, Coutp, k):
    """One grid step = one (batch, row-strip) of S output rows."""
    p = (k - 1) // 2
    S2p = S + 2 * p           # y1 rows needed (conv2 halo)
    Wp = W2 + 2 * p

    def tap_conv(x, w_ref, rows_out, cin_eff):
        """'same'-conv as accumulated per-tap (dx-grouped) bf16 MXU matmuls.

        x: (rows_out + 2p, Wp, cin_eff) bf16;  w_ref: (k*k*cin_eff, N) bf16 with
        row order (dy, dx, ci).  Returns f32 (rows_out*W2, N) accumulator — no
        k*k-amplified patch matrix is ever materialized.
        """
        n_out = w_ref.shape[1]
        # Group adjacent-dx taps so K ≈ _TARGET_MXU_K (pairs for Cin=128).
        group = max(1, min(k, _TARGET_MXU_K // max(cin_eff, 1)))
        acc = jnp.zeros((rows_out * W2, n_out), jnp.float32)
        for dy in range(k):
            dx = 0
            while dx < k:
                g = min(group, k - dx)
                if g == 1:
                    a = x[dy:dy + rows_out, dx:dx + W2, :]
                else:
                    a = jnp.concatenate(
                        [x[dy:dy + rows_out, dx + j:dx + j + W2, :] for j in range(g)],
                        axis=-1)
                a2 = a.reshape(rows_out * W2, g * cin_eff)        # W2 % 8 == 0
                wt = w_ref[(dy * k + dx) * cin_eff:(dy * k + dx + g) * cin_eff, :]
                acc = acc + jnp.dot(a2, wt, preferred_element_type=jnp.float32)
                dx += g
        return acc

    def kernel(xs_ref, w1m_ref, b1m_ref, w2_ref, b2_ref, o_ref):
        s = pl.program_id(1)                               # row-strip index
        x = xs_ref[0]                                      # (S+4p, Wp, Cin) bf16

        # ---- fused conv1 + mask conv (BN scale folded into weights) ----
        ym = tap_conv(x, w1m_ref, S2p, Cin) + b1m_ref[...]     # (S2p*W2, 2*Coutp)
        ym = ym.reshape(S2p, W2, 2 * Coutp)
        y1 = _leaky_relu(ym[:, :, :Coutp])                     # (S2p, W2, Coutp) f32
        mask = 1.0 / (1.0 + jnp.exp(-ym[p:p + S, :, Coutp:]))  # exact sigmoid, (S, W2, Coutp)

        if p > 0:
            # conv2's 'same' zero row-padding at the image top/bottom: zero the
            # y1 halo rows whose global row index falls outside [0, H2).
            grow = lax.broadcasted_iota(jnp.int32, (S2p, 1, 1), 0) + (s * S - p)
            y1 = jnp.where((grow >= 0) & (grow < H2), y1, 0.0)
            # conv2's 'same' zero column-padding, staged as bf16 for the MXU.
            zc = jnp.zeros((S2p, p, Coutp), jnp.bfloat16)
            y1p = jnp.concatenate([zc, y1.astype(jnp.bfloat16), zc], axis=1)
        else:
            y1p = y1.astype(jnp.bfloat16)                      # (S2p, Wp, Coutp)

        # ---- conv2 + BN2 shift + LeakyReLU ----
        y2 = tap_conv(y1p, w2_ref, S, Coutp) + b2_ref[...]     # (S*W2, Coutp)
        y2 = _leaky_relu(y2).reshape(S, W2, Coutp)

        # ---- gating (Coutp is a multiple of 128 -> lane-dense store) ----
        o_ref[0] = (y2 * mask).astype(o_ref.dtype)

    return kernel


# ------------------------------ parameter folding ----------------------------
def _fold_bn(gamma, beta, mean, var, conv_bias=None):
    s = gamma / jnp.sqrt(var + BN_EPS)
    b = beta - mean * s
    if conv_bias is not None:
        b = b + conv_bias * s
    return s, b


def _vmem_limit_bytes():
    """Generation-aware VMEM limit (48 MiB on v7x, 64 MiB on v5e/v6e)."""
    try:
        cap = int(pltpu.get_tpu_info().vmem_capacity_bytes)
    except Exception:
        cap = 64 * 2 ** 20
    return int(min(cap * 3 // 4, 64 * 2 ** 20))


def _choose_strip_rows(h2, w2, cin, coutp, p, requested, budget_bytes):
    if requested is not None:
        assert h2 % requested == 0, "strip_rows must divide the upsampled height"
        return requested
    wp = w2 + 2 * p
    # Rough steady-state VMEM bytes per output row (double-buffered in/out,
    # f32 accumulators, bf16 input/y1 staging).
    per_row = (2 * wp * cin * 2 + 2 * w2 * coutp * 4 + w2 * 2 * coutp * 4
               + w2 * coutp * 4 + wp * coutp * 2 + w2 * coutp * 4)
    target = max(8, min(128, budget_bytes // max(per_row, 1)))
    for s in range(int(min(target, h2)), 0, -1):
        if h2 % s == 0:
            return s
    return h2


# ---------------------------------- wrapper -----------------------------------
def gatedconv_forward(x_nchw, params, kernel_size, dconv=False, strip_rows=None):
    assert not dconv  # TODO(synk): ConvTranspose2d (dconv=True) branch not implemented
    k = kernel_size
    p = (k - 1) // 2
    n, cin, h, w = x_nchw.shape
    cout = params["w1"].shape[0]
    h2, w2 = 2 * h, 2 * w
    wp = w2 + 2 * p
    kk = k * k
    coutp = max(128, -(-cout // 128) * 128)       # lane-dense / MXU-filling N

    vmem_limit = _vmem_limit_bytes()
    S = _choose_strip_rows(h2, w2, cin, coutp, p, strip_rows, vmem_limit * 3 // 4)
    ns = h2 // S
    s4p = S + 4 * p                                # input rows per strip (conv1+conv2 halo)

    # --- XLA glue: bilinear x2 upsample + folded BN0 + LeakyReLU (fuses into the
    # upsample gather), pad (2p rows / p cols of zeros), cast to bf16, and stack
    # overlapping halo'd strips so the kernel's BlockSpec is a plain tiling.
    # TODO(synk): fold the upsample itself into the kernel to cut input HBM ~4x.
    s0, b0 = _fold_bn(params["bn0_g"], params["bn0_b"], params["bn0_m"], params["bn0_v"])
    up = _upsample_x2_align_corners(
        jnp.transpose(x_nchw, (0, 2, 3, 1)).astype(jnp.float32))
    out0 = _leaky_relu(up * s0[None, None, None, :] + b0[None, None, None, :])
    xpad = jnp.pad(out0, ((0, 0), (2 * p, 2 * p), (p, p), (0, 0))).astype(jnp.bfloat16)
    xstrips = jnp.stack([xpad[:, r:r + s4p] for r in range(0, h2, S)], axis=1)
    xstrips = xstrips.reshape(n * ns, s4p, wp, cin)          # (n*ns, S+4p, Wp, Cin) bf16

    # --- Fold conv bias + BN into per-channel scale/shift; fold the SCALE into
    # the weights in f32 and cast to bf16 once; fuse conv1 + mask-conv along N;
    # zero-pad all output-channel dims to coutp.
    s1, b1 = _fold_bn(params["bn1_g"], params["bn1_b"], params["bn1_m"], params["bn1_v"], params["b1"])
    sm, bm = _fold_bn(params["bnm_g"], params["bnm_b"], params["bnm_m"], params["bnm_v"], params["bm"])
    s2, b2 = _fold_bn(params["bn2_g"], params["bn2_b"], params["bn2_m"], params["bn2_v"], params["b2"])

    def to_mat(w_oihw, scale):   # (O,I,kh,kw) -> (kh*kw*I, O) * scale, f32
        o, i, kh, kw = w_oihw.shape
        m = jnp.transpose(w_oihw, (2, 3, 1, 0)).reshape(kh * kw * i, o)
        return m * scale[None, :]

    def pad_o(m):
        return jnp.pad(m, ((0, 0), (0, coutp - cout)))

    w1m = jnp.concatenate([pad_o(to_mat(params["w1"], s1)),
                           pad_o(to_mat(params["wm"], sm))], axis=1).astype(jnp.bfloat16)
    b1m = jnp.concatenate([jnp.pad(b1, (0, coutp - cout)),
                           jnp.pad(bm, (0, coutp - cout))])[None, :].astype(jnp.float32)

    w2_t = jnp.transpose(params["w2"], (2, 3, 1, 0)) * s2[None, None, None, :]  # (k,k,I,O)
    w2_t = jnp.pad(w2_t, ((0, 0), (0, 0), (0, coutp - cout), (0, coutp - cout)))
    w2m = w2_t.reshape(kk * coutp, coutp).astype(jnp.bfloat16)
    b2r = jnp.pad(b2, (0, coutp - cout))[None, :].astype(jnp.float32)

    kernel = _make_gatedconv_kernel(S, h2, w2, cin, coutp, k)

    out_nhwc = pl.pallas_call(
        kernel,
        out_shape=jax.ShapeDtypeStruct((n, h2, w2, coutp), jnp.float32),
        grid_spec=pltpu.PrefetchScalarGridSpec(
            num_scalar_prefetch=0,
            grid=(n, ns),
            in_specs=[
                pl.BlockSpec((1, s4p, wp, cin), lambda b, s: (b * ns + s, 0, 0, 0)),
                pl.BlockSpec((kk * cin, 2 * coutp), lambda b, s: (0, 0)),
                pl.BlockSpec((1, 2 * coutp), lambda b, s: (0, 0)),
                pl.BlockSpec((kk * coutp, coutp), lambda b, s: (0, 0)),
                pl.BlockSpec((1, coutp), lambda b, s: (0, 0)),
            ],
            out_specs=pl.BlockSpec((1, S, w2, coutp), lambda b, s: (b, s, 0, 0)),
        ),
        compiler_params=pltpu.CompilerParams(
            dimension_semantics=("parallel", "parallel"),   # strips are independent
            vmem_limit_bytes=vmem_limit,
        ),
    )(xstrips, w1m, b1m, w2m, b2r)

    return jnp.transpose(out_nhwc[..., :cout], (0, 3, 1, 2))   # back to NCHW f32


# ----------------------- deterministic parameter init -----------------------
def init_params(key, in_ch, out_ch, k):
    ks = jax.random.split(key, 24)

    def nrm(kk, shape, scale=0.1):
        return scale * jax.random.normal(kk, shape, jnp.float32)

    return {
        "bn0_g": 1.0 + nrm(ks[0], (in_ch,)),
        "bn0_b": nrm(ks[1], (in_ch,)),
        "bn0_m": nrm(ks[2], (in_ch,)),
        "bn0_v": 1.0 + 0.1 * jnp.abs(jax.random.normal(ks[3], (in_ch,), jnp.float32)),
        "w1": nrm(ks[4], (out_ch, in_ch, k, k)),
        "b1": nrm(ks[5], (out_ch,)),
        "bn1_g": 1.0 + nrm(ks[6], (out_ch,)),
        "bn1_b": nrm(ks[7], (out_ch,)),
        "bn1_m": nrm(ks[8], (out_ch,)),
        "bn1_v": 1.0 + 0.1 * jnp.abs(jax.random.normal(ks[9], (out_ch,), jnp.float32)),
        "w2": nrm(ks[10], (out_ch, out_ch, k, k)),
        "b2": nrm(ks[11], (out_ch,)),
        "bn2_g": 1.0 + nrm(ks[12], (out_ch,)),
        "bn2_b": nrm(ks[13], (out_ch,)),
        "bn2_m": nrm(ks[14], (out_ch,)),
        "bn2_v": 1.0 + 0.1 * jnp.abs(jax.random.normal(ks[15], (out_ch,), jnp.float32)),
        "wm": nrm(ks[16], (out_ch, in_ch, k, k)),
        "bm": nrm(ks[17], (out_ch,)),
        "bnm_g": 1.0 + nrm(ks[18], (out_ch,)),
        "bnm_b": nrm(ks[19], (out_ch,)),
        "bnm_m": nrm(ks[20], (out_ch,)),
        "bnm_v": 1.0 + 0.1 * jnp.abs(jax.random.normal(ks[21], (out_ch,), jnp.float32)),
    }


# ----------------------------- pure-JAX reference ----------------------------
def _conv2d_same_nchw(x, w, b, k):
    p = (k - 1) // 2
    y = lax.conv_general_dilated(
        x, w, window_strides=(1, 1), padding=((p, p), (p, p)),
        dimension_numbers=("NCHW", "OIHW", "NCHW"),
        precision=lax.Precision.HIGHEST)
    return y + b[None, :, None, None]


def _bn_eval_nchw(x, g, b, m, v):
    s = g / jnp.sqrt(v + BN_EPS)
    return x * s[None, :, None, None] + (b - m * s)[None, :, None, None]


def reference_forward(x_nchw, pr, k):
    up = _upsample_x2_align_corners(jnp.transpose(x_nchw, (0, 2, 3, 1)))
    up = jnp.transpose(up, (0, 3, 1, 2))
    out = _leaky_relu(_bn_eval_nchw(up, pr["bn0_g"], pr["bn0_b"], pr["bn0_m"], pr["bn0_v"]))
    y = _leaky_relu(_bn_eval_nchw(_conv2d_same_nchw(out, pr["w1"], pr["b1"], k),
                                  pr["bn1_g"], pr["bn1_b"], pr["bn1_m"], pr["bn1_v"]))
    y = _leaky_relu(_bn_eval_nchw(_conv2d_same_nchw(y, pr["w2"], pr["b2"], k),
                                  pr["bn2_g"], pr["bn2_b"], pr["bn2_m"], pr["bn2_v"]))
    mask = jax.nn.sigmoid(_bn_eval_nchw(_conv2d_same_nchw(out, pr["wm"], pr["bm"], k),
                                        pr["bnm_g"], pr["bnm_b"], pr["bnm_m"], pr["bnm_v"]))
    return y * mask


if __name__ == "__main__":
    key = jax.random.PRNGKey(0)
    kx, kp = jax.random.split(key)
    N, IN_CH, OUT_CH, H, W, K = 2, 4, 8, 16, 16, 3

    x = jax.random.normal(kx, (N, IN_CH, H, W), jnp.float32)
    params = init_params(kp, IN_CH, OUT_CH, K)

    # strip_rows=8 -> 4 row-strips per image: exercises the halo logic, the
    # top/bottom boundary zeroing, and the interior-strip path.
    out = jax.block_until_ready(gatedconv_forward(x, params, K, strip_rows=8))
    assert out.shape == (N, OUT_CH, 2 * H, 2 * W), out.shape

    ref = jax.block_until_ready(reference_forward(x, params, K))
    # bf16 MXU inputs / bf16 staged activations with f32 accumulation vs. an
    # f32 HIGHEST-precision reference.
    np.testing.assert_allclose(np.asarray(out), np.asarray(ref), rtol=2e-2, atol=2e-2)

    print("KERNEL_OK")
</pallas_src>

<mosaic_0001>
module attributes {stable_mosaic.version = 11 : i64} {
  func.func @kernel(%arg0: i32, %arg1: i32, %arg2: memref<1x12x34x4xbf16, #tpu.memory_space<vmem>>, %arg3: memref<36x256xbf16, #tpu.memory_space<vmem>>, %arg4: memref<1x256xf32, #tpu.memory_space<vmem>>, %arg5: memref<1152x128xbf16, #tpu.memory_space<vmem>>, %arg6: memref<1x128xf32, #tpu.memory_space<vmem>>, %arg7: memref<1x8x32x128xf32, #tpu.memory_space<vmem>>) attributes {dimension_semantics = [#tpu.dimension_semantics<parallel>, #tpu.dimension_semantics<parallel>], iteration_bounds = array<i64: 2, 4>, scalar_prefetch = 0 : i64, scratch_operands = 0 : i64, tpu.core_type = #tpu.core_type<tc>, window_params = [{transform_indices = @transform_0, window_bounds = array<i64: 1, 12, 34, 4>}, {pipeline_mode = #tpu.pipeline_mode<synchronous>, transform_indices = @transform_1, window_bounds = array<i64: 36, 256>}, {pipeline_mode = #tpu.pipeline_mode<synchronous>, transform_indices = @transform_2, window_bounds = array<i64: 1, 256>}, {pipeline_mode = #tpu.pipeline_mode<synchronous>, transform_indices = @transform_3, window_bounds = array<i64: 1152, 128>}, {pipeline_mode = #tpu.pipeline_mode<synchronous>, transform_indices = @transform_4, window_bounds = array<i64: 1, 128>}, {transform_indices = @transform_5, window_bounds = array<i64: 1, 8, 32, 128>}]} {
    %c0 = arith.constant 0 : index
    %c0_0 = arith.constant 0 : index
    %c0_1 = arith.constant 0 : index
    %c0_2 = arith.constant 0 : index
    %0 = vector.load %arg2[%c0, %c0_0, %c0_1, %c0_2] : memref<1x12x34x4xbf16, #tpu.memory_space<vmem>>, vector<1x12x34x4xbf16>
    %1 = vector.shape_cast %0 : vector<1x12x34x4xbf16> to vector<12x34x4xbf16>
    %cst = arith.constant 0.000000e+00 : f32
    %2 = vector.broadcast %cst : f32 to vector<320x256xf32>
    %3 = vector.extract_strided_slice %1 {offsets = [0, 0, 0], sizes = [10, 32, 4], strides = [1, 1, 1]} : vector<12x34x4xbf16> to vector<10x32x4xbf16>
    %4 = vector.extract_strided_slice %1 {offsets = [0, 1, 0], sizes = [10, 32, 4], strides = [1, 1, 1]} : vector<12x34x4xbf16> to vector<10x32x4xbf16>
    %5 = vector.extract_strided_slice %1 {offsets = [0, 2, 0], sizes = [10, 32, 4], strides = [1, 1, 1]} : vector<12x34x4xbf16> to vector<10x32x4xbf16>
    %6 = tpu.concatenate %3, %4, %5 in 2 : vector<10x32x4xbf16>, vector<10x32x4xbf16>, vector<10x32x4xbf16> -> vector<10x32x12xbf16>
    %7 = vector.shape_cast %6 : vector<10x32x12xbf16> to vector<320x12xbf16>
    %c0_3 = arith.constant 0 : index
    %c0_4 = arith.constant 0 : index
    %8 = vector.load %arg3[%c0_3, %c0_4] : memref<36x256xbf16, #tpu.memory_space<vmem>>, vector<12x256xbf16>
    %cst_5 = arith.constant dense<0.000000e+00> : vector<320x256xf32>
    %9 = tpu.matmul %7, %8, %cst_5 {dimension_numbers = #tpu.dot_dimension_numbers<[1], [0], [0], [1], [0, 0, 1, 1], [], []>} : vector<320x12xbf16>, vector<12x256xbf16>, vector<320x256xf32> -> vector<320x256xf32>
    %10 = arith.addf %2, %9 : vector<320x256xf32>
    %11 = vector.extract_strided_slice %1 {offsets = [1, 0, 0], sizes = [10, 32, 4], strides = [1, 1, 1]} : vector<12x34x4xbf16> to vector<10x32x4xbf16>
    %12 = vector.extract_strided_slice %1 {offsets = [1, 1, 0], sizes = [10, 32, 4], strides = [1, 1, 1]} : vector<12x34x4xbf16> to vector<10x32x4xbf16>
    %13 = vector.extract_strided_slice %1 {offsets = [1, 2, 0], sizes = [10, 32, 4], strides = [1, 1, 1]} : vector<12x34x4xbf16> to vector<10x32x4xbf16>
    %14 = tpu.concatenate %11, %12, %13 in 2 : vector<10x32x4xbf16>, vector<10x32x4xbf16>, vector<10x32x4xbf16> -> vector<10x32x12xbf16>
    %15 = vector.shape_cast %14 : vector<10x32x12xbf16> to vector<320x12xbf16>
    %c12 = arith.constant 12 : index
    %c0_6 = arith.constant 0 : index
    %16 = vector.load %arg3[%c12, %c0_6] : memref<36x256xbf16, #tpu.memory_space<vmem>>, vector<12x256xbf16>
    %cst_7 = arith.constant dense<0.000000e+00> : vector<320x256xf32>
    %17 = tpu.matmul %15, %16, %cst_7 {dimension_numbers = #tpu.dot_dimension_numbers<[1], [0], [0], [1], [0, 0, 1, 1], [], []>} : vector<320x12xbf16>, vector<12x256xbf16>, vector<320x256xf32> -> vector<320x256xf32>
    %18 = arith.addf %10, %17 : vector<320x256xf32>
    %19 = vector.extract_strided_slice %1 {offsets = [2, 0, 0], sizes = [10, 32, 4], strides = [1, 1, 1]} : vector<12x34x4xbf16> to vector<10x32x4xbf16>
    %20 = vector.extract_strided_slice %1 {offsets = [2, 1, 0], sizes = [10, 32, 4], strides = [1, 1, 1]} : vector<12x34x4xbf16> to vector<10x32x4xbf16>
    %21 = vector.extract_strided_slice %1 {offsets = [2, 2, 0], sizes = [10, 32, 4], strides = [1, 1, 1]} : vector<12x34x4xbf16> to vector<10x32x4xbf16>
    %22 = tpu.concatenate %19, %20, %21 in 2 : vector<10x32x4xbf16>, vector<10x32x4xbf16>, vector<10x32x4xbf16> -> vector<10x32x12xbf16>
    %23 = vector.shape_cast %22 : vector<10x32x12xbf16> to vector<320x12xbf16>
    %c24 = arith.constant 24 : index
    %c0_8 = arith.constant 0 : index
    %24 = vector.load %arg3[%c24, %c0_8] : memref<36x256xbf16, #tpu.memory_space<vmem>>, vector<12x256xbf16>
    %cst_9 = arith.constant dense<0.000000e+00> : vector<320x256xf32>
    %25 = tpu.matmul %23, %24, %cst_9 {dimension_numbers = #tpu.dot_dimension_numbers<[1], [0], [0], [1], [0, 0, 1, 1], [], []>} : vector<320x12xbf16>, vector<12x256xbf16>, vector<320x256xf32> -> vector<320x256xf32>
    %26 = arith.addf %18, %25 : vector<320x256xf32>
    %c0_10 = arith.constant 0 : index
    %c0_11 = arith.constant 0 : index
    %27 = vector.load %arg4[%c0_10, %c0_11] : memref<1x256xf32, #tpu.memory_space<vmem>>, vector<1x256xf32>
    %28 = vector.broadcast %27 : vector<1x256xf32> to vector<320x256xf32>
    %29 = arith.addf %26, %28 : vector<320x256xf32>
    %30 = vector.shape_cast %29 : vector<320x256xf32> to vector<10x32x256xf32>
    %31 = vector.extract_strided_slice %30 {offsets = [0, 0, 0], sizes = [10, 32, 128], strides = [1, 1, 1]} : vector<10x32x256xf32> to vector<10x32x128xf32>
    %cst_12 = arith.constant 2.000000e-01 : f32
    %32 = vector.broadcast %cst_12 : f32 to vector<10x32x128xf32>
    %33 = arith.mulf %32, %31 : vector<10x32x128xf32>
    %34 = arith.maximumf %31, %33 : vector<10x32x128xf32>
    %35 = vector.extract_strided_slice %30 {offsets = [1, 0, 128], sizes = [8, 32, 128], strides = [1, 1, 1]} : vector<10x32x256xf32> to vector<8x32x128xf32>
    %cst_13 = arith.constant 0.000000e+00 : f32
    %36 = vector.broadcast %cst_13 : f32 to vector<8x32x128xf32>
    %37 = arith.subf %36, %35 : vector<8x32x128xf32>
    %38 = math.exp %37 : vector<8x32x128xf32>
    %cst_14 = arith.constant 1.000000e+00 : f32
    %39 = vector.broadcast %cst_14 : f32 to vector<8x32x128xf32>
    %40 = arith.addf %39, %38 : vector<8x32x128xf32>
    %cst_15 = arith.constant 1.000000e+00 : f32
    %41 = vector.broadcast %cst_15 : f32 to vector<8x32x128xf32>
    %42 = arith.divf %41, %40 : vector<8x32x128xf32>
    %43 = tpu.iota {dimensions = array<i32: 0>} : vector<10x1x1xi32>
    %c8_i32 = arith.constant 8 : i32
    %44 = arith.muli %arg1, %c8_i32 : i32
    %c1_i32 = arith.constant 1 : i32
    %45 = arith.subi %44, %c1_i32 : i32
    %46 = vector.broadcast %45 : i32 to vector<10x1x1xi32>
    %47 = arith.addi %43, %46 : vector<10x1x1xi32>
    %c0_i32 = arith.constant 0 : i32
    %48 = vector.broadcast %c0_i32 : i32 to vector<10x1x1xi32>
    %49 = arith.cmpi sge, %47, %48 : vector<10x1x1xi32>
    %c32_i32 = arith.constant 32 : i32
    %50 = vector.broadcast %c32_i32 : i32 to vector<10x1x1xi32>
    %51 = arith.cmpi slt, %47, %50 : vector<10x1x1xi32>
    %52 = arith.andi %49, %51 : vector<10x1x1xi1>
    %cst_16 = arith.constant 0.000000e+00 : f32
    %53 = vector.shape_cast %52 : vector<10x1x1xi1> to vector<10x1x1xi1>
    %54 = vector.broadcast %53 : vector<10x1x1xi1> to vector<10x32x128xi1>
    %55 = vector.broadcast %cst_16 : f32 to vector<10x32x128xf32>
    %56 = arith.select %54, %34, %55 : vector<10x32x128xi1>, vector<10x32x128xf32>
    %cst_17 = arith.constant 0.000000e+00 : bf16
    %57 = vector.broadcast %cst_17 : bf16 to vector<10x1x128xbf16>
    %58 = arith.truncf %56 : vector<10x32x128xf32> to vector<10x32x128xbf16>
    %59 = tpu.concatenate %57, %58, %57 in 1 : vector<10x1x128xbf16>, vector<10x32x128xbf16>, vector<10x1x128xbf16> -> vector<10x34x128xbf16>
    %cst_18 = arith.constant 0.000000e+00 : f32
    %60 = vector.broadcast %cst_18 : f32 to vector<256x128xf32>
    %61 = vector.extract_strided_slice %59 {offsets = [0, 0, 0], sizes = [8, 32, 128], strides = [1, 1, 1]} : vector<10x34x128xbf16> to vector<8x32x128xbf16>
    %62 = vector.extract_strided_slice %59 {offsets = [0, 1, 0], sizes = [8, 32, 128], strides = [1, 1, 1]} : vector<10x34x128xbf16> to vector<8x32x128xbf16>
    %63 = tpu.concatenate %61, %62 in 2 : vector<8x32x128xbf16>, vector<8x32x128xbf16> -> vector<8x32x256xbf16>
    %64 = vector.shape_cast %63 : vector<8x32x256xbf16> to vector<256x256xbf16>
    %c0_19 = arith.constant 0 : index
    %c0_20 = arith.constant 0 : index
    %65 = vector.load %arg5[%c0_19, %c0_20] : memref<1152x128xbf16, #tpu.memory_space<vmem>>, vector<256x128xbf16>
    %cst_21 = arith.constant dense<0.000000e+00> : vector<256x128xf32>
    %66 = tpu.matmul %64, %65, %cst_21 {dimension_numbers = #tpu.dot_dimension_numbers<[1], [0], [0], [1], [0, 0, 1, 1], [], []>} : vector<256x256xbf16>, vector<256x128xbf16>, vector<256x128xf32> -> vector<256x128xf32>
    %67 = arith.addf %60, %66 : vector<256x128xf32>
    %68 = vector.extract_strided_slice %59 {offsets = [0, 2, 0], sizes = [8, 32, 128], strides = [1, 1, 1]} : vector<10x34x128xbf16> to vector<8x32x128xbf16>
    %69 = vector.shape_cast %68 : vector<8x32x128xbf16> to vector<256x128xbf16>
    %c256 = arith.constant 256 : index
    %c0_22 = arith.constant 0 : index
    %70 = vector.load %arg5[%c256, %c0_22] : memref<1152x128xbf16, #tpu.memory_space<vmem>>, vector<128x128xbf16>
    %cst_23 = arith.constant dense<0.000000e+00> : vector<256x128xf32>
    %71 = tpu.matmul %69, %70, %cst_23 {dimension_numbers = #tpu.dot_dimension_numbers<[1], [0], [0], [1], [0, 0, 1, 1], [], []>} : vector<256x128xbf16>, vector<128x128xbf16>, vector<256x128xf32> -> vector<256x128xf32>
    %72 = arith.addf %67, %71 : vector<256x128xf32>
    %73 = vector.extract_strided_slice %59 {offsets = [1, 0, 0], sizes = [8, 32, 128], strides = [1, 1, 1]} : vector<10x34x128xbf16> to vector<8x32x128xbf16>
    %74 = vector.extract_strided_slice %59 {offsets = [1, 1, 0], sizes = [8, 32, 128], strides = [1, 1, 1]} : vector<10x34x128xbf16> to vector<8x32x128xbf16>
    %75 = tpu.concatenate %73, %74 in 2 : vector<8x32x128xbf16>, vector<8x32x128xbf16> -> vector<8x32x256xbf16>
    %76 = vector.shape_cast %75 : vector<8x32x256xbf16> to vector<256x256xbf16>
    %c384 = arith.constant 384 : index
    %c0_24 = arith.constant 0 : index
    %77 = vector.load %arg5[%c384, %c0_24] : memref<1152x128xbf16, #tpu.memory_space<vmem>>, vector<256x128xbf16>
    %cst_25 = arith.constant dense<0.000000e+00> : vector<256x128xf32>
    %78 = tpu.matmul %76, %77, %cst_25 {dimension_numbers = #tpu.dot_dimension_numbers<[1], [0], [0], [1], [0, 0, 1, 1], [], []>} : vector<256x256xbf16>, vector<256x128xbf16>, vector<256x128xf32> -> vector<256x128xf32>
    %79 = arith.addf %72, %78 : vector<256x128xf32>
    %80 = vector.extract_strided_slice %59 {offsets = [1, 2, 0], sizes = [8, 32, 128], strides = [1, 1, 1]} : vector<10x34x128xbf16> to vector<8x32x128xbf16>
    %81 = vector.shape_cast %80 : vector<8x32x128xbf16> to vector<256x128xbf16>
    %c640 = arith.constant 640 : index
    %c0_26 = arith.constant 0 : index
    %82 = vector.load %arg5[%c640, %c0_26] : memref<1152x128xbf16, #tpu.memory_space<vmem>>, vector<128x128xbf16>
    %cst_27 = arith.constant dense<0.000000e+00> : vector<256x128xf32>
    %83 = tpu.matmul %81, %82, %cst_27 {dimension_numbers = #tpu.dot_dimension_numbers<[1], [0], [0], [1], [0, 0, 1, 1], [], []>} : vector<256x128xbf16>, vector<128x128xbf16>, vector<256x128xf32> -> vector<256x128xf32>
    %84 = arith.addf %79, %83 : vector<256x128xf32>
    %85 = vector.extract_strided_slice %59 {offsets = [2, 0, 0], sizes = [8, 32, 128], strides = [1, 1, 1]} : vector<10x34x128xbf16> to vector<8x32x128xbf16>
    %86 = vector.extract_strided_slice %59 {offsets = [2, 1, 0], sizes = [8, 32, 128], strides = [1, 1, 1]} : vector<10x34x128xbf16> to vector<8x32x128xbf16>
    %87 = tpu.concatenate %85, %86 in 2 : vector<8x32x128xbf16>, vector<8x32x128xbf16> -> vector<8x32x256xbf16>
    %88 = vector.shape_cast %87 : vector<8x32x256xbf16> to vector<256x256xbf16>
    %c768 = arith.constant 768 : index
    %c0_28 = arith.constant 0 : index
    %89 = vector.load %arg5[%c768, %c0_28] : memref<1152x128xbf16, #tpu.memory_space<vmem>>, vector<256x128xbf16>
    %cst_29 = arith.constant dense<0.000000e+00> : vector<256x128xf32>
    %90 = tpu.matmul %88, %89, %cst_29 {dimension_numbers = #tpu.dot_dimension_numbers<[1], [0], [0], [1], [0, 0, 1, 1], [], []>} : vector<256x256xbf16>, vector<256x128xbf16>, vector<256x128xf32> -> vector<256x128xf32>
    %91 = arith.addf %84, %90 : vector<256x128xf32>
    %92 = vector.extract_strided_slice %59 {offsets = [2, 2, 0], sizes = [8, 32, 128], strides = [1, 1, 1]} : vector<10x34x128xbf16> to vector<8x32x128xbf16>
    %93 = vector.shape_cast %92 : vector<8x32x128xbf16> to vector<256x128xbf16>
    %c1024 = arith.constant 1024 : index
    %c0_30 = arith.constant 0 : index
    %94 = vector.load %arg5[%c1024, %c0_30] : memref<1152x128xbf16, #tpu.memory_space<vmem>>, vector<128x128xbf16>
    %cst_31 = arith.constant dense<0.000000e+00> : vector<256x128xf32>
    %95 = tpu.matmul %93, %94, %cst_31 {dimension_numbers = #tpu.dot_dimension_numbers<[1], [0], [0], [1], [0, 0, 1, 1], [], []>} : vector<256x128xbf16>, vector<128x128xbf16>, vector<256x128xf32> -> vector<256x128xf32>
    %96 = arith.addf %91, %95 : vector<256x128xf32>
    %c0_32 = arith.constant 0 : index
    %c0_33 = arith.constant 0 : index
    %97 = vector.load %arg6[%c0_32, %c0_33] : memref<1x128xf32, #tpu.memory_space<vmem>>, vector<1x128xf32>
    %98 = vector.broadcast %97 : vector<1x128xf32> to vector<256x128xf32>
    %99 = arith.addf %96, %98 : vector<256x128xf32>
    %cst_34 = arith.constant 2.000000e-01 : f32
    %100 = vector.broadcast %cst_34 : f32 to vector<256x128xf32>
    %101 = arith.mulf %100, %99 : vector<256x128xf32>
    %102 = arith.maximumf %99, %101 : vector<256x128xf32>
    %103 = vector.shape_cast %102 : vector<256x128xf32> to vector<8x32x128xf32>
    %104 = arith.mulf %103, %42 : vector<8x32x128xf32>
    %c0_35 = arith.constant 0 : index
    %c0_36 = arith.constant 0 : index
    %c0_37 = arith.constant 0 : index
    %c0_38 = arith.constant 0 : index
    %105 = vector.load %arg7[%c0_35, %c0_36, %c0_37, %c0_38] : memref<1x8x32x128xf32, #tpu.memory_space<vmem>>, vector<1x8x32x128xf32>
    %106 = vector.shape_cast %105 : vector<1x8x32x128xf32> to vector<8x32x128xf32>
    %107 = vector.shape_cast %104 : vector<8x32x128xf32> to vector<1x8x32x128xf32>
    tpu.vector_store %arg7[%c0_35, %c0_36, %c0_37, %c0_38], %107 {strides = array<i32>} : memref<1x8x32x128xf32, #tpu.memory_space<vmem>>, vector<1x8x32x128xf32>,
    return
  }
  func.func @transform_0(%arg0: i32, %arg1: i32) -> (i32, i32, i32, i32) {
    %c4_i32 = arith.constant 4 : i32
    %0 = arith.muli %arg0, %c4_i32 : i32
    %1 = arith.addi %0, %arg1 : i32
    %c0_i32 = arith.constant 0 : i32
    %c0_i32_0 = arith.constant 0 : i32
    %c0_i32_1 = arith.constant 0 : i32
    %c0_i32_2 = arith.constant 0 : i32
    return %1, %c0_i32, %c0_i32_0, %c0_i32_1 : i32, i32, i32, i32
  }
  func.func @transform_1(%arg0: i32, %arg1: i32) -> (i32, i32) {
    %c0_i32 = arith.constant 0 : i32
    %c0_i32_0 = arith.constant 0 : i32
    %c0_i32_1 = arith.constant 0 : i32
    return %c0_i32, %c0_i32_0 : i32, i32
  }
  func.func @transform_2(%arg0: i32, %arg1: i32) -> (i32, i32) {
    %c0_i32 = arith.constant 0 : i32
    %c0_i32_0 = arith.constant 0 : i32
    %c0_i32_1 = arith.constant 0 : i32
    return %c0_i32, %c0_i32_0 : i32, i32
  }
  func.func @transform_3(%arg0: i32, %arg1: i32) -> (i32, i32) {
    %c0_i32 = arith.constant 0 : i32
    %c0_i32_0 = arith.constant 0 : i32
    %c0_i32_1 = arith.constant 0 : i32
    return %c0_i32, %c0_i32_0 : i32, i32
  }
  func.func @transform_4(%arg0: i32, %arg1: i32) -> (i32, i32) {
    %c0_i32 = arith.constant 0 : i32
    %c0_i32_0 = arith.constant 0 : i32
    %c0_i32_1 = arith.constant 0 : i32
    return %c0_i32, %c0_i32_0 : i32, i32
  }
  func.func @transform_5(%arg0: i32, %arg1: i32) -> (i32, i32, i32, i32) {
    %c0_i32 = arith.constant 0 : i32
    %c0_i32_0 = arith.constant 0 : i32
    %c0_i32_1 = arith.constant 0 : i32
    return %arg0, %arg1, %c0_i32, %c0_i32_0 : i32, i32, i32, i32
  }
}

</mosaic_0001>

<bundles_post_ra>
// kernel: tpu_custom_call.1
= control target key start
LH: loop header
LB: loop body
LE: loop exit
PB: predicated region body
PF: predicated region fallthrough
CT: control target
= control target key end

     0   :  { %10 = vsyncpa [#allocation3], 0  ;;  %s8423_s0 = inlined_call_operand.vmem [shape: bf16[8,12,34,4], index: 0, kind: input, shape index: {}]   ;;  %s8424_s1 = inlined_call_operand.vmem [shape: bf16[36,256], index: 1, kind: input, shape index: {}]   ;;  %s8425_s2 = inlined_call_operand.vmem [shape: f32[1,256], index: 2, kind: input, shape index: {}]   ;;  %s8426_s3 = inlined_call_operand.vmem [shape: bf16[1152,128], index: 3, kind: input, shape index: {}]   ;;  %s8427_s4 = inlined_call_operand.vmem [shape: f32[1,128], index: 4, kind: input, shape index: {}]   ;;  %s8428_s5 = inlined_call_operand.hbm [shape: f32[2,32,32,128], index: 5, kind: output, shape index: {}]  }
   0x1   :  { %12 = vsyncpa [#allocation3 + $0x1], 0  ;;  %s6223_s18 = smov 0   ;;  %s6225_s19 = smov 0  }
   0x2   :  { %s6227_s20 = smov 0   ;;  %s6229_s21 = smov 0  }
   0x3   :  { %s6231_s22 = smov 0   ;;  %s6233_s23 = smov 0  }
   0x4   :  { %s6235_s24 = smov 0   ;;  %s6237_s25 = smov 0  }
   0x5 LB: > { %s4733_s26 = sadd.s32 4294967295, %s6186_s25   ;;  %s4734_s27 = sadd.s32 4294967294, %s6186_s25   ;;  %s6186_s25 = sphi %s6237_s25, %s18_s25   ;;  %s6182_s24 = sphi %s6235_s24, %s8618_s24   ;;  %s6178_s23 = sphi %s6233_s23, %s8617_s23   ;;  %s6174_s22 = sphi %s6231_s22, %s8616_s22   ;;  %s6170_s21 = sphi %s6229_s21, %s8615_s21   ;;  %s6166_s20 = sphi %s6227_s20, %s8614_s20   ;;  %s6162_s19 = sphi %s6225_s19, %s8613_s19   ;;  %s6158_s18 = sphi %s6223_s18, %s8612_s18  }
   0x6   : > { %s27_s28 = sadd.s32 1, %s6178_s23  ;;  %s30_s29 = sadd.s32 1, %s6182_s24 }
   0x7   : > { %p28_p0 = scmp.ge.s32.totalorder %s27_s28, 4  ;;  %p163_p1 = scmp.ne.s32.totalorder %s6166_s20, %s6162_s19 }
   0x8   : > { %p164_p2 = scmp.eq.s32.totalorder %s4733_s26, 7  ;;  %p169_p5 = scmp.ne.s32.totalorder %s6162_s19, %s6158_s18 }
   0x9   : > { %s8620_s28 = smov (%p28_p0, %s27_s28), 0  ;;  %s8622_s29 = smov (!%p28_p0, %s30_s29), %s6182_s24 }
   0xa   : > { %s149_s30 = ssub.s32 %s6178_s23, %s8620_s28  ;;  %p6274_p3 = por %p164_p2, %p163_p1 }
   0xb   : > { %p32_p4 = scmp.ge.s32.totalorder %s8622_s29, 2  ;;  %p170_p6 = scmp.eq.s32.totalorder %s4734_s27, 7 }
   0xc   : > { %p4739_p7 = scmp.ge.s32.totalorder %s6186_s25, 1  ;;  %p212_p9 = scmp.lt.s32.totalorder %s6186_s25, 9 }
   0xd   : > { %s8624_s29 = smov (%p32_p4, %s8622_s29), 0  ;;  %p6283_p8 = por %p170_p6, %p169_p5 }
   0xe   : > { %s148_s8 = ssub.s32 %s6182_s24, %s8624_s29  ;;  %s153_s9 = sadd.s32 1, %s6166_s20 }
   0xf   : > { %s150_s10 = sor.u32 %s149_s30, %s148_s8  ;;  %p213_p10 = pnand %p4739_p7, %p212_p9 }
  0x10   : > { %p151_p11 = scmp.eq.s32.totalorder %s150_s10, 0 }
  0x11   : > { %216 = sbr.rel (%p213_p10) target bundleno = 1481 (0x5c9), region = 40 }
  0x12   : > { %s6292_s11 = scalar_select %p151_p11, %s6166_s20, %s153_s9  }
  0x18   : > { %s4741_s12 = sshll.u32 %s6174_s22, 2  ;;  %v5868_v0 = vld [vmem:[%s8424_s1 + $0xc] ss:$8 sps:$4 sm:$0xfc]   ;;  %vm966_vm0 = vcmask 1045504   ;;  %v6188_v8 = vmov 0  }
  0x19   : > { %s243_s13 = sadd.s32 %s6170_s21, %s4741_s12  ;;  %v5872_v1 = vld [vmem:[%s8424_s1 + $0x8] ss:$8 sps:$4 sm:$0xfc]   ;;  %v924_v2 = vrot.slane %v5868_v0, 2  ;;  %vm443_vm1 = vsmask.f32 7424  ;;  %1005 = vmatprep.mubr.bf16.mxu0 %v6188_v8 }
  0x1a   : > { %p244_p12 = scmp.lt.s32.totalorder %s243_s13, 7  ;;  %v923_v3 = vrot.slane %v5872_v1, 2  ;;  %vm684_vm2 = vcmask 1046528   ;;  %s6189_s9 = smov 4   ;;  %vm775_vm3 = vcmask 31744   ;;  %vm816_vm4 = vcmask 64512  }
  0x1b   : > { %4778 = vmatprep.subr.msk.bf16.mxu0 %vm966_vm0, %v924_v2  ;;  %s6190_s10 = smov 8   ;;  %vm925_vm5 = vcmask 97280   ;;  %s4848_s17 = sshll.u32 %s6170_s21, 3  ;;  %vm2290_vm9 = vsmask.f32 256  ;;  %vm2471_vm10 = vcmask 1040384  }
  0x1c   : > { %s8626_s13 = smov (!%p244_p12, %s243_s13), 7  ;;  %v968_v4 = vsel %vm966_vm0, %v923_v3, 0  ;;  %vm7050_vm13 = vmand %vm2471_vm10, %vm2290_vm9  ;;  %s239_s16 = sand.u32 1, %s6162_s19  }
  0x1d   : > { %s5771_s26 = smul.u32 240, %s8626_s13  ;;  %974 = vmatpush1.bf16.msra.mxu0 %v968_v4  ;;  %s4930_s27 = sshll.u32 %s6170_s21, 5 }
  0x1e   : > { %s4926_s30 = sshll.u32 %s6174_s22, 7  ;;  %s8370_s14 = scalar_lea.sflag [#allocation3], %s239_s16 }
  0x1f   : > { %s6307_s8 = scalar_lea.vmem %s8423_s0, %s5771_s26  ;;  %s4849_s26 = sadd.s32 4294967295, %s4848_s17 }
  0x20   : > { %v6310_v5 = vld [vmem:[%s6307_s8 + $0x14] sm:$0xff]   ;;  %v6313_v6 = vld [vmem:[%s6307_s8 + $0x1c] sm:$0xff]   ;;  %v5849_v7 = vld [vmem:[%s6307_s8 + $0x24] ss:$0 sps:$4 sm:$0x11]   ;;  %s8206_s17 = sshll.u32 %s239_s16, 8 }
  0x21   : > { %v465_v9 = vshrl.u32 %v6310_v5, 16  ;;  %v467_v10 = vshll.u32 %v6310_v5, 16  ;;  %v472_v11 = vshll.u32 %v6313_v6, 16  ;;  %v6321_v12 = vld [vmem:[%s6307_s8 + $0x28] sm:$0xff]   ;;  %v690_v13 = vrot.slane %v6310_v5, 1  ;;  %v6327_v21 = vld [vmem:[%s6307_s8 + $0x30] sm:$0xff]  }
  0x22   : > { %v691_v14 = vrot.slane %v6313_v6, 1  ;;  %v476_v15 = vshrl.u32 %v6313_v6, 16  ;;  %v480_v16 = vshll.u32 %v5849_v7, 16  ;;  %v693_v20 = vrot.slane %v5849_v7, 1  ;;  %v6333_v27 = vld [vmem:[%s6307_s8 + $0x3c] sm:$0xff]   ;;  %v6346_v37 = vld [vmem:[%s6307_s8 + $0x44] sm:$0xff]  }
  0x23   : > { %v469_v17 = vrot.slane %v467_v10, 1  ;;  %v474_v18 = vrot.slane %v472_v11, 1  ;;  %v485_v24 = vshrl.u32 %v6321_v12, 16  ;;  %v487_v25 = vshll.u32 %v6321_v12, 16  ;;  %v6357_v51 = vld [vmem:[%s6307_s8 + $0x50] sm:$0xff]   ;;  %v6365_v57 = vld [vmem:[%s6307_s8 + $0x58] sm:$0xff]  }
  0x24   : > { %v482_v19 = vrot.slane %v480_v16, 1  ;;  %v5852_v26 = vld [vmem:[%s6307_s8 + $0x38] ss:$0 sps:$4 sm:$0x11]   ;;  %v492_v28 = vshll.u32 %v6327_v21, 16  ;;  %v692_v30 = vsel %vm684_vm2, %v690_v13, %v691_v14  ;;  %v694_v33 = vsel %vm684_vm2, %v691_v14, %v693_v20  ;;  %v6372_v0 = vld [vmem:[%s6307_s8 + $0x64] sm:$0xff]  }
  0x25   : > { %v470_v22 = vor.u32 %v469_v17, %v465_v9  ;;  %v478_v23 = vor.u32 %v476_v15, %v474_v18  ;;  %v489_v32 = vrot.slane %v487_v25, 1  ;;  %v695_v34 = vrot.slane %v6321_v12, 1  ;;  %v5855_v42 = vld [vmem:[%s6307_s8 + $0x4c] ss:$0 sps:$4 sm:$0x11]   ;;  %v6398_v25 = vld [vmem:[%s6307_s8 + $0x80] sm:$0xff]  }
  0x26   : > { %v696_v35 = vrot.slane %v6327_v21, 1  ;;  %v496_v36 = vshrl.u32 %v6327_v21, 16  ;;  %v494_v39 = vrot.slane %v492_v28, 1  ;;  %v500_v40 = vshll.u32 %v5852_v26, 16  ;;  %v6381_v11 = vld [vmem:[%s6307_s8 + $0x6c] sm:$0xff]  }
  0x27   : > { %v475_v29 = vsel %vm443_vm1, %v470_v22, %v474_v18  ;;  %v483_v31 = vsel %vm443_vm1, %v478_v23, %v482_v19  ;;  %v490_v38 = vor.u32 %v489_v32, %v485_v24  ;;  %v507_v41 = vshll.u32 %v6333_v27, 16  ;;  %v5858_v63 = vld [vmem:[%s6307_s8 + $0x60] ss:$0 sps:$4 sm:$0x11]   ;;  %v6394_v19 = vld [vmem:[%s6307_s8 + $0x78] sm:$0xff]  }
  0x28   : > { %648 = vrot.lane.b32.xlu0 %v475_v29, %s6189_s9  ;;  %650 = vrot.lane.b32.xlu1 %v483_v31, %s6189_s9  ;;  %v505_v43 = vshrl.u32 %v6333_v27, 16  ;;  %v697_v44 = vsel %vm684_vm2, %v695_v34, %v696_v35  ;;  %v698_v45 = vrot.slane %v5852_v26, 1  ;;  %v512_v46 = vshll.u32 %v6346_v37, 16  ;;  %v6384_v13 = vld [vmem:[%s6307_s8 + $0x74] ss:$0 sps:$4 sm:$0x11]  }
  0x29   : > { %v495_v47 = vsel %vm443_vm1, %v490_v38, %v494_v39  ;;  %v498_v48 = vor.u32 %v496_v36, %v494_v39  ;;  %v502_v49 = vrot.slane %v500_v40, 1  ;;  %v509_v50 = vrot.slane %v507_v41, 1  ;;  %v6414_v41 = vld [vmem:[%s6307_s8 + $0x8c] sm:$0xff]  }
  0x2a   : > { %v700_v52 = vrot.slane %v6333_v27, 1  ;;  %v699_v53 = vsel %vm684_vm2, %v696_v35, %v698_v45  ;;  %v514_v54 = vrot.slane %v512_v46, 1  ;;  %v701_v55 = vrot.slane %v6346_v37, 1  ;;  %v6408_v35 = vld [vmem:[%s6307_s8 + $0x88] ss:$0 sps:$4 sm:$0x11]  }
  0x2b   : > { %v520_v56 = vshll.u32 %v5855_v42, 16  ;;  %v503_v58 = vsel %vm443_vm1, %v498_v48, %v502_v49  ;;  %v510_v59 = vor.u32 %v509_v50, %v505_v43  ;;  %v516_v60 = vshrl.u32 %v6346_v37, 16  ;;  %v6419_v45 = vld [vmem:[%s6307_s8 + $0x94] sm:$0xff]   ;;  %v5873_v50 = vld [vmem:[%s8424_s1 + $0x4] ss:$8 sps:$4 sm:$0x3f]  }
  0x2c   : > { %739 = vrot.lane.b32.xlu0 %v692_v30, %s6190_s10  ;;  %741 = vrot.lane.b32.xlu1 %v694_v33, %s6190_s10  ;;  %v527_v61 = vshll.u32 %v6357_v51, 16  ;;  %v703_v62 = vrot.slane %v5855_v42, 1  ;;  %v702_v1 = vsel %vm684_vm2, %v700_v52, %v701_v55  ;;  %v525_v3 = vshrl.u32 %v6357_v51, 16 }
  0x2d   : > { %v522_v2 = vrot.slane %v520_v56, 1  ;;  %v515_v4 = vsel %vm443_vm1, %v510_v59, %v514_v54  ;;  %v518_v7 = vor.u32 %v516_v60, %v514_v54  ;;  %v532_v10 = vshll.u32 %v6365_v57, 16  ;;  %v6432_v56 = vld [vmem:[%s6307_s8 + $0x9c] ss:$0 sps:$4 sm:$0x11]   ;;  %4801 = vmatprep.subr.msk.bf16.mxu0 %vm966_vm0, %v5873_v50 }
  0x2e   : > { %v529_v9 = vrot.slane %v527_v61, 1  ;;  %v547_v14 = vshll.u32 %v6372_v0, 16  ;;  %v704_v15 = vsel %vm684_vm2, %v701_v55, %v703_v62  ;;  %v705_v16 = vrot.slane %v6357_v51, 1  ;;  %v6438_v62 = vld [vmem:[%s6307_s8 + $0xa0] sm:$0xff]  }
  0x2f   : > { %v706_v17 = vrot.slane %v6365_v57, 1  ;;  %v536_v18 = vshrl.u32 %v6365_v57, 16  ;;  %v523_v20 = vsel %vm443_vm1, %v518_v7, %v522_v2  ;;  %v534_v23 = vrot.slane %v532_v10, 1 }
  0x30   : > { %652 = vrot.lane.b32.xlu0 %v495_v47, %s6189_s9  ;;  %743 = vrot.lane.b32.xlu1 %v697_v44, %s6190_s10  ;;  %v530_v22 = vor.u32 %v529_v9, %v525_v3  ;;  %v540_v24 = vshll.u32 %v5858_v63, 16  ;;  %v552_v26 = vshll.u32 %v6381_v11, 16  ;;  %v708_v28 = vrot.slane %v5858_v63, 1  ;;  %v6445_v3 = vld [vmem:[%s6307_s8 + $0xa8] sm:$0xff]  }
  0x31   : > { %v545_v29 = vshrl.u32 %v6372_v0, 16  ;;  %v549_v30 = vrot.slane %v547_v14, 1  ;;  %v560_v31 = vshll.u32 %v6384_v13, 16  ;;  %v707_v32 = vsel %vm684_vm2, %v705_v16, %v706_v17 }
  0x32   : > { %v538_v33 = vor.u32 %v536_v18, %v534_v23  ;;  %v567_v34 = vshll.u32 %v6394_v19, 16  ;;  %v535_v36 = vsel %vm443_vm1, %v530_v22, %v534_v23  ;;  %v542_v38 = vrot.slane %v540_v24, 1  ;;  %v6458_v22 = vld [vmem:[%s6307_s8 + $0xb4] sm:$0xff]   ;;  %v6461_v23 = vld [vmem:[%s6307_s8 + $0xbc] sm:$0xff]  }
  0x33   : > { %v710_v39 = vrot.slane %v6372_v0, 1  ;;  %v572_v40 = vshll.u32 %v6398_v25, 16  ;;  %v554_v42 = vrot.slane %v552_v26, 1  ;;  %v711_v43 = vrot.slane %v6381_v11, 1 }
  0x34   : > { %654 = vrot.lane.b32.xlu0 %v503_v58, %s6189_s9  ;;  %745 = vrot.lane.b32.xlu1 %v699_v53, %s6190_s10  ;;  %v556_v44 = vshrl.u32 %v6381_v11, 16  ;;  %v550_v46 = vor.u32 %v549_v30, %v545_v29  ;;  %v562_v47 = vrot.slane %v560_v31, 1  ;;  %v713_v48 = vrot.slane %v6384_v13, 1  ;;  %v6465_v26 = vld [vmem:[%s6307_s8 + $0xb0] ss:$0 sps:$4 sm:$0x11]  }
  0x35   : > { %v565_v49 = vshrl.u32 %v6394_v19, 16  ;;  %v709_v52 = vsel %vm684_vm2, %v706_v17, %v708_v28  ;;  %v569_v53 = vrot.slane %v567_v34, 1  ;;  %v715_v54 = vrot.slane %v6394_v19, 1  ;;  %v6468_v29 = vld [vmem:[%s6307_s8 + $0xc4] ss:$0 sps:$4 sm:$0x11]  }
  0x36   : > { %v580_v55 = vshll.u32 %v6408_v35, 16  ;;  %v543_v58 = vsel %vm443_vm1, %v538_v33, %v542_v38  ;;  %v574_v59 = vrot.slane %v572_v40, 1  ;;  %v716_v60 = vrot.slane %v6398_v25, 1 }
  0x37   : > { %v587_v61 = vshll.u32 %v6414_v41, 16  ;;  %v576_v63 = vshrl.u32 %v6398_v25, 16  ;;  %v592_v2 = vshll.u32 %v6419_v45, 16  ;;  %v712_v7 = vsel %vm684_vm2, %v710_v39, %v711_v43 }
  0x38   : > { %656 = vrot.lane.b32.xlu0 %v515_v4, %s6189_s9  ;;  %747 = vrot.lane.b32.xlu1 %v702_v1, %s6190_s10  ;;  %v718_v1 = vrot.slane %v6408_v35, 1  ;;  %v555_v4 = vsel %vm443_vm1, %v550_v46, %v554_v42  ;;  %v558_v9 = vor.u32 %v556_v44, %v554_v42  ;;  %v582_v10 = vrot.slane %v580_v55, 1  ;;  %v6480_v44 = vld [vmem:[%s6307_s8 + $0xc8] sm:$0xff]  }
  0x39   : > { %v585_v13 = vshrl.u32 %v6414_v41, 16  ;;  %v720_v14 = vrot.slane %v6414_v41, 1  ;;  %v589_v16 = vrot.slane %v587_v61, 1  ;;  %v596_v17 = vshrl.u32 %v6419_v45, 16 }
  0x3a   : > { %v600_v18 = vshll.u32 %v6432_v56, 16  ;;  %v612_v24 = vshll.u32 %v6445_v3, 16  ;;  %v594_v28 = vrot.slane %v592_v2, 1  ;;  %v570_v30 = vor.u32 %v569_v53, %v565_v49 }
  0x3b   : > { %v723_v31 = vrot.slane %v6432_v56, 1  ;;  %v563_v33 = vsel %vm443_vm1, %v558_v9, %v562_v47  ;;  %v714_v34 = vsel %vm684_vm2, %v711_v43, %v713_v48  ;;  %v726_v40 = vrot.slane %v6445_v3, 1 }
  0x3c   : > { %658 = vrot.lane.b32.xlu0 %v523_v20, %s6189_s9  ;;  %749 = vrot.lane.b32.xlu1 %v704_v15, %s6190_s10  ;;  %v721_v15 = vrot.slane %v6419_v45, 1  ;;  %v607_v20 = vshll.u32 %v6438_v62, 16  ;;  %v602_v35 = vrot.slane %v600_v18, 1  ;;  %v614_v39 = vrot.slane %v612_v24, 1 }
  0x3d   : > { %v620_v42 = vshll.u32 %v6465_v26, 16  ;;  %v717_v46 = vsel %vm684_vm2, %v715_v54, %v716_v60  ;;  %v627_v47 = vshll.u32 %v6458_v22, 16  ;;  %v632_v43 = vshll.u32 %v6461_v23, 16 }
  0x3e   : > { %v609_v38 = vrot.slane %v607_v20, 1  ;;  %v575_v48 = vsel %vm443_vm1, %v570_v30, %v574_v59  ;;  %v578_v49 = vor.u32 %v576_v63, %v574_v59  ;;  %v616_v50 = vshrl.u32 %v6445_v3, 16 }
  0x3f   : > { %v728_v53 = vrot.slane %v6465_v26, 1  ;;  %v625_v55 = vshrl.u32 %v6458_v22, 16  ;;  %v730_v54 = vrot.slane %v6458_v22, 1  ;;  %v731_v56 = vrot.slane %v6461_v23, 1 }
  0x40   : > { %660 = vrot.lane.b32.xlu0 %v535_v36, %s6189_s9  ;;  %751 = vrot.lane.b32.xlu1 %v707_v32, %s6190_s10  ;;  %v605_v32 = vshrl.u32 %v6438_v62, 16  ;;  %v725_v36 = vrot.slane %v6438_v62, 1  ;;  %v622_v61 = vrot.slane %v620_v42, 1  ;;  %v875_v2 = vshll.u32 %v6480_v44, 16 }
  0x41   : > { %v636_v59 = vshrl.u32 %v6461_v23, 16  ;;  %v733_v63 = vrot.slane %v6468_v29, 1  ;;  %v873_v18 = vshrl.u32 %v6480_v44, 16  ;;  %v583_v20 = vsel %vm443_vm1, %v578_v49, %v582_v10 }
  0x42   : > { %v719_v24 = vsel %vm684_vm2, %v716_v60, %v718_v1  ;;  %v590_v26 = vor.u32 %v589_v16, %v585_v13  ;;  %v877_v30 = vrot.slane %v875_v2, 1  ;;  %v722_v10 = vsel %vm684_vm2, %v720_v14, %v721_v15  ;;  %v5882_v1 = vld [vmem:[%s6307_s8 + $0xd8] ss:$0 sps:$4 sm:$0x11]   ;;  %v6534_v2 = vld [vmem:[%s6307_s8 + $0x8] sm:$0xff]  }
  0x43   : > { %v598_v60 = vor.u32 %v596_v17, %v594_v28  ;;  %v888_v14 = vshll.u32 %v5882_v1, 16  ;;  %v899_v17 = vrot.slane %v5882_v1, 1  ;;  %v727_v49 = vsel %vm684_vm2, %v725_v36, %v726_v40 }
  0x44   : > { %662 = vrot.lane.b32.xlu0 %v543_v58, %s6189_s9  ;;  %753 = vrot.lane.b32.xlu1 %v709_v52, %s6190_s10  ;;  %v640_v52 = vshll.u32 %v6468_v29, 16  ;;  %v6497_v58 = vld [vmem:[%s6307_s8 + $0xd0] sm:$0xff]   ;;  %v896_v29 = vrot.slane %v6480_v44, 1  ;;  %v595_v42 = vsel %vm443_vm1, %v590_v26, %v594_v28 }
  0x45   : > { %v884_v16 = vshrl.u32 %v6497_v58, 16  ;;  %v890_v36 = vrot.slane %v888_v14, 1  ;;  %v5885_v26 = vld [vmem:[%s6307_s8 + $0x10] ss:$0 sps:$4 sm:$0x11]  }
  0x46   : > { %v642_v9 = vrot.slane %v640_v52, 1  ;;  %v618_v52 = vor.u32 %v616_v50, %v614_v39 }
  0x48   : > { %664 = vrot.lane.b32.xlu0 %v555_v4, %s6189_s9  ;;  %755 = vrot.lane.b32.xlu1 %v712_v7, %s6190_s10  ;;  %v629_v4 = vrot.slane %v627_v47, 1  ;;  %v634_v7 = vrot.slane %v632_v43, 1  ;;  %v724_v47 = vsel %vm684_vm2, %v721_v15, %v723_v31  ;;  %v610_v43 = vor.u32 %v609_v38, %v605_v32 }
  0x49   : > { %v623_v32 = vsel %vm443_vm1, %v618_v52, %v622_v61 }
  0x4a   : > { %v615_v28 = vsel %vm443_vm1, %v610_v43, %v614_v39  ;;  %v630_v38 = vor.u32 %v629_v4, %v625_v55  ;;  %v452_v39 = vshll.u32 %v6534_v2, 16  ;;  %v734_v55 = vsel %vm684_vm2, %v731_v56, %v733_v63 }
  0x4b   : > { %v878_v4 = vor.u32 %v877_v30, %v873_v18  ;;  %v460_v63 = vshll.u32 %v5885_v26, 16 }
  0x4c   : > { %666 = vrot.lane.b32.xlu0 %v563_v33, %s6189_s9  ;;  %757 = vrot.lane.b32.xlu1 %v714_v34, %s6190_s10  ;;  %v880_v33 = vshll.u32 %v6497_v58, 16  ;;  %v897_v34 = vrot.slane %v6497_v58, 1  ;;  %v635_v50 = vsel %vm443_vm1, %v630_v38, %v634_v7 }
  0x4e   : > { %v882_v13 = vrot.slane %v880_v33, 1  ;;  %v454_v33 = vrot.slane %v452_v39, 1  ;;  %v900_v18 = vsel %vm684_vm2, %v897_v34, %v899_v17 }
  0x50   : > { %668 = vrot.lane.b32.xlu0 %v575_v48, %s6189_s9  ;;  %759 = vrot.lane.b32.xlu1 %v717_v46, %s6190_s10  ;;  %v603_v46 = vsel %vm443_vm1, %v598_v60, %v602_v35  ;;  %v6527_v48 = vld [vmem:[%s6307_s8] sm:$0xff]   ;;  %v729_v35 = vsel %vm684_vm2, %v726_v40, %v728_v53  ;;  %v688_v60 = vrot.slane %v5885_v26, 1 }
  0x51   : > { %v445_v15 = vshrl.u32 %v6527_v48, 16  ;;  %v447_v31 = vshll.u32 %v6527_v48, 16  ;;  %v685_v40 = vrot.slane %v6527_v48, 1 }
  0x53   : > { %v449_v61 = vrot.slane %v447_v31, 1 }
  0x54   : > { %670 = vrot.lane.b32.xlu0 %v583_v20, %s6189_s9  ;;  %761 = vrot.lane.b32.xlu1 %v719_v24, %s6190_s10  ;;  %v732_v20 = vsel %vm684_vm2, %v730_v54, %v731_v56  ;;  %v638_v24 = vor.u32 %v636_v59, %v634_v7  ;;  %v686_v54 = vrot.slane %v6534_v2, 1  ;;  %v883_v7 = vsel %vm443_vm1, %v878_v4, %v882_v13 }
  0x55   : > { %v898_v59 = vsel %vm684_vm2, %v896_v29, %v897_v34  ;;  %v456_v56 = vshrl.u32 %v6534_v2, 16  ;;  %v450_v30 = vor.u32 %v449_v61, %v445_v15 }
  0x56   : > { %v643_v53 = vsel %vm443_vm1, %v638_v24, %v642_v9  ;;  %v687_v1 = vsel %vm684_vm2, %v685_v40, %v686_v54  ;;  %v689_v34 = vsel %vm684_vm2, %v686_v54, %v688_v60 }
  0x57   : > { %v455_v29 = vsel %vm443_vm1, %v450_v30, %v454_v33 }
  0x58   : > { %672 = vrot.lane.b32.xlu0 %v595_v42, %s6189_s9  ;;  %763 = vrot.lane.b32.xlu1 %v722_v10, %s6190_s10  ;;  %v886_v42 = vor.u32 %v884_v16, %v882_v13  ;;  %v462_v10 = vrot.slane %v460_v63, 1  ;;  %v458_v13 = vor.u32 %v456_v56, %v454_v33 }
  0x5a   : > { %v891_v9 = vsel %vm443_vm1, %v886_v42, %v890_v36  ;;  %v463_v16 = vsel %vm443_vm1, %v458_v13, %v462_v10 }
  0x5c   : > { %674 = vrot.lane.b32.xlu0 %v603_v46, %s6189_s9  ;;  %765 = vrot.lane.b32.xlu1 %v724_v47, %s6190_s10  ;;  %v5875_v47 = vld [vmem:[%s8424_s1] ss:$8 sps:$4 sm:$0x3f]  }
  0x60   : > { %676 = vrot.lane.b32.xlu0 %v615_v28, %s6189_s9  ;;  %767 = vrot.lane.b32.xlu1 %v727_v49, %s6190_s10  ;;  %v1211_v28 = vsel %vm966_vm0, %v5875_v47, 0 }
  0x64   : > { %678 = vrot.lane.b32.xlu0 %v623_v32, %s6189_s9  ;;  %769 = vrot.lane.b32.xlu1 %v729_v35, %s6190_s10 }
  0x68   : > { %680 = vrot.lane.b32.xlu0 %v635_v50, %s6189_s9  ;;  %771 = vrot.lane.b32.xlu1 %v732_v20, %s6190_s10 }
  0x6c   : > { %682 = vrot.lane.b32.xlu0 %v643_v53, %s6189_s9  ;;  %773 = vrot.lane.b32.xlu1 %v734_v55, %s6190_s10 }
  0x70   : > { %892 = vrot.lane.b32.xlu0 %v883_v7, %s6189_s9  ;;  %901 = vrot.lane.b32.xlu1 %v898_v59, %s6190_s10 }
  0x74   : > { %894 = vrot.lane.b32.xlu0 %v891_v9, %s6189_s9  ;;  %903 = vrot.lane.b32.xlu1 %v900_v18, %s6190_s10 }
  0x78   : > { %644 = vrot.lane.b32.xlu0 %v455_v29, %s6189_s9  ;;  %735 = vrot.lane.b32.xlu1 %v687_v1, %s6190_s10 }
  0x7c   : > { %646 = vrot.lane.b32.xlu0 %v463_v16, %s6189_s9  ;;  %737 = vrot.lane.b32.xlu1 %v689_v34, %s6190_s10 }
  0x9a   : > { %v649_v46 = vpop.permute.xlu0 %648  ;;  %v651_v17 = vpop.permute.xlu1 %650 }
  0x9b   : > { %v781_v43 = vsel %vm775_vm3, %v6310_v5, %v649_v46  ;;  %v783_v52 = vsel %vm775_vm3, %v6313_v6, %v651_v17 }
  0x9e   : > { %v740_v14 = vpop.permute.xlu0 %739  ;;  %v742_v15 = vpop.permute.xlu1 %741 }
  0x9f   : > { %v6580_v49 = vsel %vm816_vm4, %v781_v43, %v740_v14  ;;  %v6588_v31 = vsel %vm816_vm4, %v783_v52, %v742_v15 }
  0xa0   : > { %4779 = vmatmul.mubr.msk.bf16.vlgmr.msra.gmra.mrb[0].mxu0 %vm925_vm5, %v6580_v49 }
  0xa1   : > { %1217 = vmatpush1.bf16.msra.mxu0 %v1211_v28  ;;  %1013 = vmatprep.mubr.bf16.mxu0 %v6188_v8 }
  0xa2   : > { %v653_v5 = vpop.permute.xlu0 %652  ;;  %v744_v35 = vpop.permute.xlu1 %743 }
  0xa3   : > { %v785_v32 = vsel %vm775_vm3, %v6321_v12, %v653_v5  ;;  %v5886_v12 = vld [vmem:[%s8424_s1 + $0x1c] ss:$8 sps:$4 sm:$0x3f]  }
  0xa4   : > { %v6596_v38 = vsel %vm816_vm4, %v785_v32, %v744_v35  ;;  %4827 = vmatprep.subr.msk.bf16.mxu0 %vm966_vm0, %v5886_v12 }
  0xa6   : > { %v655_v36 = vpop.permute.xlu0 %654  ;;  %v746_v39 = vpop.permute.xlu1 %745 }
  0xa7   : > { %v787_v6 = vsel %vm775_vm3, %v6327_v21, %v655_v36 }
  0xa8   : > { %4780 = vmatmul.mubr.msk.bf16.gmra.mrb[4].mxu0 %vm925_vm5, %v6588_v31  ;;  %v6604_v50 = vsel %vm816_vm4, %v787_v6, %v746_v39 }
  0xa9   : > { %1021 = vmatprep.mubr.bf16.mxu0 %v6188_v8 }
  0xaa   : > { %v657_v20 = vpop.permute.xlu0 %656  ;;  %v748_v61 = vpop.permute.xlu1 %747 }
  0xab   : > { %v789_v24 = vsel %vm775_vm3, %v6333_v27, %v657_v20 }
  0xac   : > { %v6616_v21 = vsel %vm816_vm4, %v789_v24, %v748_v61 }
  0xae   : > { %v659_v40 = vpop.permute.xlu0 %658  ;;  %v750_v55 = vpop.permute.xlu1 %749 }
  0xaf   : > { %v791_v53 = vsel %vm775_vm3, %v6346_v37, %v659_v40 }
  0xb0   : > { %4781 = vmatmul.mubr.msk.bf16.gmra.mrb[8].mxu0 %vm925_vm5, %v6596_v38  ;;  %v6624_v4 = vsel %vm816_vm4, %v791_v53, %v750_v55 }
  0xb1   : > { %1031 = vmatprep.mubr.bf16.mxu0 %v6188_v8 }
  0xb2   : > { %v661_v27 = vpop.permute.xlu0 %660  ;;  %v752_v33 = vpop.permute.xlu1 %751 }
  0xb3   : > { %v793_v26 = vsel %vm775_vm3, %v6357_v51, %v661_v27 }
  0xb4   : > { %v6632_v54 = vsel %vm816_vm4, %v793_v26, %v752_v33 }
  0xb6   : > { %v663_v7 = vpop.permute.xlu0 %662  ;;  %v754_v59 = vpop.permute.xlu1 %753 }
  0xb7   : > { %v795_v37 = vsel %vm775_vm3, %v6365_v57, %v663_v7 }
  0xb8   : > { %4782 = vmatmul.mubr.msk.bf16.gmra.mrb[12].mxu0 %vm925_vm5, %v6604_v50  ;;  %v6640_v42 = vsel %vm816_vm4, %v795_v37, %v754_v59  ;;  %v5888_v59 = vld [vmem:[%s8424_s1 + $0x18] ss:$8 sps:$4 sm:$0x3f]  }
  0xb9   : > { %1041 = vmatprep.mubr.bf16.mxu0 %v6188_v8 }
  0xba   : > { %v665_v56 = vpop.permute.xlu0 %664  ;;  %v756_v63 = vpop.permute.xlu1 %755 }
  0xbb   : > { %v797_v51 = vsel %vm775_vm3, %v6372_v0, %v665_v56  ;;  %v1510_v56 = vsel %vm966_vm0, %v5888_v59, 0 }
  0xbc   : > { %v6648_v9 = vsel %vm816_vm4, %v797_v51, %v756_v63 }
  0xbe   : > { %v667_v18 = vpop.permute.xlu0 %666  ;;  %v758_v30 = vpop.permute.xlu1 %757 }
  0xbf   : > { %v799_v57 = vsel %vm775_vm3, %v6381_v11, %v667_v18 }
  0xc0   : > { %4783 = vmatmul.mubr.msk.bf16.gmra.mrb[16].mxu0 %vm925_vm5, %v6616_v21  ;;  %v6656_v10 = vsel %vm816_vm4, %v799_v57, %v758_v30  ;;  %v6776_v57 = vld [vmem:[%s6307_s8 + $0xe4] sm:$0xff]  }
  0xc1   : > { %1051 = vmatprep.mubr.bf16.mxu0 %v6188_v8 }
  0xc2   : > { %v669_v60 = vpop.permute.xlu0 %668  ;;  %v760_v29 = vpop.permute.xlu1 %759 }
  0xc3   : > { %v801_v0 = vsel %vm775_vm3, %v6394_v19, %v669_v60 }
  0xc4   : > { %v6664_v1 = vsel %vm816_vm4, %v801_v0, %v760_v29 }
  0xc6   : > { %v671_v13 = vpop.permute.xlu0 %670  ;;  %v762_v16 = vpop.permute.xlu1 %761 }
  0xc7   : > { %v803_v11 = vsel %vm775_vm3, %v6398_v25, %v671_v13 }
  0xc8   : > { %4784 = vmatmul.mubr.msk.bf16.gmra.mrb[20].mxu0 %vm925_vm5, %v6624_v4  ;;  %v6672_v34 = vsel %vm816_vm4, %v803_v11, %v762_v16  ;;  %v1462_v11 = vshll.u32 %v6776_v57, 16 }
  0xc9   : > { %1061 = vmatprep.mubr.bf16.mxu0 %v6188_v8 }
  0xca   : > { %v673_v46 = vpop.permute.xlu0 %672  ;;  %v764_v47 = vpop.permute.xlu1 %763 }
  0xcb   : > { %v805_v19 = vsel %vm775_vm3, %v6414_v41, %v673_v46  ;;  %v1464_v46 = vrot.slane %v1462_v11, 1 }
  0xcc   : > { %v6680_v43 = vsel %vm816_vm4, %v805_v19, %v764_v47  ;;  %v1479_v47 = vrot.slane %v6776_v57, 1 }
  0xce   : > { %v675_v14 = vpop.permute.xlu0 %674  ;;  %v766_v17 = vpop.permute.xlu1 %765 }
  0xcf   : > { %v807_v25 = vsel %vm775_vm3, %v6419_v45, %v675_v14 }
  0xd0   : > { %4785 = vmatmul.mubr.msk.bf16.gmra.mrb[24].mxu0 %vm925_vm5, %v6632_v54  ;;  %v6688_v28 = vsel %vm816_vm4, %v807_v25, %v766_v17 }
  0xd1   : > { %1071 = vmatprep.mubr.bf16.mxu0 %v6188_v8 }
  0xd2   : > { %v677_v52 = vpop.permute.xlu0 %676  ;;  %v768_v15 = vpop.permute.xlu1 %767 }
  0xd3   : > { %v809_v41 = vsel %vm775_vm3, %v6438_v62, %v677_v52 }
  0xd4   : > { %v6696_v5 = vsel %vm816_vm4, %v809_v41, %v768_v15  ;;  %v5891_v41 = vld [vmem:[%s6307_s8 + $0xec] ss:$0 sps:$4 sm:$0x11]  }
  0xd6   : > { %v679_v32 = vpop.permute.xlu0 %678  ;;  %v770_v35 = vpop.permute.xlu1 %769 }
  0xd7   : > { %v811_v45 = vsel %vm775_vm3, %v6445_v3, %v679_v32 }
  0xd8   : > { %4786 = vmatmul.mubr.msk.bf16.gmra.mrb[28].mxu0 %vm925_vm5, %v6640_v42  ;;  %v6704_v36 = vsel %vm816_vm4, %v811_v45, %v770_v35  ;;  %v1466_v45 = vshrl.u32 %v6776_v57, 16  ;;  %v1470_v35 = vshll.u32 %v5891_v41, 16 }
  0xd9   : > { %1081 = vmatprep.mubr.bf16.mxu0 %v6188_v8 }
  0xda   : > { %v681_v6 = vpop.permute.xlu0 %680  ;;  %v772_v39 = vpop.permute.xlu1 %771 }
  0xdb   : > { %v813_v62 = vsel %vm775_vm3, %v6458_v22, %v681_v6  ;;  %v1468_v6 = vor.u32 %v1466_v45, %v1464_v46 }
  0xdc   : > { %v6712_v20 = vsel %vm816_vm4, %v813_v62, %v772_v39  ;;  %v1472_v62 = vrot.slane %v1470_v35, 1  ;;  %v1481_v39 = vrot.slane %v5891_v41, 1  ;;  %v5914_v41 = vld [vmem:[%s8426_s3 + $0x78] sm:$0xff]  }
  0xde   : > { %v683_v12 = vpop.permute.xlu0 %682  ;;  %v774_v24 = vpop.permute.xlu1 %773 }
  0xdf   : > { %v815_v3 = vsel %vm775_vm3, %v6461_v23, %v683_v12  ;;  %v1473_v12 = vsel %vm443_vm1, %v1468_v6, %v1472_v62 }
  0xe0   : > { %4787 = vmatmul.mubr.msk.bf16.gmra.mrb[32].mxu0 %vm925_vm5, %v6648_v9  ;;  %v6720_v61 = vsel %vm816_vm4, %v815_v3, %v774_v24  ;;  %v1482_v3 = vsel %vm684_vm2, %v1479_v47, %v1481_v39 }
  0xe1   : > { %1091 = vmatprep.mubr.bf16.mxu0 %v6188_v8 }
  0xe2   : > { %v893_v40 = vpop.permute.xlu0 %892  ;;  %v902_v53 = vpop.permute.xlu1 %901 }
  0xe3   : > { %v906_v22 = vsel %vm775_vm3, %v6480_v44, %v893_v40 }
  0xe4   : > { %v6728_v55 = vsel %vm816_vm4, %v906_v22, %v902_v53 }
  0xe6   : > { %v895_v27 = vpop.permute.xlu0 %894  ;;  %v904_v26 = vpop.permute.xlu1 %903 }
  0xe7   : > { %v908_v23 = vsel %vm775_vm3, %v6497_v58, %v895_v27 }
  0xe8   : > { %4788 = vmatmul.mubr.msk.bf16.gmra.mrb[36].mxu0 %vm925_vm5, %v6656_v10  ;;  %v6736_v33 = vsel %vm816_vm4, %v908_v23, %v904_v26 }
  0xe9   : > { %1101 = vmatprep.mubr.bf16.mxu0 %v6188_v8 }
  0xea   : > { %v645_v7 = vpop.permute.xlu0 %644  ;;  %v736_v37 = vpop.permute.xlu1 %735 }
  0xeb   : > { %v777_v44 = vsel %vm775_vm3, %v6527_v48, %v645_v7 }
  0xec   : > { %v818_v58 = vsel %vm816_vm4, %v777_v44, %v736_v37 }
  0xee   : > { %v647_v51 = vpop.permute.xlu0 %646  ;;  %v738_v48 = vpop.permute.xlu1 %737 }
  0xef   : > { %v779_v63 = vsel %vm775_vm3, %v6534_v2, %v647_v51  ;;  %v6771_v2 = vld [vmem:[%s6307_s8 + $0xdc] sm:$0xff]   ;;  %v5896_v51 = vld [vmem:[%s8426_s3 + $0x48] sm:$0xff]   ;;  %s4654_s8 = sadd.s32 %s4930_s27, %s4926_s30 }
  0xf0   : > { %4789 = vmatmul.mubr.msk.bf16.gmra.mrb[40].mxu0 %vm925_vm5, %v6664_v1  ;;  %v820_v18 = vsel %vm816_vm4, %v779_v63, %v738_v48  ;;  %v1457_v30 = vshll.u32 %v6771_v2, 16  ;;  %v1455_v29 = vshrl.u32 %v6771_v2, 16  ;;  %v1478_v19 = vrot.slane %v6771_v2, 1  ;;  %v5897_v63 = vld [vmem:[%s8426_s3 + $0x8] sm:$0xff]   ;;  %v5898_v48 = vld [vmem:[%s8426_s3 + $0x90] sm:$0xff]   ;;  %s4927_s22 = sshll.u32 %s4654_s8, 7 }
  0xf1   : > { %1111 = vmatprep.mubr.bf16.mxu0 %v6188_v8  ;;  %s8364_s13 = scalar_lea.hbm %s8428_s5, %s4927_s22 }
  0xf2   : > { %v1459_v13 = vrot.slane %v1457_v30, 1  ;;  %v1480_v25 = vsel %vm684_vm2, %v1478_v19, %v1479_v47  ;;  %v5907_v19 = vld [vmem:[%s8426_s3 + $0xa8] sm:$0xff]  }
  0xf3   : > { %1483 = vrot.lane.b32.xlu1 %v1480_v25, %s6190_s10  ;;  %v5908_v47 = vld [vmem:[%s8426_s3 + $0x68] sm:$0xff]   ;;  %v5910_v25 = vld [vmem:[%s8426_s3 + $0xb0] sm:$0xff]  }
  0xf4   : > { %v1460_v16 = vor.u32 %v1459_v13, %v1455_v29  ;;  %v6939_v13 = vld [vmem:[%s8425_s2] sm:$0x3] }
  0xf6   : > { %v1465_v14 = vsel %vm443_vm1, %v1460_v16, %v1464_v46  ;;  %v5905_v16 = vld [vmem:[%s8426_s3 + $0x60] sm:$0xff]  }
  0xf7   : > { %1474 = vrot.lane.b32.xlu0 %v1465_v14, %s6189_s9  ;;  %1485 = vrot.lane.b32.xlu1 %v1482_v3, %s6190_s10  ;;  %v5906_v46 = vld [vmem:[%s8426_s3 + $0x20] sm:$0xff]   ;;  %v5909_v14 = vld [vmem:[%s8426_s3 + $0x28] sm:$0xff]  }
  0xf8   : > { %4790 = vmatmul.mubr.msk.bf16.gmra.mrb[44].mxu0 %vm925_vm5, %v6672_v34 }
  0xf9   : > { %1121 = vmatprep.mubr.bf16.mxu0 %v6188_v8 }
  0xfb   : > { %1476 = vrot.lane.b32.xlu0 %v1473_v12, %s6189_s9 }
 0x100   : > { %4791 = vmatmul.mubr.msk.bf16.gmra.mrb[48].mxu0 %vm925_vm5, %v6680_v43 }
 0x101   : > { %1131 = vmatprep.mubr.bf16.mxu0 %v6188_v8 }
 0x108   : > { %4792 = vmatmul.mubr.msk.bf16.gmra.mrb[52].mxu0 %vm925_vm5, %v6688_v28 }
 0x109   : > { %1141 = vmatprep.mubr.bf16.mxu0 %v6188_v8 }
 0x110   : > { %4793 = vmatmul.mubr.msk.bf16.gmra.mrb[56].mxu0 %vm925_vm5, %v6696_v5 }
 0x111   : > { %1151 = vmatprep.mubr.bf16.mxu0 %v6188_v8 }
 0x118   : > { %4794 = vmatmul.mubr.msk.bf16.gmra.mrb[60].mxu0 %vm925_vm5, %v6704_v36 }
 0x119   : > { %1161 = vmatprep.mubr.bf16.mxu0 %v6188_v8 }
 0x120   : > { %4795 = vmatmul.mubr.msk.bf16.gmra.mrb[64].mxu0 %vm925_vm5, %v6712_v20 }
 0x121   : > { %1171 = vmatprep.mubr.bf16.mxu0 %v6188_v8 }
 0x128   : > { %4796 = vmatmul.mubr.msk.bf16.gmra.mrb[68].mxu0 %vm925_vm5, %v6720_v61 }
 0x129   : > { %1181 = vmatprep.mubr.bf16.mxu0 %v6188_v8 }
 0x130   : > { %4797 = vmatmul.mubr.msk.bf16.gmra.mrb[72].mxu0 %vm925_vm5, %v6728_v55 }
 0x131   : > { %1189 = vmatprep.mubr.bf16.mxu0 %v6188_v8 }
 0x138   : > { %4798 = vmatmul.mubr.msk.bf16.gmra.mrb[76].mxu0 %vm925_vm5, %v6736_v33 }
 0x139   : > { %1248 = vmatprep.mubr.bf16.mxu0 %v6188_v8 }
 0x140   : > { %4802 = vmatmul.mubr.msk.bf16.vlgmr.msra.gmra.mrb[80].mxu0 %vm925_vm5, %v818_v58 }
 0x141   : > { %1516 = vmatpush1.bf16.msra.mxu0 %v1510_v56  ;;  %1256 = vmatprep.mubr.bf16.mxu0 %v6188_v8 }
 0x148   : > { %4803 = vmatmul.mubr.msk.bf16.gmra.mrb[84].mxu0 %vm925_vm5, %v820_v18  ;;  %v1814_v18 = vlaneseq }
 0x149   : > { %1264 = vmatprep.mubr.bf16.mxu0 %v6188_v8 }
 0x14a   : > { %v6924_v30 = vshrl.u32 %v1814_v18, 7 }
 0x14c   : > { %v1820_v29 = vsub.s32 1, %v6924_v30 }
 0x14e   : > { %v6945_v11 = vrot.slane %v6939_v13, %v1820_v29 }
 0x150   : > { %4804 = vmatmul.mubr.msk.bf16.gmra.mrb[8].mxu0 %vm925_vm5, %v6580_v49 }
 0x151   : > { %1274 = vmatprep.mubr.bf16.mxu0 %v6188_v8 }
 0x158   : > { %4805 = vmatmul.mubr.msk.bf16.gmra.mrb[12].mxu0 %vm925_vm5, %v6588_v31 }
 0x159   : > { %1284 = vmatprep.mubr.bf16.mxu0 %v6188_v8 }
 0x160   : > { %4806 = vmatmul.mubr.msk.bf16.gmra.mrb[16].mxu0 %vm925_vm5, %v6596_v38 }
 0x161   : > { %1294 = vmatprep.mubr.bf16.mxu0 %v6188_v8 }
 0x165   : > { %v1484_v45 = vpop.permute.xlu1 %1483 }
 0x168   : > { %4807 = vmatmul.mubr.msk.bf16.gmra.mrb[20].mxu0 %vm925_vm5, %v6604_v50 }
 0x169   : > { %1304 = vmatprep.mubr.bf16.mxu0 %v6188_v8  ;;  %v1486_v6 = vpop.permute.xlu1 %1485 }
 0x170   : > { %4808 = vmatmul.mubr.msk.bf16.gmra.mrb[24].mxu0 %vm925_vm5, %v6616_v21 }
 0x171   : > { %1314 = vmatprep.mubr.bf16.mxu0 %v6188_v8 }
 0x173   : > { %v6773_v49 = vpop.f32.mrb[0].mxu0 }
 0x174   : > { %v1009_v31 = vpop.f32.mrb[1].mxu0 }
 0x175   : > { %v6779_v60 = vpop.f32.mrb[2].mxu0  ;;  %v5901_v31 = vld [vmem:[%s8426_s3 + $0x98] sm:$0xff]  }
 0x176   : > { %v1012_v0 = vpop.f32.mrb[3].mxu0 }
 0x177   : > { %v5903_v0 = vld [vmem:[%s8426_s3 + $0x18] sm:$0xff]  }
 0x178   : > { %4809 = vmatmul.mubr.msk.bf16.gmra.mrb[28].mxu0 %vm925_vm5, %v6624_v4 }
 0x179   : > { %1324 = vmatprep.mubr.bf16.mxu0 %v6188_v8 }
 0x17b   : > { %v6790_v17 = vpop.f32.mrb[4].mxu0 }
 0x17c   : > { %v1017_v52 = vpop.f32.mrb[5].mxu0 }
 0x17d   : > { %v6795_v15 = vpop.f32.mrb[6].mxu0  ;;  %v5913_v52 = vld [vmem:[%s8426_s3 + $0xb8] sm:$0xff]  }
 0x17e   : > { %v1020_v32 = vpop.f32.mrb[7].mxu0 }
 0x17f   : > { %v5916_v32 = vld [vmem:[%s8426_s3 + $0x100] sm:$0xff]  }
 0x180   : > { %4810 = vmatmul.mubr.msk.bf16.gmra.mrb[32].mxu0 %vm925_vm5, %v6632_v54 }
 0x181   : > { %1334 = vmatprep.mubr.bf16.mxu0 %v6188_v8 }
 0x188   : > { %4811 = vmatmul.mubr.msk.bf16.gmra.mrb[36].mxu0 %vm925_vm5, %v6640_v42 }
 0x189   : > { %1344 = vmatprep.mubr.bf16.mxu0 %v6188_v8 }
 0x190   : > { %4812 = vmatmul.mubr.msk.bf16.gmra.mrb[40].mxu0 %vm925_vm5, %v6648_v9 }
 0x191   : > { %1354 = vmatprep.mubr.bf16.mxu0 %v6188_v8 }
 0x198   : > { %4813 = vmatmul.mubr.msk.bf16.gmra.mrb[44].mxu0 %vm925_vm5, %v6656_v10 }
 0x199   : > { %1364 = vmatprep.mubr.bf16.mxu0 %v6188_v8 }
 0x1a0   : > { %4814 = vmatmul.mubr.msk.bf16.gmra.mrb[48].mxu0 %vm925_vm5, %v6664_v1 }
 0x1a1   : > { %1374 = vmatprep.mubr.bf16.mxu0 %v6188_v8 }
 0x1a8   : > { %4815 = vmatmul.mubr.msk.bf16.gmra.mrb[52].mxu0 %vm925_vm5, %v6672_v34 }
 0x1a9   : > { %1384 = vmatprep.mubr.bf16.mxu0 %v6188_v8 }
 0x1b0   : > { %4816 = vmatmul.mubr.msk.bf16.gmra.mrb[56].mxu0 %vm925_vm5, %v6680_v43 }
 0x1b1   : > { %1394 = vmatprep.mubr.bf16.mxu0 %v6188_v8 }
 0x1b8   : > { %4817 = vmatmul.mubr.msk.bf16.gmra.mrb[60].mxu0 %vm925_vm5, %v6688_v28 }
 0x1b9   : > { %1404 = vmatprep.mubr.bf16.mxu0 %v6188_v8 }
 0x1c0   : > { %4818 = vmatmul.mubr.msk.bf16.gmra.mrb[64].mxu0 %vm925_vm5, %v6696_v5 }
 0x1c1   : > { %1414 = vmatprep.mubr.bf16.mxu0 %v6188_v8 }
 0x1c8   : > { %4819 = vmatmul.mubr.msk.bf16.gmra.mrb[68].mxu0 %vm925_vm5, %v6704_v36 }
 0x1c9   : > { %1424 = vmatprep.mubr.bf16.mxu0 %v6188_v8 }
 0x1d0   : > { %4820 = vmatmul.mubr.msk.bf16.gmra.mrb[88].mxu0 %vm925_vm5, %v6712_v20 }
 0x1d1   : > { %1432 = vmatprep.mubr.bf16.mxu0 %v6188_v8 }
 0x1d8   : > { %4821 = vmatmul.mubr.msk.bf16.gmra.mrb[92].mxu0 %vm925_vm5, %v6720_v61 }
 0x1d9   : > { %1547 = vmatprep.mubr.bf16.mxu0 %v6188_v8 }
 0x1e0   : > { %4828 = vmatmul.mubr.msk.bf16.vlgmr.msra.gmra.mrb[96].mxu0 %vm925_vm5, %v6596_v38 }
 0x1e1   : > { %1555 = vmatprep.mubr.bf16.mxu0 %v6188_v8 }
 0x1e8   : > { %4829 = vmatmul.mubr.msk.bf16.gmra.mrb[100].mxu0 %vm925_vm5, %v6604_v50 }
 0x1e9   : > { %1563 = vmatprep.mubr.bf16.mxu0 %v6188_v8 }
 0x1f0   : > { %4830 = vmatmul.mubr.msk.bf16.gmra.mrb[8].mxu0 %vm925_vm5, %v6616_v21 }
 0x1f1   : > { %1573 = vmatprep.mubr.bf16.mxu0 %v6188_v8 }
 0x1f8   : > { %4831 = vmatmul.mubr.msk.bf16.gmra.mrb[12].mxu0 %vm925_vm5, %v6624_v4 }
 0x1f9   : > { %1583 = vmatprep.mubr.bf16.mxu0 %v6188_v8 }
 0x200   : > { %4832 = vmatmul.mubr.msk.bf16.gmra.mrb[16].mxu0 %vm925_vm5, %v6632_v54 }
 0x201   : > { %1593 = vmatprep.mubr.bf16.mxu0 %v6188_v8 }
 0x203   : > { %v6853_v38 = vpop.f32.mrb[72].mxu0 }
 0x204   : > { %v1185_v50 = vpop.f32.mrb[73].mxu0 }
 0x205   : > { %v6855_v24 = vpop.f32.mrb[74].mxu0 }
 0x206   : > { %v1188_v40 = vpop.f32.mrb[75].mxu0 }
 0x208   : > { %4833 = vmatmul.mubr.msk.bf16.gmra.mrb[20].mxu0 %vm925_vm5, %v6640_v42 }
 0x209   : > { %1603 = vmatprep.mubr.bf16.mxu0 %v6188_v8 }
 0x20b   : > { %v6860_v21 = vpop.f32.mrb[76].mxu0 }
 0x20c   : > { %v1193_v4 = vpop.f32.mrb[77].mxu0 }
 0x20d   : > { %v6862_v22 = vpop.f32.mrb[78].mxu0 }
 0x20e   : > { %v1196_v53 = vpop.f32.mrb[79].mxu0 }
 0x210   : > { %4834 = vmatmul.mubr.msk.bf16.gmra.mrb[24].mxu0 %vm925_vm5, %v6648_v9 }
 0x211   : > { %1613 = vmatprep.mubr.bf16.mxu0 %v6188_v8 }
 0x213   : > { %v1250_v54 = vpop.f32.mrb[80].mxu0 }
 0x214   : > { %v6868_v27 = vadd.f32 %v1250_v54, %v6773_v49  ;;  %v1252_v23 = vpop.f32.mrb[81].mxu0  ;;  %v5900_v49 = vld [vmem:[%s8426_s3 + $0x10] sm:$0xff]  }
 0x215   : > { %v1253_v26 = vpop.f32.mrb[82].mxu0 }
 0x216   : > { %v6871_v42 = vadd.f32 %v1253_v26, %v6779_v60  ;;  %v1255_v7 = vpop.f32.mrb[83].mxu0  ;;  %v5902_v60 = vld [vmem:[%s8426_s3 + $0x58] sm:$0xff]   ;;  %v1816_v26 = vsub.s32 0, %v6924_v30 }
 0x218   : > { %4835 = vmatmul.mubr.msk.bf16.gmra.mrb[28].mxu0 %vm925_vm5, %v6656_v10  ;;  %v5892_v10 = vld [vmem:[%s8426_s3 + $0x80] sm:$0xff]  }
 0x219   : > { %1623 = vmatprep.mubr.bf16.mxu0 %v6188_v8  ;;  %5339 = vmatprep.subr.bf16.mxu0 %v5892_v10 }
 0x21a   : > { %5340 = vmatpush3.bf16.msra.mxu0 %v5892_v10 }
 0x21b   : > { %v1258_v44 = vpop.f32.mrb[84].mxu0 }
 0x21c   : > { %v6877_v9 = vadd.f32 %v1258_v44, %v6790_v17  ;;  %v1260_v37 = vpop.f32.mrb[85].mxu0  ;;  %v5912_v17 = vld [vmem:[%s8426_s3 + $0x30] sm:$0xff]  }
 0x21d   : > { %v1261_v59 = vpop.f32.mrb[86].mxu0  ;;  %v7025_v37 = vstv %s4849_s26  ;;  %s8225_s26 = scalar_lea.vmem [#allocation2], %s8206_s17  ;;  %s6191_s17 = smov [#allocation2]  }
 0x21e   : > { %v6880_v58 = vadd.f32 %v1261_v59, %v6795_v15  ;;  %v1263_v56 = vpop.f32.mrb[87].mxu0  ;;  %v5915_v15 = vld [vmem:[%s8426_s3 + $0x38] sm:$0xff]   ;;  %vm2180_vm6 = vcmp.ge.s32.totalorder %v7025_v37, 0  ;;  %vm2190_vm7 = vcmp.lt.s32.totalorder %v7025_v37, 32  ;;  %s4657_s21 = sshll.u32 %s8225_s26, 4  ;;  %s6096_s27 = sshll.u32 %s6191_s17, 4  ;;  %s8358_s21 = int_to_ptr.vmem [resolvable:$true] %s4657_s21  ;;  %s6097_s27 = int_to_ptr.vmem [resolvable:$false] %s6096_s27 }
 0x21f   : > { %vm7032_vm8 = vmand %vm2180_vm6, %vm2190_vm7  ;;  %s6092_s15 = scalar_lea.vmem %s8358_s21, 4096  ;;  %s6098_s30 = scalar_lea.vmem %s6097_s27, 8192 }
 0x220   : > { %4836 = vmatmul.mubr.msk.bf16.gmra.mrb[32].mxu0 %vm925_vm5, %v6664_v1  ;;  %v5893_v1 = vld [vmem:[%s8426_s3 + $0x40] sm:$0xff]   ;;  %p6093_p13 = scmp.ne.s32.totalorder %s8358_s21, %s6092_s15  ;;  %p6099_p2 = scmp.lt.s32.totalorder %s8358_s21, %s6097_s27 }
 0x221   : > { %1633 = vmatprep.mubr.bf16.mxu0 %v6188_v8  ;;  %4955 = vmatprep.subr.bf16.mxu1 %v5893_v1  ;;  %p6100_p4 = scmp.lt.s32.totalorder %s6098_s30, %s6092_s15 }
 0x222   : > { %p6094_p0 = pnand %p6093_p13, %p6274_p3 }
 0x223   : > { %p6101_p5 = por %p6100_p4, %p6099_p2 }
 0x224   : > { %p6095_p1 = pneg %p6094_p0 }
 0x226   : > { %p6102_p6 = pnand %p6101_p5, %p6095_p1 }
 0x228   : > { %4837 = vmatmul.mubr.msk.bf16.gmra.mrb[36].mxu0 %vm925_vm5, %v6672_v34  ;;  %v5894_v34 = vld [vmem:[%s8426_s3] sm:$0xff]  }
 0x229   : > { %1643 = vmatprep.mubr.bf16.mxu0 %v6188_v8  ;;  %4956 = vmatpush3.bf16.msra.mxu1 %v5894_v34 }
 0x22a   : > { %4957 = vmatprep.subr.bf16.mxu1 %v5896_v51 }
 0x22d   : > { %4958 = vmatpush3.bf16.msra.mxu1 %v5897_v63 }
 0x230   : > { %4838 = vmatmul.mubr.msk.bf16.gmra.mrb[40].mxu0 %vm925_vm5, %v6680_v43  ;;  %v5895_v43 = vld [vmem:[%s8426_s3 + $0x88] sm:$0xff]  }
 0x231   : > { %1653 = vmatprep.mubr.bf16.mxu0 %v6188_v8  ;;  %5341 = vmatprep.subr.bf16.mxu0 %v5895_v43 }
 0x232   : > { %5342 = vmatpush3.bf16.msra.mxu0 %v5895_v43 }
 0x233   : > { %5343 = vmatprep.subr.bf16.mxu0 %v5898_v48 }
 0x236   : > { %5344 = vmatpush3.bf16.msra.mxu0 %v5898_v48 }
 0x237   : > { %5345 = vmatprep.subr.bf16.mxu0 %v5901_v31 }
 0x238   : > { %4839 = vmatmul.mubr.msk.bf16.gmra.mrb[44].mxu0 %vm925_vm5, %v6688_v28  ;;  %v5899_v28 = vld [vmem:[%s8426_s3 + $0x50] sm:$0xff]  }
 0x239   : > { %1663 = vmatprep.mubr.bf16.mxu0 %v6188_v8  ;;  %4959 = vmatprep.subr.bf16.mxu1 %v5899_v28 }
 0x23a   : > { %4960 = vmatpush3.bf16.msra.mxu1 %v5900_v49  ;;  %5346 = vmatpush3.bf16.msra.mxu0 %v5901_v31 }
 0x23b   : > { %4961 = vmatprep.subr.bf16.mxu1 %v5902_v60 }
 0x23e   : > { %4962 = vmatpush3.bf16.msra.mxu1 %v5903_v0 }
 0x23f   : > { %4963 = vmatprep.subr.bf16.mxu1 %v5905_v16 }
 0x240   : > { %4840 = vmatmul.mubr.msk.bf16.gmra.mrb[48].mxu0 %vm925_vm5, %v6696_v5  ;;  %v5904_v5 = vld [vmem:[%s8426_s3 + $0xa0] sm:$0xff]  }
 0x241   : > { %1673 = vmatprep.mubr.bf16.mxu0 %v6188_v8  ;;  %5347 = vmatprep.subr.bf16.mxu0 %v5904_v5 }
 0x242   : > { %5348 = vmatpush3.bf16.msra.mxu0 %v5904_v5  ;;  %4964 = vmatpush3.bf16.msra.mxu1 %v5906_v46 }
 0x243   : > { %5349 = vmatprep.subr.bf16.mxu0 %v5907_v19  ;;  %4965 = vmatprep.subr.bf16.mxu1 %v5908_v47 }
 0x246   : > { %5350 = vmatpush3.bf16.msra.mxu0 %v5907_v19  ;;  %4966 = vmatpush3.bf16.msra.mxu1 %v5909_v14 }
 0x247   : > { %5351 = vmatprep.subr.bf16.mxu0 %v5910_v25 }
 0x248   : > { %4841 = vmatmul.mubr.msk.bf16.gmra.mrb[52].mxu0 %vm925_vm5, %v6704_v36  ;;  %v5911_v36 = vld [vmem:[%s8426_s3 + $0x70] sm:$0xff]  }
 0x249   : > { %1683 = vmatprep.mubr.bf16.mxu0 %v6188_v8  ;;  %4967 = vmatprep.subr.bf16.mxu1 %v5911_v36 }
 0x24a   : > { %5352 = vmatpush3.bf16.msra.mxu0 %v5910_v25  ;;  %4968 = vmatpush3.bf16.msra.mxu1 %v5912_v17 }
 0x24b   : > { %5353 = vmatprep.subr.bf16.mxu0 %v5913_v52  ;;  %4969 = vmatprep.subr.bf16.mxu1 %v5914_v41 }
 0x24e   : > { %5354 = vmatpush3.bf16.msra.mxu0 %v5913_v52  ;;  %4970 = vmatpush3.bf16.msra.mxu1 %v5915_v15  ;;  %v8466_v15 = vmov 0 }
 0x24f   : > { %5067 = vmatprep.subr.bf16.mxu1 %v5916_v32  ;;  %v8467_v15 = vsel %vm7050_vm13, 4294967295, %v8466_v15 }
 0x250   : > { %4842 = vmatmul.mubr.msk.bf16.gmra.mrb[56].mxu0 %vm925_vm5, %v6712_v20  ;;  %v1475_v20 = vpop.permute.xlu0 %1474  ;;  %8468 = vst [vmem:[#allocation6_spill] sm:$0xff] %v8467_v15 }
 0x251   : > { %1693 = vmatprep.mubr.bf16.mxu0 %v6188_v8 }
 0x258   : > { %4843 = vmatmul.mubr.msk.bf16.gmra.mrb[60].mxu0 %vm925_vm5, %v6720_v61  ;;  %v1488_v61 = vsel %vm775_vm3, %v6771_v2, %v1475_v20 }
 0x259   : > { %1703 = vmatprep.mubr.bf16.mxu0 %v6188_v8  ;;  %v1492_v35 = vsel %vm816_vm4, %v1488_v61, %v1484_v45 }
 0x260   : > { %4844 = vmatmul.mubr.msk.bf16.gmra.mrb[64].mxu0 %vm925_vm5, %v6728_v55  ;;  %v1477_v55 = vpop.permute.xlu0 %1476 }
 0x261   : > { %1713 = vmatprep.mubr.bf16.mxu0 %v6188_v8 }
 0x268   : > { %4845 = vmatmul.mubr.msk.bf16.gmra.mrb[68].mxu0 %vm925_vm5, %v6736_v33  ;;  %v1490_v33 = vsel %vm775_vm3, %v6776_v57, %v1477_v55 }
 0x269   : > { %1723 = vmatprep.mubr.bf16.mxu0 %v6188_v8  ;;  %v1494_v62 = vsel %vm816_vm4, %v1490_v33, %v1486_v6 }
 0x270   : > { %4846 = vmatmul.mubr.msk.bf16.gmra.mrb[104].mxu0 %vm925_vm5, %v1492_v35 }
 0x271   : > { %1731 = vmatprep.mubr.bf16.mxu0 %v6188_v8 }
 0x278   : > { %4847 = vmatmul.mubr.msk.bf16.gmra.mrb[108].mxu0 %vm925_vm5, %v1494_v62 }
 0x2a3   : > { %v1426_v39 = vpop.f32.mrb[88].mxu0 }
 0x2a4   : > { %v7008_v2 = vadd.f32 %v1426_v39, %v6853_v38  ;;  %v1428_v12 = vpop.f32.mrb[89].mxu0  ;;  %v7022_v38 = vrot.slane %v6939_v13, %v1816_v26 }
 0x2a5   : > { %v1429_v3 = vpop.f32.mrb[90].mxu0 }
 0x2a6   : > { %v7011_v50 = vadd.f32 %v1429_v3, %v6855_v24  ;;  %v1431_v40 = vpop.f32.mrb[91].mxu0 }
 0x2ab   : > { %v1434_v8 = vpop.f32.mrb[92].mxu0 }
 0x2ac   : > { %v7014_v4 = vadd.f32 %v1434_v8, %v6860_v21  ;;  %v1436_v57 = vpop.f32.mrb[93].mxu0 }
 0x2ad   : > { %v1437_v53 = vpop.f32.mrb[94].mxu0 }
 0x2ae   : > { %v7017_v54 = vadd.f32 %v1437_v53, %v6862_v22  ;;  %v1439_v23 = vpop.f32.mrb[95].mxu0 }
 0x2b3   : > { %v1549_v24 = vpop.f32.mrb[96].mxu0 }
 0x2b4   : > { %v1740_v7 = vadd.f32 %v1549_v24, %v6868_v27  ;;  %v1551_v44 = vpop.f32.mrb[97].mxu0 }
 0x2b5   : > { %v1552_v21 = vpop.f32.mrb[98].mxu0 }
 0x2b6   : > { %v1824_v59 = vadd.f32 %v7022_v38, %v1740_v7  ;;  %v1741_v22 = vadd.f32 %v1552_v21, %v6871_v42  ;;  %v1554_v56 = vpop.f32.mrb[99].mxu0 }
 0x2b8   : > { %v1896_v10 = vmul.f32 0.2, %v1824_v59  ;;  %v1825_v1 = vadd.f32 %v7022_v38, %v1741_v22 }
 0x2ba   : > { %v1936_v34 = vmax.f32 %v1824_v59, %v1896_v10  ;;  %v1897_v43 = vmul.f32 0.2, %v1825_v1 }
 0x2bb   : > { %v1557_v51 = vpop.f32.mrb[100].mxu0 }
 0x2bc   : > { %v1937_v63 = vmax.f32 %v1825_v1, %v1897_v43  ;;  %v1742_v48 = vadd.f32 %v1557_v51, %v6877_v9  ;;  %v1559_v18 = vpop.f32.mrb[101].mxu0  ;;  %v2230_v28 = vsel %vm7032_vm8, %v1936_v34, 0.0  ;;  %v2171_v9 = vadd.s32 1, %v7025_v37 }
 0x2bd   : > { %v1560_v42 = vpop.f32.mrb[102].mxu0 }
 0x2be   : > { %v2231_v49 = vsel %vm7032_vm8, %v1937_v63, 0.0  ;;  %v1826_v31 = vadd.f32 %v7022_v38, %v1742_v48  ;;  %v1743_v30 = vadd.f32 %v1560_v42, %v6880_v58  ;;  %v1562_v60 = vpop.f32.mrb[103].mxu0  ;;  %vm2181_vm11 = vcmp.ge.s32.totalorder %v2171_v9, 0 }
 0x2bf   : > { %v2270_v0 = vpack.c.bf16 %v2231_v49, %v2230_v28  ;;  %vm2191_vm12 = vcmp.lt.s32.totalorder %v2171_v9, 32  ;;  %v2172_v42 = vadd.s32 2, %v7025_v37 }
 0x2c0   : > { %v1898_v29 = vmul.f32 0.2, %v1826_v31  ;;  %v1827_v13 = vadd.f32 %v7022_v38, %v1743_v30  ;;  %vm7066_vm14 = vmand %vm2181_vm11, %vm2191_vm12 }
 0x2c1   : > { %v2292_v5 = vshrl.u32 %v2270_v0, 16  ;;  %v2295_v47 = vshll.u32 %v2270_v0, 16  ;;  %vm2182_vm15 = vcmp.ge.s32.totalorder %v2172_v42, 0  ;;  %vm2192_vm0 = vcmp.lt.s32.totalorder %v2172_v42, 32 }
 0x2c2   : > { %v1938_v16 = vmax.f32 %v1826_v31, %v1898_v29  ;;  %v1899_v46 = vmul.f32 0.2, %v1827_v13  ;;  %vm7114_vm3 = vmand %vm2182_vm15, %vm2192_vm0 }
 0x2c3   : > { %v2294_v19 = vrot.slane %v2292_v5, 7  ;;  %v1565_v14 = vpop.f32.mrb[8].mxu0 }
 0x2c4   : > { %v1939_v25 = vmax.f32 %v1827_v13, %v1899_v46  ;;  %v1828_v36 = vadd.f32 %v7022_v38, %v1565_v14  ;;  %v1567_v17 = vpop.f32.mrb[9].mxu0  ;;  %v2232_v20 = vsel %vm7032_vm8, %v1938_v16, 0.0 }
 0x2c5   : > { %v2297_v58 = vor.u32 %v2295_v47, %v2294_v19  ;;  %v7047_v52 = vadd.f32 %v6945_v11, %v1567_v17  ;;  %v1569_v41 = vpop.f32.mrb[10].mxu0 }
 0x2c6   : > { %v2233_v32 = vsel %vm7032_vm8, %v1939_v25, 0.0  ;;  %v1900_v61 = vmul.f32 0.2, %v1828_v36  ;;  %v1830_v45 = vadd.f32 %v7022_v38, %v1569_v41  ;;  %v1571_v35 = vpop.f32.mrb[11].mxu0  ;;  %v5917_v41 = vld [vmem:[%s8426_s3 + $0xc0] sm:$0xff]  }
 0x2c7   : > { %8465 = vst [vmem:[#allocation5_spill] sm:$0xff] %v7047_v52  ;;  %v2271_v55 = vpack.c.bf16 %v2233_v32, %v2232_v20  ;;  %v7060_v33 = vadd.f32 %v6945_v11, %v1571_v35  ;;  %v2473_v39 = vsel %vm7050_vm13, 0, %v2297_v58 }
 0x2c8   : > { %v1940_v6 = vmax.f32 %v1828_v36, %v1900_v61  ;;  %v1901_v62 = vmul.f32 0.2, %v1830_v45  ;;  %v2496_v23 = vshll.u32 %v2473_v39, 16  ;;  %v2717_v28 = vrot.slane %v2473_v39, 1 }
 0x2c9   : > { %8469 = vst [vmem:[#allocation7_spill] sm:$0xff] %v7060_v33  ;;  %v2299_v12 = vshrl.u32 %v2271_v55, 16  ;;  %v2302_v57 = vshll.u32 %v2271_v55, 16  ;;  %v2494_v31 = vshrl.u32 %v2473_v39, 16  ;;  %v5918_v55 = vld [vmem:[%s8426_s3 + $0x108] sm:$0xff]  }
 0x2ca   : > { %v1941_v40 = vmax.f32 %v1830_v45, %v1901_v62  ;;  %v2234_v26 = vsel %vm7066_vm14, %v1940_v6, 0.0  ;;  %v2498_v51 = vrot.slane %v2496_v23, 1 }
 0x2cb   : > { %v2301_v8 = vrot.slane %v2299_v12, 7  ;;  %v1575_v53 = vpop.f32.mrb[12].mxu0 }
 0x2cc   : > { %v2235_v24 = vsel %vm7066_vm14, %v1941_v40, 0.0  ;;  %v1832_v7 = vadd.f32 %v7022_v38, %v1575_v53  ;;  %v1577_v44 = vpop.f32.mrb[13].mxu0  ;;  %v2499_v16 = vor.u32 %v2498_v51, %v2494_v31 }
 0x2cd   : > { %v2304_v21 = vor.u32 %v2302_v57, %v2301_v8  ;;  %v2272_v59 = vpack.c.bf16 %v2235_v24, %v2234_v26  ;;  %v7076_v22 = vadd.f32 %v6945_v11, %v1577_v44  ;;  %v1579_v56 = vpop.f32.mrb[14].mxu0  ;;  %v2483_v27 = vsel %vm7050_vm13, %v2301_v8, 0  ;;  %v5919_v26 = vld [vmem:[%s8426_s3 + $0xc8] sm:$0xff]  }
 0x2ce   : > { %v1902_v10 = vmul.f32 0.2, %v1832_v7  ;;  %v1834_v1 = vadd.f32 %v7022_v38, %v1579_v56  ;;  %v1581_v34 = vpop.f32.mrb[15].mxu0  ;;  %v2720_v0 = vrot.slane %v2483_v27, 1 }
 0x2cf   : > { %8472 = vst [vmem:[#allocation8_spill] sm:$0xff] %v7076_v22  ;;  %v7080_v43 = vadd.f32 %v6945_v11, %v1581_v34  ;;  %v7085_v18 = vsel %vm2290_vm9, %v2294_v19, %v2304_v21  ;;  %v2307_v30 = vshrl.u32 %v2272_v59, 16  ;;  %v2310_v12 = vshll.u32 %v2272_v59, 16 }
 0x2d0   : > { %v1942_v63 = vmax.f32 %v1832_v7, %v1902_v10  ;;  %v1903_v48 = vmul.f32 0.2, %v1834_v1  ;;  %v2718_v49 = vrot.slane %v7085_v18, 1  ;;  %v2501_v29 = vshll.u32 %v7085_v18, 16 }
 0x2d1   : > { %8473 = vst [vmem:[#allocation9_spill] sm:$0xff] %v7080_v43  ;;  %v2309_v20 = vrot.slane %v2307_v30, 7  ;;  %v2505_v8 = vshrl.u32 %v7085_v18, 16  ;;  %v2509_v21 = vshll.u32 %v2483_v27, 16 }
 0x2d2   : > { %v1943_v60 = vmax.f32 %v1834_v1, %v1903_v48  ;;  %v2236_v13 = vsel %vm7066_vm14, %v1942_v63, 0.0  ;;  %v2719_v9 = vsel %vm684_vm2, %v2717_v28, %v2718_v49  ;;  %v2721_v14 = vsel %vm684_vm2, %v2718_v49, %v2720_v0  ;;  %v5921_v49 = vld [vmem:[%s8426_s3 + $0xd0] sm:$0xff]  }
 0x2d3   : > { %v1585_v5 = vpop.f32.mrb[16].mxu0  ;;  %5355 = vmatprep.mubr.bf16.mxu0 %v2719_v9  ;;  %v2503_v25 = vrot.slane %v2501_v29, 1  ;;  %v2312_v24 = vor.u32 %v2310_v12, %v2309_v20  ;;  %v2511_v34 = vrot.slane %v2509_v21, 1 }
 0x2d4   : > { %v2237_v46 = vsel %vm7066_vm14, %v1943_v60, 0.0  ;;  %v1836_v19 = vadd.f32 %v7022_v38, %v1585_v5  ;;  %v1587_v47 = vpop.f32.mrb[17].mxu0  ;;  %5356 = vmatmul.mubr.bf16.vlgmr.msra.gmra.mrb[112].mxu0 %v2721_v14  ;;  %v2173_v14 = vadd.s32 3, %v7025_v37 }
 0x2d5   : > { %v2273_v36 = vpack.c.bf16 %v2237_v46, %v2236_v13  ;;  %v7098_v17 = vadd.f32 %v6945_v11, %v1587_v47  ;;  %v1589_v58 = vpop.f32.mrb[18].mxu0  ;;  %v2504_v45 = vsel %vm443_vm1, %v2499_v16, %v2503_v25  ;;  %v2507_v44 = vor.u32 %v2505_v8, %v2503_v25  ;;  %v5922_v13 = vld [vmem:[%s8426_s3 + $0x118] sm:$0xff]   ;;  %v5925_v8 = vld [vmem:[%s8426_s3 + $0xe0] sm:$0xff]  }
 0x2d6   : > { %v1904_v32 = vmul.f32 0.2, %v1836_v19  ;;  %v1838_v61 = vadd.f32 %v7022_v38, %v1589_v58  ;;  %v1591_v35 = vpop.f32.mrb[19].mxu0  ;;  %3126 = vmatprep.mubr.bf16.mxu1 %v2504_v45  ;;  %v7142_v31 = vsel %vm7050_vm13, 0, %v2312_v24  ;;  %v5923_v25 = vld [vmem:[%s8426_s3 + $0xd8] sm:$0xff]   ;;  %vm2183_vm4 = vcmp.ge.s32.totalorder %v2173_v14, 0 }
 0x2d7   : > { %8474 = vst [vmem:[#allocation10_spill] sm:$0xff] %v7098_v17  ;;  %v2314_v6 = vshrl.u32 %v2273_v36, 16  ;;  %v7109_v62 = vadd.f32 %v6945_v11, %v1591_v35  ;;  %3127 = vmatmul.mubr.bf16.vlgmr.msra.gmra.mrb[0].mxu1 %v2473_v39  ;;  %v2317_v53 = vshll.u32 %v2273_v36, 16  ;;  %v5920_v39 = vld [vmem:[%s8426_s3 + $0x110] sm:$0xff]   ;;  %v2512_v30 = vsel %vm443_vm1, %v2507_v44, %v2511_v34  ;;  %v5926_v24 = vld [vmem:[%s8426_s3 + $0x128] sm:$0xff]  }
 0x2d8   : > { %v1944_v3 = vmax.f32 %v1836_v19, %v1904_v32  ;;  %v1905_v40 = vmul.f32 0.2, %v1838_v61  ;;  %5068 = vmatpush3.bf16.msra.mxu1 %v5917_v41  ;;  %3134 = vmatprep.mubr.bf16.mxu1 %v2512_v30  ;;  %v2722_v19 = vrot.slane %v7142_v31, 1  ;;  %v5924_v41 = vld [vmem:[%s8426_s3 + $0x120] sm:$0xff]   ;;  %vm2193_vm5 = vcmp.lt.s32.totalorder %v2173_v14, 32 }
 0x2d9   : > { %8475 = vst [vmem:[#allocation11_spill] sm:$0xff] %v7109_v62  ;;  %v2316_v57 = vrot.slane %v2314_v6, 7  ;;  %5069 = vmatprep.subr.bf16.mxu1 %v5918_v55  ;;  %v2514_v44 = vshrl.u32 %v7142_v31, 16  ;;  %vm7196_vm6 = vmand %vm2183_vm4, %vm2193_vm5 }
 0x2da   : > { %v1945_v7 = vmax.f32 %v1838_v61, %v1905_v40  ;;  %v2238_v10 = vsel %vm7114_vm3, %v1944_v3, 0.0  ;;  %v2516_v3 = vshll.u32 %v7142_v31, 16 }
 0x2db   : > { %v2319_v59 = vor.u32 %v2317_v53, %v2316_v57  ;;  %v1595_v56 = vpop.f32.mrb[20].mxu0  ;;  %v7154_v9 = vsel %vm7050_vm13, %v2316_v57, 0 }
 0x2dc   : > { %v2239_v1 = vsel %vm7114_vm3, %v1945_v7, 0.0  ;;  %v1840_v51 = vadd.f32 %v7022_v38, %v1595_v56  ;;  %v1597_v63 = vpop.f32.mrb[21].mxu0  ;;  %5070 = vmatpush3.bf16.msra.mxu1 %v5919_v26  ;;  %v2725_v58 = vrot.slane %v7154_v9, 1  ;;  %v2518_v21 = vrot.slane %v2516_v3, 1 }
 0x2dd   : > { %v7129_v48 = vpack.c.bf16 %v2239_v1, %v2238_v10  ;;  %v7132_v27 = vadd.f32 %v6945_v11, %v1597_v63  ;;  %v1599_v42 = vpop.f32.mrb[22].mxu0  ;;  %v7135_v28 = vsel %vm2290_vm9, %v2309_v20, %v2319_v59  ;;  %5071 = vmatprep.subr.bf16.mxu1 %v5920_v39  ;;  %v2529_v14 = vshll.u32 %v7154_v9, 16  ;;  %v5929_v9 = vld [vmem:[%s8426_s3 + $0xf0] sm:$0xff]  }
 0x2de   : > { %v1906_v60 = vmul.f32 0.2, %v1840_v51  ;;  %v1842_v0 = vadd.f32 %v7022_v38, %v1599_v42  ;;  %v1601_v29 = vpop.f32.mrb[23].mxu0  ;;  %v2723_v47 = vrot.slane %v7135_v28, 1  ;;  %v2521_v53 = vshll.u32 %v7135_v28, 16 }
 0x2df   : > { %8478 = vst [vmem:[#allocation12_spill] sm:$0xff] %v7132_v27  ;;  %v7150_v5 = vadd.f32 %v6945_v11, %v1601_v29  ;;  %3135 = vmatmul.mubr.bf16.gmra.mrb[4].mxu1 %v7085_v18  ;;  %v2322_v18 = vshrl.u32 %v7129_v48, 16  ;;  %v2519_v63 = vor.u32 %v2518_v21, %v2514_v44  ;;  %v5931_v44 = vld [vmem:[%s8426_s3 + $0xf8] sm:$0xff]  }
 0x2e0   : > { %v1946_v16 = vmax.f32 %v1840_v51, %v1906_v60  ;;  %v1907_v46 = vmul.f32 0.2, %v1842_v0  ;;  %5072 = vmatpush3.bf16.msra.mxu1 %v5921_v49  ;;  %v7169_v20 = vsel %vm684_vm2, %v2722_v19, %v2723_v47  ;;  %v7177_v35 = vsel %vm684_vm2, %v2723_v47, %v2725_v58  ;;  %v5927_v60 = vld [vmem:[%s8426_s3 + $0xe8] sm:$0xff]  }
 0x2e1   : > { %8479 = vst [vmem:[#allocation13_spill] sm:$0xff] %v7150_v5  ;;  %5073 = vmatprep.subr.bf16.mxu1 %v5922_v13  ;;  %5359 = vmatprep.mubr.bf16.mxu0 %v7169_v20  ;;  %v2324_v59 = vrot.slane %v2322_v18, 7  ;;  %v2523_v10 = vrot.slane %v2521_v53, 1  ;;  %v2325_v49 = vshll.u32 %v7129_v48, 16  ;;  %v5928_v48 = vld [vmem:[%s8426_s3 + $0x130] sm:$0xff]   ;;  %v2174_v53 = vadd.s32 4, %v7025_v37 }
 0x2e2   : > { %v1947_v36 = vmax.f32 %v1842_v0, %v1907_v46  ;;  %v2240_v61 = vsel %vm7114_vm3, %v1946_v16, 0.0  ;;  %5360 = vmatmul.mubr.bf16.gmra.mrb[116].mxu0 %v7177_v35  ;;  %v2525_v16 = vshrl.u32 %v7135_v28, 16 }
 0x2e3   : > { %v1605_v32 = vpop.f32.mrb[24].mxu0  ;;  %v7208_v29 = vsel %vm443_vm1, %v2519_v63, %v2523_v10  ;;  %v2327_v19 = vor.u32 %v2325_v49, %v2324_v59  ;;  %vm2184_vm7 = vcmp.ge.s32.totalorder %v2174_v53, 0  ;;  %vm2194_vm8 = vcmp.lt.s32.totalorder %v2174_v53, 32 }
 0x2e4   : > { %v2241_v45 = vsel %vm7114_vm3, %v1947_v36, 0.0  ;;  %v1844_v55 = vadd.f32 %v7022_v38, %v1605_v32  ;;  %v1607_v6 = vpop.f32.mrb[25].mxu0  ;;  %5074 = vmatpush3.bf16.msra.mxu1 %v5923_v25  ;;  %3142 = vmatprep.mubr.bf16.mxu1 %v7208_v29  ;;  %v2527_v18 = vor.u32 %v2525_v16, %v2523_v10  ;;  %vm7287_vm10 = vmand %vm2184_vm7, %vm2194_vm8 }
 0x2e5   : > { %v2275_v12 = vpack.c.bf16 %v2241_v45, %v2240_v61  ;;  %v1609_v40 = vpop.f32.mrb[26].mxu0  ;;  %v7187_v23 = vadd.f32 %v6945_v11, %v1607_v6  ;;  %5075 = vmatprep.subr.bf16.mxu1 %v5924_v41  ;;  %v2531_v6 = vrot.slane %v2529_v14, 1 }
 0x2e6   : > { %v1908_v57 = vmul.f32 0.2, %v1844_v55  ;;  %v1611_v26 = vpop.f32.mrb[27].mxu0  ;;  %v1846_v39 = vadd.f32 %v7022_v38, %v1609_v40 }
 0x2e7   : > { %8480 = vst [vmem:[#allocation14_spill] sm:$0xff] %v7187_v23  ;;  %v2329_v7 = vshrl.u32 %v2275_v12, 16  ;;  %v2332_v34 = vshll.u32 %v2275_v12, 16  ;;  %v7202_v30 = vadd.f32 %v6945_v11, %v1611_v26  ;;  %3143 = vmatmul.mubr.bf16.gmra.mrb[8].mxu1 %v7142_v31  ;;  %v7246_v26 = vsel %vm443_vm1, %v2527_v18, %v2531_v6 }
 0x2e8   : > { %v1948_v56 = vmax.f32 %v1844_v55, %v1908_v57  ;;  %v1909_v42 = vmul.f32 0.2, %v1846_v39  ;;  %5076 = vmatpush3.bf16.msra.mxu1 %v5925_v8  ;;  %v5930_v8 = vld [vmem:[%s8426_s3 + $0x138] sm:$0xff]   ;;  %v7242_v57 = vsel %vm7050_vm13, 0, %v2327_v19  ;;  %3150 = vmatprep.mubr.bf16.mxu1 %v7246_v26 }
 0x2e9   : > { %v2331_v1 = vrot.slane %v2329_v7, 7  ;;  %8483 = vst [vmem:[#allocation15_spill] sm:$0xff] %v7202_v30  ;;  %5077 = vmatprep.subr.bf16.mxu1 %v5926_v24  ;;  %v2727_v21 = vrot.slane %v7242_v57, 1  ;;  %v2534_v51 = vshrl.u32 %v7242_v57, 16 }
 0x2ea   : > { %v1949_v13 = vmax.f32 %v1846_v39, %v1909_v42  ;;  %v2242_v47 = vsel %vm7196_vm6, %v1948_v56, 0.0  ;;  %v7257_v56 = vld [vmem:[%s8426_s3 + $0x140] sm:$0xff]  }
 0x2eb   : > { %v2334_v0 = vor.u32 %v2332_v34, %v2331_v1  ;;  %v1615_v46 = vpop.f32.mrb[28].mxu0  ;;  %v2485_v34 = vsel %vm7050_vm13, %v2331_v1, 0  ;;  %v2536_v1 = vshll.u32 %v7242_v57, 16 }
 0x2ec   : > { %v1848_v25 = vadd.f32 %v7022_v38, %v1615_v46  ;;  %v1617_v36 = vpop.f32.mrb[29].mxu0  ;;  %v2243_v41 = vsel %vm7196_vm6, %v1949_v13, 0.0  ;;  %5078 = vmatpush3.bf16.msra.mxu1 %v5927_v60  ;;  %v2730_v60 = vrot.slane %v2485_v34, 1  ;;  %v2549_v53 = vshll.u32 %v2485_v34, 16 }
 0x2ed   : > { %v7220_v58 = vsel %vm2290_vm9, %v2324_v59, %v2334_v0  ;;  %v7226_v32 = vadd.f32 %v6945_v11, %v1617_v36  ;;  %v1619_v61 = vpop.f32.mrb[30].mxu0  ;;  %v7228_v45 = vpack.c.bf16 %v2243_v41, %v2242_v47  ;;  %5079 = vmatprep.subr.bf16.mxu1 %v5928_v48  ;;  %v2538_v36 = vrot.slane %v2536_v1, 1 }
 0x2ee   : > { %v1621_v55 = vpop.f32.mrb[31].mxu0  ;;  %v1910_v12 = vmul.f32 0.2, %v1848_v25  ;;  %v1850_v3 = vadd.f32 %v7022_v38, %v1619_v61  ;;  %v2728_v39 = vrot.slane %v7220_v58, 1 }
 0x2ef   : > { %8484 = vst [vmem:[#allocation16_spill] sm:$0xff] %v7226_v32  ;;  %v7235_v40 = vadd.f32 %v6945_v11, %v1621_v55  ;;  %v2337_v42 = vshrl.u32 %v7228_v45, 16  ;;  %3151 = vmatmul.mubr.bf16.gmra.mrb[12].mxu1 %v7135_v28 }
 0x2f0   : > { %v1950_v24 = vmax.f32 %v1848_v25, %v1910_v12  ;;  %v1911_v7 = vmul.f32 0.2, %v1850_v3  ;;  %5080 = vmatpush3.bf16.msra.mxu1 %v5929_v9  ;;  %v7264_v49 = vsel %vm684_vm2, %v2727_v21, %v2728_v39  ;;  %v7274_v47 = vsel %vm684_vm2, %v2728_v39, %v2730_v60 }
 0x2f1   : > { %8485 = vst [vmem:[#allocation17_spill] sm:$0xff] %v7235_v40  ;;  %5081 = vmatprep.subr.bf16.mxu1 %v5930_v8  ;;  %8486 = vst [vmem:[#allocation18_spill] sm:$0xff] %v7264_v49  ;;  %5363 = vmatprep.mubr.bf16.mxu0 %v7264_v49  ;;  %v2541_v25 = vshll.u32 %v7220_v58, 16  ;;  %v2339_v61 = vrot.slane %v2337_v42, 7  ;;  %v2539_v12 = vor.u32 %v2538_v36, %v2534_v51  ;;  %v2340_v8 = vshll.u32 %v7228_v45, 16 }
 0x2f2   : > { %v1951_v10 = vmax.f32 %v1850_v3, %v1911_v7  ;;  %v2244_v16 = vsel %vm7196_vm6, %v1950_v24, 0.0  ;;  %8487 = vst [vmem:[#allocation19_spill] sm:$0xff] %v7274_v47  ;;  %5364 = vmatmul.mubr.bf16.gmra.mrb[120].mxu0 %v7274_v47 }
 0x2f3   : > { %v1625_v59 = vpop.f32.mrb[32].mxu0  ;;  %v2543_v9 = vrot.slane %v2541_v25, 1  ;;  %v2342_v45 = vor.u32 %v2340_v8, %v2339_v61  ;;  %v2551_v25 = vrot.slane %v2549_v53, 1 }
 0x2f4   : > { %v1627_v63 = vpop.f32.mrb[33].mxu0  ;;  %v1852_v0 = vadd.f32 %v7022_v38, %v1625_v59  ;;  %v2245_v46 = vsel %vm7196_vm6, %v1951_v10, 0.0  ;;  %5082 = vmatpush3.bf16.msra.mxu1 %v5931_v44 }
 0x2f5   : > { %v1629_v13 = vpop.f32.mrb[34].mxu0  ;;  %v2277_v19 = vpack.c.bf16 %v2245_v46, %v2244_v16  ;;  %5387 = vmatprep.subr.bf16.mxu1 %v7257_v56  ;;  %v7281_v41 = vadd.f32 %v6945_v11, %v1627_v63  ;;  %v7295_v59 = vsel %vm443_vm1, %v2539_v12, %v2543_v9  ;;  %v2545_v63 = vshrl.u32 %v7220_v58, 16 }
 0x2f6   : > { %v1631_v48 = vpop.f32.mrb[35].mxu0  ;;  %v1912_v14 = vmul.f32 0.2, %v1852_v0  ;;  %v1854_v18 = vadd.f32 %v7022_v38, %v1629_v13  ;;  %3158 = vmatprep.mubr.bf16.mxu1 %v7295_v59  ;;  %v7313_v36 = vsel %vm7050_vm13, 0, %v2342_v45 }
 0x2f7   : > { %8488 = vst [vmem:[#allocation20_spill] sm:$0xff] %v7281_v41  ;;  %v2344_v55 = vshrl.u32 %v2277_v19, 16  ;;  %v2347_v7 = vshll.u32 %v2277_v19, 16  ;;  %v7292_v21 = vadd.f32 %v6945_v11, %v1631_v48  ;;  %3159 = vmatmul.mubr.bf16.gmra.mrb[16].mxu1 %v7242_v57  ;;  %v2547_v46 = vor.u32 %v2545_v63, %v2543_v9 }
 0x2f8   : > { %v1952_v6 = vmax.f32 %v1852_v0, %v1912_v14  ;;  %v1913_v3 = vmul.f32 0.2, %v1854_v18 }
 0x2f9   : > { %v2346_v24 = vrot.slane %v2344_v55, 7  ;;  %8491 = vst [vmem:[#allocation21_spill] sm:$0xff] %v7292_v21 }
 0x2fa   : > { %v1953_v10 = vmax.f32 %v1854_v18, %v1913_v3  ;;  %v2246_v13 = vsel %vm7287_vm10, %v1952_v6, 0.0  ;;  %v7316_v18 = vsel %vm443_vm1, %v2547_v46, %v2551_v25  ;;  %v2732_v3 = vrot.slane %v7313_v36, 1 }
 0x2fb   : > { %v1635_v39 = vpop.f32.mrb[36].mxu0  ;;  %v2349_v60 = vor.u32 %v2347_v7, %v2346_v24  ;;  %3166 = vmatprep.mubr.bf16.mxu1 %v7316_v18  ;;  %v2486_v7 = vsel %vm7050_vm13, %v2346_v24, 0 }
 0x2fc   : > { %v1637_v42 = vpop.f32.mrb[37].mxu0  ;;  %v2247_v16 = vsel %vm7287_vm10, %v1953_v10, 0.0  ;;  %v1856_v1 = vadd.f32 %v7022_v38, %v1635_v39  ;;  %v2175_v10 = vadd.s32 5, %v7025_v37 }
 0x2fd   : > { %v1639_v0 = vpop.f32.mrb[38].mxu0  ;;  %v7306_v19 = vsel %vm2290_vm9, %v2339_v61, %v2349_v60  ;;  %v2278_v14 = vpack.c.bf16 %v2247_v16, %v2246_v13  ;;  %v7309_v34 = vadd.f32 %v6945_v11, %v1637_v42  ;;  %v2735_v60 = vrot.slane %v2486_v7, 1 }
 0x2fe   : > { %v1641_v48 = vpop.f32.mrb[39].mxu0  ;;  %v1914_v51 = vmul.f32 0.2, %v1856_v1  ;;  %v1858_v55 = vadd.f32 %v7022_v38, %v1639_v0  ;;  %v2733_v8 = vrot.slane %v7306_v19, 1  ;;  %vm2185_vm11 = vcmp.ge.s32.totalorder %v2175_v10, 0 }
 0x2ff   : > { %8492 = vst [vmem:[#allocation22_spill] sm:$0xff] %v7309_v34  ;;  %v7321_v61 = vadd.f32 %v6945_v11, %v1641_v48  ;;  %3167 = vmatmul.mubr.bf16.gmra.mrb[20].mxu1 %v7220_v58  ;;  %v2352_v0 = vshrl.u32 %v2278_v14, 16  ;;  %v2561_v48 = vshll.u32 %v7306_v19, 16  ;;  %vm2195_vm12 = vcmp.lt.s32.totalorder %v2175_v10, 32 }
 0x300   : > { %v1954_v9 = vmax.f32 %v1856_v1, %v1914_v51  ;;  %v1915_v12 = vmul.f32 0.2, %v1858_v55  ;;  %v7331_v45 = vsel %vm684_vm2, %v2732_v3, %v2733_v8  ;;  %v7339_v46 = vsel %vm684_vm2, %v2733_v8, %v2735_v60  ;;  %vm7349_vm14 = vmand %vm2185_vm11, %vm2195_vm12 }
 0x301   : > { %8493 = vst [vmem:[#allocation23_spill] sm:$0xff] %v7321_v61  ;;  %8494 = vst [vmem:[#allocation24_spill] sm:$0xff] %v7331_v45  ;;  %5367 = vmatprep.mubr.bf16.mxu0 %v7331_v45  ;;  %v2556_v1 = vshll.u32 %v7313_v36, 16  ;;  %v2354_v3 = vrot.slane %v2352_v0, 7  ;;  %v2355_v61 = vshll.u32 %v2278_v14, 16  ;;  %v2569_v14 = vshll.u32 %v2486_v7, 16 }
 0x302   : > { %v1955_v42 = vmax.f32 %v1858_v55, %v1915_v12  ;;  %v2248_v13 = vsel %vm7287_vm10, %v1954_v9, 0.0  ;;  %8495 = vst [vmem:[#allocation25_spill] sm:$0xff] %v7339_v46  ;;  %5368 = vmatmul.mubr.bf16.gmra.mrb[124].mxu0 %v7339_v46  ;;  %v2554_v9 = vshrl.u32 %v7313_v36, 16 }
 0x303   : > { %v1645_v6 = vpop.f32.mrb[40].mxu0  ;;  %v2558_v44 = vrot.slane %v2556_v1, 1  ;;  %v2565_v1 = vshrl.u32 %v7306_v19, 16 }
 0x304   : > { %v1860_v39 = vadd.f32 %v7022_v38, %v1645_v6  ;;  %v1647_v63 = vpop.f32.mrb[41].mxu0  ;;  %v2249_v16 = vsel %vm7287_vm10, %v1955_v42, 0.0  ;;  %v2563_v6 = vrot.slane %v2561_v48, 1  ;;  %v2357_v48 = vor.u32 %v2355_v61, %v2354_v3 }
 0x305   : > { %v1649_v53 = vpop.f32.mrb[42].mxu0  ;;  %v2279_v51 = vpack.c.bf16 %v2249_v16, %v2248_v13  ;;  %v7345_v55 = vadd.f32 %v6945_v11, %v1647_v63  ;;  %v2559_v16 = vor.u32 %v2558_v44, %v2554_v9  ;;  %v2571_v44 = vrot.slane %v2569_v14, 1 }
 0x306   : > { %v1916_v24 = vmul.f32 0.2, %v1860_v39  ;;  %v1651_v25 = vpop.f32.mrb[43].mxu0  ;;  %v1862_v12 = vadd.f32 %v7022_v38, %v1649_v53 }
 0x307   : > { %8496 = vst [vmem:[#allocation26_spill] sm:$0xff] %v7345_v55  ;;  %v2359_v8 = vshrl.u32 %v2279_v51, 16  ;;  %v2362_v55 = vshll.u32 %v2279_v51, 16  ;;  %v7354_v21 = vadd.f32 %v6945_v11, %v1651_v25  ;;  %v7358_v0 = vsel %vm443_vm1, %v2559_v16, %v2563_v6 }
 0x308   : > { %v1956_v42 = vmax.f32 %v1860_v39, %v1916_v24  ;;  %v1917_v10 = vmul.f32 0.2, %v1862_v12  ;;  %3174 = vmatprep.mubr.bf16.mxu1 %v7358_v0  ;;  %v2567_v51 = vor.u32 %v2565_v1, %v2563_v6  ;;  %v7379_v16 = vsel %vm7050_vm13, 0, %v2357_v48 }
 0x309   : > { %v2361_v63 = vrot.slane %v2359_v8, 7  ;;  %8499 = vst [vmem:[#allocation27_spill] sm:$0xff] %v7354_v21  ;;  %3175 = vmatmul.mubr.bf16.gmra.mrb[24].mxu1 %v7313_v36  ;;  %v2737_v14 = vrot.slane %v7379_v16, 1 }
 0x30a   : > { %v1957_v39 = vmax.f32 %v1862_v12, %v1917_v10  ;;  %v2250_v9 = vsel %vm7349_vm14, %v1956_v42, 0.0 }
 0x30b   : > { %v1655_v60 = vpop.f32.mrb[44].mxu0  ;;  %v2364_v41 = vor.u32 %v2362_v55, %v2361_v63  ;;  %v7374_v55 = vsel %vm443_vm1, %v2567_v51, %v2571_v44  ;;  %v2487_v48 = vsel %vm7050_vm13, %v2361_v63, 0  ;;  %v2576_v63 = vshll.u32 %v7379_v16, 16 }
 0x30c   : > { %v1657_v34 = vpop.f32.mrb[45].mxu0  ;;  %v2251_v25 = vsel %vm7349_vm14, %v1957_v39, 0.0  ;;  %v1864_v8 = vadd.f32 %v7022_v38, %v1655_v60  ;;  %3182 = vmatprep.mubr.bf16.mxu1 %v7374_v55  ;;  %v2740_v44 = vrot.slane %v2487_v48, 1 }
 0x30d   : > { %v1659_v53 = vpop.f32.mrb[46].mxu0  ;;  %v7368_v12 = vadd.f32 %v6945_v11, %v1657_v34  ;;  %v7371_v61 = vsel %vm2290_vm9, %v2354_v3, %v2364_v41  ;;  %v2280_v7 = vpack.c.bf16 %v2251_v25, %v2250_v9  ;;  %v2176_v41 = vadd.s32 6, %v7025_v37 }
 0x30e   : > { %v1661_v24 = vpop.f32.mrb[47].mxu0  ;;  %v1918_v42 = vmul.f32 0.2, %v1864_v8  ;;  %v1866_v6 = vadd.f32 %v7022_v38, %v1659_v53  ;;  %v2738_v53 = vrot.slane %v7371_v61, 1 }
 0x30f   : > { %8500 = vst [vmem:[#allocation28_spill] sm:$0xff] %v7368_v12  ;;  %v7383_v60 = vadd.f32 %v6945_v11, %v1661_v24  ;;  %vm2186_vm15 = vcmp.ge.s32.totalorder %v2176_v41, 0  ;;  %v2367_v25 = vshrl.u32 %v2280_v7, 16  ;;  %vm2196_vm0 = vcmp.lt.s32.totalorder %v2176_v41, 32 }
 0x310   : > { %v1958_v10 = vmax.f32 %v1864_v8, %v1918_v42  ;;  %v1919_v1 = vmul.f32 0.2, %v1866_v6  ;;  %v7392_v24 = vsel %vm684_vm2, %v2737_v14, %v2738_v53  ;;  %v2574_v12 = vshrl.u32 %v7379_v16, 16  ;;  %vm7413_vm3 = vmand %vm2186_vm15, %vm2196_vm0 }
 0x311   : > { %8501 = vst [vmem:[#allocation29_spill] sm:$0xff] %v7383_v60  ;;  %3183 = vmatmul.mubr.bf16.gmra.mrb[28].mxu1 %v7306_v19  ;;  %8502 = vst [vmem:[#allocation30_spill] sm:$0xff] %v7392_v24  ;;  %5371 = vmatprep.mubr.bf16.mxu0 %v7392_v24  ;;  %v2369_v40 = vrot.slane %v2367_v25, 7  ;;  %v2370_v5 = vshll.u32 %v2280_v7, 16  ;;  %v2585_v41 = vshrl.u32 %v7371_v61, 16  ;;  %v2589_v7 = vshll.u32 %v2487_v48, 16 }
 0x312   : > { %v1959_v51 = vmax.f32 %v1866_v6, %v1919_v1  ;;  %v2252_v42 = vsel %vm7349_vm14, %v1958_v10, 0.0  ;;  %v7402_v1 = vsel %vm684_vm2, %v2738_v53, %v2740_v44  ;;  %v2581_v10 = vshll.u32 %v7371_v61, 16 }
 0x313   : > { %v1665_v34 = vpop.f32.mrb[48].mxu0  ;;  %8503 = vst [vmem:[#allocation31_spill] sm:$0xff] %v7402_v1  ;;  %5372 = vmatmul.mubr.bf16.gmra.mrb[128].mxu0 %v7402_v1  ;;  %v2372_v27 = vor.u32 %v2370_v5, %v2369_v40 }
 0x314   : > { %v1667_v3 = vpop.f32.mrb[49].mxu0  ;;  %v1868_v8 = vadd.f32 %v7022_v38, %v1665_v34  ;;  %v2253_v60 = vsel %vm7349_vm14, %v1959_v51, 0.0  ;;  %v2578_v34 = vrot.slane %v2576_v63, 1  ;;  %v2583_v63 = vrot.slane %v2581_v10, 1 }
 0x315   : > { %v1669_v39 = vpop.f32.mrb[50].mxu0  ;;  %v2281_v6 = vpack.c.bf16 %v2253_v60, %v2252_v42  ;;  %v7408_v13 = vadd.f32 %v6945_v11, %v1667_v3  ;;  %v2591_v10 = vrot.slane %v2589_v7, 1  ;;  %v7439_v48 = vsel %vm7050_vm13, 0, %v2372_v27 }
 0x316   : > { %v1671_v9 = vpop.f32.mrb[51].mxu0  ;;  %v1920_v14 = vmul.f32 0.2, %v1868_v8  ;;  %v1870_v51 = vadd.f32 %v7022_v38, %v1669_v39  ;;  %v2579_v44 = vor.u32 %v2578_v34, %v2574_v12 }
 0x317   : > { %8504 = vst [vmem:[#allocation32_spill] sm:$0xff] %v7408_v13  ;;  %v2374_v32 = vshrl.u32 %v2281_v6, 16  ;;  %v2377_v13 = vshll.u32 %v2281_v6, 16  ;;  %v7418_v39 = vadd.f32 %v6945_v11, %v1671_v9  ;;  %v2587_v9 = vor.u32 %v2585_v41, %v2583_v63 }
 0x318   : > { %v1960_v60 = vmax.f32 %v1868_v8, %v1920_v14  ;;  %v1921_v30 = vmul.f32 0.2, %v1870_v51  ;;  %v7421_v8 = vsel %vm443_vm1, %v2579_v44, %v2583_v63 }
 0x319   : > { %v2376_v3 = vrot.slane %v2374_v32, 7  ;;  %8507 = vst [vmem:[#allocation33_spill] sm:$0xff] %v7418_v39  ;;  %3190 = vmatprep.mubr.bf16.mxu1 %v7421_v8  ;;  %v7443_v44 = vsel %vm443_vm1, %v2587_v9, %v2591_v10 }
 0x31a   : > { %v1961_v14 = vmax.f32 %v1870_v51, %v1921_v30  ;;  %v2254_v12 = vsel %vm7413_vm3, %v1960_v60, 0.0  ;;  %3191 = vmatmul.mubr.bf16.gmra.mrb[32].mxu1 %v7379_v16  ;;  %v2177_v60 = vadd.s32 7, %v7025_v37 }
 0x31b   : > { %v1675_v21 = vpop.f32.mrb[52].mxu0  ;;  %v2379_v62 = vor.u32 %v2377_v13, %v2376_v3  ;;  %3198 = vmatprep.mubr.bf16.mxu1 %v7443_v44  ;;  %v2488_v7 = vsel %vm7050_vm13, %v2376_v3, 0 }
 0x31c   : > { %v1677_v42 = vpop.f32.mrb[53].mxu0  ;;  %v2255_v32 = vsel %vm7413_vm3, %v1961_v14, 0.0  ;;  %v1872_v6 = vadd.f32 %v7022_v38, %v1675_v21  ;;  %v2742_v14 = vrot.slane %v7439_v48, 1  ;;  %vm2187_vm4 = vcmp.ge.s32.totalorder %v2177_v60, 0 }
 0x31d   : > { %v1679_v23 = vpop.f32.mrb[54].mxu0  ;;  %v7432_v30 = vadd.f32 %v6945_v11, %v1677_v42  ;;  %v7435_v5 = vsel %vm2290_vm9, %v2369_v40, %v2379_v62  ;;  %v2282_v34 = vpack.c.bf16 %v2255_v32, %v2254_v12  ;;  %vm2197_vm5 = vcmp.lt.s32.totalorder %v2177_v60, 32 }
 0x31e   : > { %v1681_v25 = vpop.f32.mrb[55].mxu0  ;;  %v1922_v13 = vmul.f32 0.2, %v1872_v6  ;;  %v1874_v62 = vadd.f32 %v7022_v38, %v1679_v23  ;;  %v2743_v27 = vrot.slane %v7435_v5, 1  ;;  %v2745_v23 = vrot.slane %v2488_v7, 1  ;;  %vm7480_vm6 = vmand %vm2187_vm4, %vm2197_vm5 }
 0x31f   : > { %8508 = vst [vmem:[#allocation34_spill] sm:$0xff] %v7432_v30  ;;  %v7448_v40 = vadd.f32 %v6945_v11, %v1681_v25  ;;  %v2382_v32 = vshrl.u32 %v2282_v34, 16 }
 0x320   : > { %v1962_v42 = vmax.f32 %v1872_v6, %v1922_v13  ;;  %v1923_v12 = vmul.f32 0.2, %v1874_v62  ;;  %v7456_v9 = vsel %vm684_vm2, %v2742_v14, %v2743_v27  ;;  %v2596_v13 = vshll.u32 %v7439_v48, 16 }
 0x321   : > { %8509 = vst [vmem:[#allocation35_spill] sm:$0xff] %v7448_v40  ;;  %8510 = vst [vmem:[#allocation36_spill] sm:$0xff] %v7456_v9  ;;  %5375 = vmatprep.mubr.bf16.mxu0 %v7456_v9  ;;  %v7464_v3 = vsel %vm684_vm2, %v2743_v27, %v2745_v23  ;;  %v2601_v40 = vshll.u32 %v7435_v5, 16  ;;  %v2384_v27 = vrot.slane %v2382_v32, 7 }
 0x322   : > { %3199 = vmatmul.mubr.bf16.gmra.mrb[36].mxu1 %v7371_v61  ;;  %v2256_v6 = vsel %vm7413_vm3, %v1962_v42, 0.0  ;;  %v1963_v10 = vmax.f32 %v1874_v62, %v1923_v12  ;;  %8511 = vst [vmem:[#allocation37_spill] sm:$0xff] %v7464_v3  ;;  %5376 = vmatmul.mubr.bf16.gmra.mrb[132].mxu0 %v7464_v3  ;;  %v2594_v42 = vshrl.u32 %v7439_v48, 16  ;;  %v2598_v62 = vrot.slane %v2596_v13, 1 }
 0x323   : > { %v1685_v51 = vpop.f32.mrb[56].mxu0  ;;  %v2603_v43 = vrot.slane %v2601_v40, 1 }
 0x324   : > { %v1687_v21 = vpop.f32.mrb[57].mxu0  ;;  %v1876_v25 = vadd.f32 %v7022_v38, %v1685_v51  ;;  %v2257_v51 = vsel %vm7413_vm3, %v1963_v10, 0.0  ;;  %v2599_v52 = vor.u32 %v2598_v62, %v2594_v42  ;;  %v2385_v10 = vshll.u32 %v2282_v34, 16 }
 0x325   : > { %v1689_v63 = vpop.f32.mrb[58].mxu0  ;;  %v7468_v14 = vadd.f32 %v6945_v11, %v1687_v21  ;;  %v2283_v23 = vpack.c.bf16 %v2257_v51, %v2256_v6  ;;  %v2605_v6 = vshrl.u32 %v7435_v5, 16 }
 0x326   : > { %v1691_v41 = vpop.f32.mrb[59].mxu0  ;;  %v1924_v39 = vmul.f32 0.2, %v1876_v25  ;;  %v1878_v12 = vadd.f32 %v7022_v38, %v1689_v63  ;;  %v7485_v63 = vsel %vm443_vm1, %v2599_v52, %v2603_v43  ;;  %v2387_v32 = vor.u32 %v2385_v10, %v2384_v27 }
 0x327   : > { %8512 = vst [vmem:[#allocation38_spill] sm:$0xff] %v7468_v14  ;;  %v7476_v14 = vadd.f32 %v6945_v11, %v1691_v41  ;;  %v2389_v9 = vshrl.u32 %v2283_v23, 16  ;;  %3206 = vmatprep.mubr.bf16.mxu1 %v7485_v63  ;;  %v2609_v41 = vshll.u32 %v2488_v7, 16  ;;  %v2607_v62 = vor.u32 %v2605_v6, %v2603_v43 }
 0x328   : > { %v1964_v33 = vmax.f32 %v1876_v25, %v1924_v39  ;;  %v1925_v21 = vmul.f32 0.2, %v1878_v12  ;;  %v2392_v25 = vshll.u32 %v2283_v23, 16 }
 0x329   : > { %8513 = vst [vmem:[#allocation39_spill] sm:$0xff] %v7476_v14  ;;  %v2391_v39 = vrot.slane %v2389_v9, 7 }
 0x32a   : > { %v1965_v40 = vmax.f32 %v1878_v12, %v1925_v21  ;;  %v2258_v34 = vsel %vm7480_vm6, %v1964_v33, 0.0  ;;  %3207 = vmatmul.mubr.bf16.gmra.mrb[40].mxu1 %v7439_v48  ;;  %v2611_v12 = vrot.slane %v2609_v41, 1  ;;  %v7499_v33 = vsel %vm7050_vm13, 0, %v2387_v32 }
 0x32b   : > { %v1695_v30 = vpop.f32.mrb[60].mxu0  ;;  %v2394_v51 = vor.u32 %v2392_v25, %v2391_v39  ;;  %v2489_v6 = vsel %vm7050_vm13, %v2391_v39, 0 }
 0x32c   : > { %v1697_v17 = vpop.f32.mrb[61].mxu0  ;;  %v2259_v60 = vsel %vm7480_vm6, %v1965_v40, 0.0  ;;  %v1880_v52 = vadd.f32 %v7022_v38, %v1695_v30  ;;  %v7505_v40 = vsel %vm443_vm1, %v2607_v62, %v2611_v12  ;;  %v2750_v62 = vrot.slane %v2489_v6, 1 }
 0x32d   : > { %v1699_v22 = vpop.f32.mrb[62].mxu0  ;;  %v7495_v42 = vpack.c.bf16 %v2259_v60, %v2258_v34  ;;  %v7502_v21 = vsel %vm2290_vm9, %v2384_v27, %v2394_v51  ;;  %v7508_v30 = vadd.f32 %v6945_v11, %v1697_v17  ;;  %3214 = vmatprep.mubr.bf16.mxu1 %v7505_v40  ;;  %v2747_v27 = vrot.slane %v7499_v33, 1 }
 0x32e   : > { %v1701_v53 = vpop.f32.mrb[63].mxu0  ;;  %v1926_v23 = vmul.f32 0.2, %v1880_v52  ;;  %v1882_v25 = vadd.f32 %v7022_v38, %v1699_v22  ;;  %v2748_v60 = vrot.slane %v7502_v21, 1  ;;  %v2178_v17 = vadd.s32 8, %v7025_v37 }
 0x32f   : > { %8516 = vst [vmem:[#allocation40_spill] sm:$0xff] %v7508_v30  ;;  %v7513_v41 = vadd.f32 %v6945_v11, %v1701_v53  ;;  %v2397_v12 = vshrl.u32 %v7495_v42, 16  ;;  %v2621_v14 = vshll.u32 %v7502_v21, 16  ;;  %v2625_v45 = vshrl.u32 %v7502_v21, 16 }
 0x330   : > { %v1966_v32 = vmax.f32 %v1880_v52, %v1926_v23  ;;  %v1927_v34 = vmul.f32 0.2, %v1882_v25  ;;  %v7522_v22 = vsel %vm684_vm2, %v2747_v27, %v2748_v60  ;;  %vm2188_vm7 = vcmp.ge.s32.totalorder %v2178_v17, 0 }
 0x331   : > { %8517 = vst [vmem:[#allocation41_spill] sm:$0xff] %v7513_v41  ;;  %8518 = vst [vmem:[#allocation42_spill] sm:$0xff] %v7522_v22  ;;  %5379 = vmatprep.mubr.bf16.mxu0 %v7522_v22  ;;  %vm2198_vm8 = vcmp.lt.s32.totalorder %v2178_v17, 32  ;;  %v2623_v22 = vrot.slane %v2621_v14, 1 }
 0x332   : > { %v1967_v51 = vmax.f32 %v1882_v25, %v1927_v34  ;;  %3215 = vmatmul.mubr.bf16.gmra.mrb[44].mxu1 %v7435_v5  ;;  %v2260_v23 = vsel %vm7480_vm6, %v1966_v32, 0.0  ;;  %v7532_v25 = vsel %vm684_vm2, %v2748_v60, %v2750_v62  ;;  %v2614_v62 = vshrl.u32 %v7499_v33, 16  ;;  %vm7543_vm10 = vmand %vm2188_vm7, %vm2198_vm8 }
 0x333   : > { %v1705_v9 = vpop.f32.mrb[64].mxu0  ;;  %8519 = vst [vmem:[#allocation43_spill] sm:$0xff] %v7532_v25  ;;  %5380 = vmatmul.mubr.bf16.gmra.mrb[136].mxu0 %v7532_v25 }
 0x334   : > { %v1707_v7 = vpop.f32.mrb[65].mxu0  ;;  %v1884_v53 = vadd.f32 %v7022_v38, %v1705_v9  ;;  %v2261_v39 = vsel %vm7480_vm6, %v1967_v51, 0.0  ;;  %v2616_v9 = vshll.u32 %v7499_v33, 16 }
 0x335   : > { %v1709_v10 = vpop.f32.mrb[66].mxu0  ;;  %v2285_v27 = vpack.c.bf16 %v2261_v39, %v2260_v23  ;;  %v7538_v32 = vadd.f32 %v6945_v11, %v1707_v7  ;;  %v2399_v39 = vrot.slane %v2397_v12, 7 }
 0x336   : > { %v1711_v43 = vpop.f32.mrb[67].mxu0  ;;  %v1928_v41 = vmul.f32 0.2, %v1884_v53  ;;  %v1886_v13 = vadd.f32 %v7022_v38, %v1709_v10  ;;  %v2618_v23 = vrot.slane %v2616_v9, 1 }
 0x337   : > { %8520 = vst [vmem:[#allocation44_spill] sm:$0xff] %v7538_v32  ;;  %v2404_v60 = vshrl.u32 %v2285_v27, 16  ;;  %v2407_v1 = vshll.u32 %v2285_v27, 16  ;;  %v2400_v32 = vshll.u32 %v7495_v42, 16  ;;  %v7549_v10 = vadd.f32 %v6945_v11, %v1711_v43 }
 0x338   : > { %v1968_v25 = vmax.f32 %v1884_v53, %v1928_v41  ;;  %v2619_v46 = vor.u32 %v2618_v23, %v2614_v62  ;;  %v1929_v7 = vmul.f32 0.2, %v1886_v13  ;;  %v2629_v53 = vshll.u32 %v2489_v6, 16 }
 0x339   : > { %v2406_v3 = vrot.slane %v2404_v60, 7  ;;  %8523 = vst [vmem:[#allocation45_spill] sm:$0xff] %v7549_v10  ;;  %v2402_v12 = vor.u32 %v2400_v32, %v2399_v39  ;;  %v2627_v60 = vor.u32 %v2625_v45, %v2623_v22 }
 0x33a   : > { %v7553_v41 = vsel %vm443_vm1, %v2619_v46, %v2623_v22  ;;  %v1969_v14 = vmax.f32 %v1886_v13, %v1929_v7  ;;  %v2262_v27 = vsel %vm7543_vm10, %v1968_v25, 0.0 }
 0x33b   : > { %v1715_v52 = vpop.f32.mrb[68].mxu0  ;;  %v2409_v9 = vor.u32 %v2407_v1, %v2406_v3  ;;  %3222 = vmatprep.mubr.bf16.mxu1 %v7553_v41  ;;  %v2631_v1 = vrot.slane %v2629_v53, 1 }
 0x33c   : > { %v1717_v34 = vpop.f32.mrb[69].mxu0  ;;  %v1888_v42 = vadd.f32 %v7022_v38, %v1715_v52  ;;  %v2263_v46 = vsel %vm7543_vm10, %v1969_v14, 0.0  ;;  %3223 = vmatmul.mubr.bf16.gmra.mrb[48].mxu1 %v7499_v33 }
 0x33d   : > { %v1719_v30 = vpop.f32.mrb[70].mxu0  ;;  %v7560_v62 = vsel %vm2290_vm9, %v2399_v39, %v2409_v9  ;;  %v7566_v6 = vadd.f32 %v6945_v11, %v1717_v34  ;;  %v7568_v25 = vpack.c.bf16 %v2263_v46, %v2262_v27  ;;  %v7572_v52 = vsel %vm443_vm1, %v2627_v60, %v2631_v1 }
 0x33e   : > { %v1721_v51 = vpop.f32.mrb[71].mxu0  ;;  %8524 = vst [vmem:[#allocation46_spill] sm:$0xff] %v7560_v62  ;;  %v1930_v13 = vmul.f32 0.2, %v1888_v42  ;;  %v1890_v45 = vadd.f32 %v7022_v38, %v1719_v30  ;;  %v7579_v39 = vsel %vm7050_vm13, 0, %v2402_v12  ;;  %3230 = vmatprep.mubr.bf16.mxu1 %v7572_v52  ;;  %v2753_v30 = vrot.slane %v7560_v62, 1 }
 0x33f   : > { %8525 = vst [vmem:[#allocation47_spill] sm:$0xff] %v7566_v6  ;;  %v7575_v23 = vadd.f32 %v6945_v11, %v1721_v51  ;;  %8527 = vst [vmem:[#allocation49_spill] sm:$0xff] %v7579_v39  ;;  %v2752_v14 = vrot.slane %v7579_v39, 1  ;;  %v2490_v11 = vsel %vm7050_vm13, %v2406_v3, 0  ;;  %v2179_v46 = vadd.s32 9, %v7025_v37 }
 0x340   : > { %v1970_v34 = vmax.f32 %v1888_v42, %v1930_v13  ;;  %v1931_v7 = vmul.f32 0.2, %v1890_v45  ;;  %v2412_v24 = vshrl.u32 %v7568_v25, 16  ;;  %v2636_v37 = vshll.u32 %v7579_v39, 16 }
 0x341   : > { %8526 = vst [vmem:[#allocation48_spill] sm:$0xff] %v7575_v23  ;;  %v7593_v42 = vsel %vm684_vm2, %v2752_v14, %v2753_v30  ;;  %vm2189_vm11 = vcmp.ge.s32.totalorder %v2179_v46, 0  ;;  %vm2199_vm12 = vcmp.lt.s32.totalorder %v2179_v46, 32 }
 0x342   : > { %v1971_v9 = vmax.f32 %v1890_v45, %v1931_v7  ;;  %v2264_v27 = vsel %vm7543_vm10, %v1970_v34, 0.0  ;;  %8528 = vst [vmem:[#allocation50_spill] sm:$0xff] %v7593_v42  ;;  %5383 = vmatprep.mubr.bf16.mxu0 %v7593_v42  ;;  %v2641_v34 = vshll.u32 %v7560_v62, 16  ;;  %vm7617_vm14 = vmand %vm2189_vm11, %vm2199_vm12 }
 0x343   : > { %v1725_v17 = vpop.f32.mrb[104].mxu0 }
 0x344   : > { %v1727_v43 = vpop.f32.mrb[105].mxu0  ;;  %v1808_v51 = vadd.f32 %v1725_v17, %v7008_v2  ;;  %v2265_v60 = vsel %vm7543_vm10, %v1971_v9, 0.0  ;;  %3231 = vmatmul.mubr.bf16.gmra.mrb[52].mxu1 %v7502_v21 }
 0x345   : > { %v1728_v32 = vpop.f32.mrb[106].mxu0  ;;  %v2755_v43 = vrot.slane %v2490_v11, 1  ;;  %v2287_v13 = vpack.c.bf16 %v2265_v60, %v2264_v27  ;;  %v2645_v27 = vshrl.u32 %v7560_v62, 16 }
 0x346   : > { %v1730_v22 = vpop.f32.mrb[107].mxu0  ;;  %v1892_v3 = vadd.f32 %v7022_v38, %v1808_v51  ;;  %v1809_v7 = vadd.f32 %v1728_v32, %v7011_v50  ;;  %v2638_v51 = vrot.slane %v2636_v37, 1 }
 0x347   : > { %v7599_v2 = vsel %vm684_vm2, %v2753_v30, %v2755_v43  ;;  %v2419_v17 = vshrl.u32 %v2287_v13, 16  ;;  %v2422_v14 = vshll.u32 %v2287_v13, 16  ;;  %v2634_v30 = vshrl.u32 %v7579_v39, 16  ;;  %v5935_v13 = vld [vmem:[%s8426_s3 + $0x158] sm:$0xff]  }
 0x348   : > { %8529 = vst [vmem:[#allocation51_spill] sm:$0xff] %v7599_v2  ;;  %5384 = vmatmul.mubr.bf16.gmra.mrb[140].mxu0 %v7599_v2  ;;  %v1932_v22 = vmul.f32 0.2, %v1892_v3  ;;  %v1893_v60 = vadd.f32 %v7022_v38, %v1809_v7  ;;  %v2649_v43 = vshll.u32 %v2490_v11, 16 }
 0x349   : > { %v7606_v9 = vrot.slane %v2419_v17, 7  ;;  %v2639_v50 = vor.u32 %v2638_v51, %v2634_v30 }
 0x34a   : > { %v1972_v6 = vmax.f32 %v1892_v3, %v1932_v22  ;;  %v1933_v32 = vmul.f32 0.2, %v1893_v60  ;;  %v2651_v3 = vrot.slane %v2649_v43, 1 }
 0x34b   : > { %v1733_v53 = vpop.f32.mrb[108].mxu0  ;;  %v2424_v10 = vor.u32 %v2422_v14, %v7606_v9 }
 0x34c   : > { %v1735_v12 = vpop.f32.mrb[109].mxu0  ;;  %v1810_v23 = vadd.f32 %v1733_v53, %v7014_v4  ;;  %v1973_v53 = vmax.f32 %v1893_v60, %v1933_v32  ;;  %v5933_v32 = vld [vmem:[%s8426_s3 + $0x148] sm:$0xff]  }
 0x34d   : > { %v1736_v1 = vpop.f32.mrb[110].mxu0  ;;  %v2643_v12 = vrot.slane %v2641_v34, 1  ;;  %v2266_v34 = vsel %vm7617_vm14, %v1972_v6, 0.0 }
 0x34e   : > { %v1738_v45 = vpop.f32.mrb[111].mxu0  ;;  %v1894_v37 = vadd.f32 %v7022_v38, %v1810_v23  ;;  %v1811_v11 = vadd.f32 %v1736_v1, %v7017_v54  ;;  %v2267_v54 = vsel %vm7617_vm14, %v1973_v53, 0.0 }
 0x34f   : > { %v7611_v45 = vrot.slane %v2412_v24, 7  ;;  %v2647_v17 = vor.u32 %v2645_v27, %v2643_v12  ;;  %v7628_v4 = vsel %vm443_vm1, %v2639_v50, %v2643_v12  ;;  %v7640_v23 = vpack.c.bf16 %v2267_v54, %v2266_v34 }
 0x350   : > { %3238 = vmatprep.mubr.bf16.mxu1 %v7628_v4  ;;  %v1934_v46 = vmul.f32 0.2, %v1894_v37  ;;  %v1895_v22 = vadd.f32 %v7022_v38, %v1811_v11 }
 0x351   : > { %v7625_v24 = vsel %vm2290_vm9, %v7611_v45, %v2424_v10  ;;  %3239 = vmatmul.mubr.bf16.gmra.mrb[56].mxu1 %v7579_v39  ;;  %v7638_v10 = vsel %vm443_vm1, %v2647_v17, %v2651_v3  ;;  %8533 = vst [vmem:[#allocation53_spill] sm:$0xff] %v7640_v23  ;;  %v2427_v27 = vshrl.u32 %v7640_v23, 16 }
 0x352   : > { %8532 = vst [vmem:[#allocation52_spill] sm:$0xff] %v7638_v10  ;;  %3246 = vmatprep.mubr.bf16.mxu1 %v7638_v10  ;;  %v1974_v1 = vmax.f32 %v1894_v37, %v1934_v46  ;;  %v1935_v7 = vmul.f32 0.2, %v1895_v22  ;;  %v5940_v37 = vld [vmem:[%s8426_s3 + $0x1c0] sm:$0xff]  }
 0x353   : > { %v7652_v43 = vrot.slane %v2427_v27, 7 }
 0x354   : > { %v1975_v14 = vmax.f32 %v1895_v22, %v1935_v7  ;;  %v2268_v38 = vsel %vm7617_vm14, %v1974_v1, 0.0 }
 0x355   : > { %8535 = vst [vmem:[#allocation55_spill] sm:$0xff] %v7652_v43 }
 0x356   : > { %v2269_v6 = vsel %vm7617_vm14, %v1975_v14, 0.0 }
 0x357   : > { %v2289_v30 = vpack.c.bf16 %v2269_v6, %v2268_v38 }
 0x359   : > { %v2434_v51 = vshrl.u32 %v2289_v30, 16  ;;  %3247 = vmatmul.mubr.bf16.gmra.mrb[60].mxu1 %v7560_v62  ;;  %v2437_v60 = vshll.u32 %v2289_v30, 16 }
 0x35a   : > { %3437 = vmatprep.mubr.bf16.mxu1 %v7208_v29  ;;  %v5934_v29 = vld [vmem:[%s8426_s3 + $0x150] sm:$0xff]  }
 0x35b   : > { %v7650_v12 = vrot.slane %v2434_v51, 7 }
 0x35d   : > { %8534 = vst [vmem:[#allocation54_spill] sm:$0xff] %v7650_v12  ;;  %v2439_v50 = vor.u32 %v2437_v60, %v7650_v12 }
 0x35f   : > { %v7660_v17 = vsel %vm2290_vm9, %v7652_v43, %v2439_v50 }
 0x360   : > { %8536 = vst [vmem:[#allocation56_spill] sm:$0xff] %v7660_v17 }
 0x361   : > { %3438 = vmatmul.mubr.bf16.vlgmr.msra.gmra.mrb[64].mxu1 %v7142_v31  ;;  %v5936_v31 = vld [vmem:[%s8426_s3 + $0x160] sm:$0xff]  }
 0x362   : > { %5388 = vmatpush3.bf16.msra.mxu1 %v7257_v56  ;;  %3445 = vmatprep.mubr.bf16.mxu1 %v7246_v26  ;;  %v5937_v26 = vld [vmem:[%s8426_s3 + $0x168] sm:$0xff]   ;;  %v5939_v56 = vld [vmem:[%s8426_s3 + $0x178] sm:$0xff]  }
 0x363   : > { %5389 = vmatprep.subr.bf16.mxu1 %v5933_v32 }
 0x366   : > { %5390 = vmatpush3.bf16.msra.mxu1 %v5933_v32 }
 0x367   : > { %5391 = vmatprep.subr.bf16.mxu1 %v5934_v29 }
 0x369   : > { %3446 = vmatmul.mubr.bf16.gmra.mrb[68].mxu1 %v7135_v28  ;;  %v5938_v28 = vld [vmem:[%s8426_s3 + $0x170] sm:$0xff]  }
 0x36a   : > { %3453 = vmatprep.mubr.bf16.mxu1 %v7295_v59  ;;  %5392 = vmatpush3.bf16.msra.mxu1 %v5934_v29 }
 0x36b   : > { %5393 = vmatprep.subr.bf16.mxu1 %v5935_v13 }
 0x36e   : > { %5394 = vmatpush3.bf16.msra.mxu1 %v5935_v13 }
 0x36f   : > { %5395 = vmatprep.subr.bf16.mxu1 %v5936_v31 }
 0x371   : > { %3454 = vmatmul.mubr.bf16.gmra.mrb[72].mxu1 %v7242_v57 }
 0x372   : > { %3461 = vmatprep.mubr.bf16.mxu1 %v7316_v18  ;;  %5396 = vmatpush3.bf16.msra.mxu1 %v5936_v31 }
 0x373   : > { %5397 = vmatprep.subr.bf16.mxu1 %v5937_v26 }
 0x376   : > { %5398 = vmatpush3.bf16.msra.mxu1 %v5937_v26 }
 0x377   : > { %5399 = vmatprep.subr.bf16.mxu1 %v5938_v28 }
 0x379   : > { %3462 = vmatmul.mubr.bf16.gmra.mrb[76].mxu1 %v7220_v58 }
 0x37a   : > { %3469 = vmatprep.mubr.bf16.mxu1 %v7358_v0  ;;  %5400 = vmatpush3.bf16.msra.mxu1 %v5938_v28 }
 0x37b   : > { %5401 = vmatprep.subr.bf16.mxu1 %v5939_v56 }
 0x37e   : > { %5402 = vmatpush3.bf16.msra.mxu1 %v5939_v56 }
 0x37f   : > { %5203 = vmatprep.subr.bf16.mxu1 %v5940_v37  ;;  %v2415_v37 = vshll.u32 %v7568_v25, 16 }
 0x381   : > { %3470 = vmatmul.mubr.bf16.gmra.mrb[80].mxu1 %v7313_v36 }
 0x382   : > { %3477 = vmatprep.mubr.bf16.mxu1 %v7374_v55 }
 0x389   : > { %3478 = vmatmul.mubr.bf16.gmra.mrb[84].mxu1 %v7306_v19 }
 0x38a   : > { %3485 = vmatprep.mubr.bf16.mxu1 %v7421_v8 }
 0x391   : > { %3486 = vmatmul.mubr.bf16.gmra.mrb[88].mxu1 %v7379_v16 }
 0x392   : > { %3493 = vmatprep.mubr.bf16.mxu1 %v7443_v44 }
 0x399   : > { %3494 = vmatmul.mubr.bf16.gmra.mrb[92].mxu1 %v7371_v61 }
 0x39a   : > { %3501 = vmatprep.mubr.bf16.mxu1 %v7485_v63 }
 0x3a1   : > { %3502 = vmatmul.mubr.bf16.gmra.mrb[96].mxu1 %v7439_v48 }
 0x3a2   : > { %3509 = vmatprep.mubr.bf16.mxu1 %v7505_v40 }
 0x3a7   : > { %v5357_v11 = vpop.f32.mrb[112].mxu0 }
 0x3a8   : > { %v2871_v53 = vpop.f32.mrb[113].mxu0 }
 0x3a9   : > { %v5358_v3 = vpop.f32.mrb[114].mxu0  ;;  %3510 = vmatmul.mubr.bf16.gmra.mrb[100].mxu1 %v7435_v5 }
 0x3aa   : > { %v4971_v46 = vpop.f32.mrb[0].mxu1  ;;  %v2874_v22 = vpop.f32.mrb[115].mxu0  ;;  %3517 = vmatprep.mubr.bf16.mxu1 %v7553_v41 }
 0x3ab   : > { %v4972_v34 = vpop.f32.mrb[1].mxu1 }
 0x3ac   : > { %v4973_v54 = vadd.f32 %v4972_v34, %v4971_v46  ;;  %v4974_v1 = vpop.f32.mrb[2].mxu1 }
 0x3ad   : > { %v4975_v7 = vpop.f32.mrb[3].mxu1 }
 0x3ae   : > { %v7702_v14 = vadd.f32 %v4973_v54, %v2871_v53  ;;  %v4976_v38 = vadd.f32 %v4975_v7, %v4974_v1  ;;  %v2417_v53 = vor.u32 %v2415_v37, %v7611_v45 }
 0x3b0   : > { %v7705_v6 = vadd.f32 %v4976_v38, %v2874_v22 }
 0x3b1   : > { %3518 = vmatmul.mubr.bf16.gmra.mrb[104].mxu1 %v7499_v33 }
 0x3b2   : > { %v4977_v30 = vpop.f32.mrb[4].mxu1  ;;  %3525 = vmatprep.mubr.bf16.mxu1 %v7572_v52 }
 0x3b3   : > { %v4978_v27 = vpop.f32.mrb[5].mxu1 }
 0x3b4   : > { %v4979_v51 = vadd.f32 %v4978_v27, %v4977_v30  ;;  %v4980_v60 = vpop.f32.mrb[6].mxu1  ;;  %v3263_v30 = vshll.u32 %v7625_v24, 16 }
 0x3b5   : > { %v4981_v50 = vpop.f32.mrb[7].mxu1  ;;  %v5361_v13 = vpop.f32.mrb[116].mxu0 }
 0x3b6   : > { %v7708_v32 = vadd.f32 %v5357_v11, %v4979_v51  ;;  %v4982_v29 = vadd.f32 %v4981_v50, %v4980_v60  ;;  %v2887_v26 = vpop.f32.mrb[117].mxu0 }
 0x3b7   : > { %v5362_v28 = vpop.f32.mrb[118].mxu0 }
 0x3b8   : > { %v7711_v31 = vadd.f32 %v5358_v3, %v4982_v29  ;;  %v2890_v56 = vpop.f32.mrb[119].mxu0  ;;  %v7720_v3 = vsel %vm7050_vm13, 0, %v2417_v53 }
 0x3b9   : > { %3526 = vmatmul.mubr.bf16.gmra.mrb[108].mxu1 %v7502_v21  ;;  %v3258_v25 = vshll.u32 %v7720_v3, 16 }
 0x3ba   : > { %v4983_v46 = vpop.f32.mrb[8].mxu1  ;;  %3533 = vmatprep.mubr.bf16.mxu1 %v7628_v4 }
 0x3bb   : > { %v4984_v11 = vpop.f32.mrb[9].mxu1  ;;  %v3260_v50 = vrot.slane %v3258_v25, 1 }
 0x3bc   : > { %v4985_v22 = vadd.f32 %v4984_v11, %v4983_v46  ;;  %v4986_v34 = vpop.f32.mrb[10].mxu1  ;;  %v3256_v46 = vshrl.u32 %v7720_v3, 16  ;;  %v3265_v11 = vrot.slane %v3263_v30, 1  ;;  %v3267_v30 = vshrl.u32 %v7625_v24, 16 }
 0x3bd   : > { %v4987_v54 = vpop.f32.mrb[11].mxu1 }
 0x3be   : > { %v7722_v1 = vadd.f32 %v4985_v22, %v2887_v26  ;;  %v4988_v7 = vadd.f32 %v4987_v54, %v4986_v34 }
 0x3c0   : > { %v7724_v38 = vadd.f32 %v4988_v7, %v2890_v56  ;;  %v3261_v7 = vor.u32 %v3260_v50, %v3256_v46 }
 0x3c1   : > { %3534 = vmatmul.mubr.bf16.gmra.mrb[112].mxu1 %v7579_v39 }
 0x3c2   : > { %v4989_v45 = vpop.f32.mrb[12].mxu1  ;;  %3541 = vmatprep.mubr.bf16.mxu1 %v7638_v10 }
 0x3c3   : > { %v4990_v27 = vpop.f32.mrb[13].mxu1 }
 0x3c4   : > { %v4991_v51 = vadd.f32 %v4990_v27, %v4989_v45  ;;  %v4992_v60 = vpop.f32.mrb[14].mxu1  ;;  %v7738_v45 = vsel %vm7050_vm13, %v7606_v9, 0 }
 0x3c5   : > { %v4993_v29 = vpop.f32.mrb[15].mxu1  ;;  %v5365_v37 = vpop.f32.mrb[120].mxu0 }
 0x3c6   : > { %v7730_v26 = vadd.f32 %v5361_v13, %v4991_v51  ;;  %v4994_v53 = vadd.f32 %v4993_v29, %v4992_v60  ;;  %v2903_v56 = vpop.f32.mrb[121].mxu0  ;;  %v7742_v13 = vsel %vm443_vm1, %v3261_v7, %v3265_v11  ;;  %v3269_v29 = vor.u32 %v3267_v30, %v3265_v11 }
 0x3c7   : > { %v5366_v22 = vpop.f32.mrb[122].mxu0  ;;  %8537 = vst [vmem:[#allocation57_spill] sm:$0xff] %v7742_v13 }
 0x3c8   : > { %v7733_v34 = vadd.f32 %v5362_v28, %v4994_v53  ;;  %v2906_v54 = vpop.f32.mrb[123].mxu0  ;;  %v3271_v28 = vshll.u32 %v7738_v45, 16 }
 0x3c9   : > { %3542 = vmatmul.mubr.bf16.gmra.mrb[116].mxu1 %v7560_v62 }
 0x3ca   : > { %v4995_v25 = vpop.f32.mrb[16].mxu1  ;;  %3549 = vmatprep.mubr.bf16.mxu1 %v7742_v13  ;;  %v3273_v46 = vrot.slane %v3271_v28, 1 }
 0x3cb   : > { %v4996_v27 = vpop.f32.mrb[17].mxu1 }
 0x3cc   : > { %v4997_v51 = vadd.f32 %v4996_v27, %v4995_v25  ;;  %v4998_v60 = vpop.f32.mrb[18].mxu1  ;;  %v7753_v7 = vsel %vm443_vm1, %v3269_v29, %v3273_v46 }
 0x3cd   : > { %v4999_v50 = vpop.f32.mrb[19].mxu1  ;;  %8538 = vst [vmem:[#allocation58_spill] sm:$0xff] %v7753_v7 }
 0x3ce   : > { %v7747_v53 = vadd.f32 %v4997_v51, %v2903_v56  ;;  %v5000_v9 = vadd.f32 %v4999_v50, %v4998_v60 }
 0x3d0   : > { %v7749_v12 = vadd.f32 %v5000_v9, %v2906_v54 }
 0x3d1   : > { %3550 = vmatmul.mubr.bf16.gmra.mrb[120].mxu1 %v7720_v3 }
 0x3d2   : > { %v5001_v17 = vpop.f32.mrb[20].mxu1  ;;  %3557 = vmatprep.mubr.bf16.mxu1 %v7753_v7  ;;  %v8546_v7 = vld [vmem:[#allocation31_spill] sm:$0xff] }
 0x3d3   : > { %v5002_v15 = vpop.f32.mrb[21].mxu1 }
 0x3d4   : > { %v5003_v13 = vadd.f32 %v5002_v15, %v5001_v17  ;;  %v5004_v25 = vpop.f32.mrb[22].mxu1  ;;  %v5941_v15 = vld [vmem:[%s8426_s3 + $0x180] sm:$0xff]  }
 0x3d5   : > { %v5005_v27 = vpop.f32.mrb[23].mxu1  ;;  %v5369_v62 = vpop.f32.mrb[124].mxu0 }
 0x3d6   : > { %v7756_v11 = vadd.f32 %v5365_v37, %v5003_v13  ;;  %v5006_v56 = vadd.f32 %v5005_v27, %v5004_v25  ;;  %v2919_v30 = vpop.f32.mrb[125].mxu0  ;;  %v5944_v27 = vld [vmem:[%s8426_s3 + $0x1d0] sm:$0xff]  }
 0x3d7   : > { %v5370_v28 = vpop.f32.mrb[126].mxu0 }
 0x3d8   : > { %v7758_v54 = vadd.f32 %v5366_v22, %v5006_v56  ;;  %v2922_v51 = vpop.f32.mrb[127].mxu0  ;;  %v5942_v22 = vld [vmem:[%s8426_s3 + $0x1c8] sm:$0xff]  }
 0x3d9   : > { %3558 = vmatmul.mubr.bf16.gmra.mrb[124].mxu1 %v7625_v24 }
 0x3da   : > { %5403 = vmatprep.mubr.bf16.mxu1 %v7169_v20  ;;  %v5943_v20 = vld [vmem:[%s8426_s3 + $0x188] sm:$0xff]  }
 0x3dc   : > { %v5007_v60 = vpop.f32.mrb[24].mxu1 }
 0x3dd   : > { %v5008_v50 = vpop.f32.mrb[25].mxu1 }
 0x3de   : > { %v5009_v29 = vadd.f32 %v5008_v50, %v5007_v60  ;;  %v5010_v9 = vpop.f32.mrb[26].mxu1  ;;  %v5945_v50 = vld [vmem:[%s8426_s3 + $0x190] sm:$0xff]  }
 0x3df   : > { %v5011_v17 = vpop.f32.mrb[27].mxu1 }
 0x3e0   : > { %v7765_v37 = vadd.f32 %v5009_v29, %v2919_v30  ;;  %v5012_v13 = vadd.f32 %v5011_v17, %v5010_v9  ;;  %v5946_v17 = vld [vmem:[%s8426_s3 + $0x1d8] sm:$0xff]  }
 0x3e1   : > { %5404 = vmatmul.mubr.bf16.vlgmr.msra.gmra.mrb[128].mxu1 %v7177_v35 }
 0x3e2   : > { %v7771_v46 = vadd.f32 %v5012_v13, %v2922_v51  ;;  %5204 = vmatpush3.bf16.msra.mxu1 %v5941_v15  ;;  %5407 = vmatprep.mubr.bf16.mxu1 %v7264_v49  ;;  %v8543_v49 = vld [vmem:[#allocation30_spill] sm:$0xff] }
 0x3e3   : > { %5205 = vmatprep.subr.bf16.mxu1 %v5942_v22 }
 0x3e4   : > { %v5013_v25 = vpop.f32.mrb[28].mxu1 }
 0x3e5   : > { %v5014_v56 = vpop.f32.mrb[29].mxu1 }
 0x3e6   : > { %v5015_v30 = vadd.f32 %v5014_v56, %v5013_v25  ;;  %v5016_v60 = vpop.f32.mrb[30].mxu1  ;;  %5206 = vmatpush3.bf16.msra.mxu1 %v5943_v20  ;;  %v5373_v51 = vpop.f32.mrb[128].mxu0  ;;  %v8540_v25 = vld [vmem:[#allocation24_spill] sm:$0xff] }
 0x3e7   : > { %v5017_v35 = vpop.f32.mrb[31].mxu1  ;;  %5207 = vmatprep.subr.bf16.mxu1 %v5944_v27  ;;  %v2935_v15 = vpop.f32.mrb[129].mxu0  ;;  %v5948_v27 = vld [vmem:[%s8426_s3 + $0x1e0] sm:$0xff]  }
 0x3e8   : > { %v7783_v29 = vadd.f32 %v5369_v62, %v5015_v30  ;;  %v5018_v9 = vadd.f32 %v5017_v35, %v5016_v60  ;;  %v5374_v13 = vpop.f32.mrb[130].mxu0  ;;  %v5947_v62 = vld [vmem:[%s8426_s3 + $0x198] sm:$0xff]  }
 0x3e9   : > { %5408 = vmatmul.mubr.bf16.gmra.mrb[132].mxu1 %v7274_v47  ;;  %v2938_v20 = vpop.f32.mrb[131].mxu0  ;;  %v8542_v47 = vld [vmem:[#allocation25_spill] sm:$0xff] }
 0x3ea   : > { %v7789_v22 = vadd.f32 %v5370_v28, %v5018_v9  ;;  %5411 = vmatprep.mubr.bf16.mxu1 %v8540_v25  ;;  %5208 = vmatpush3.bf16.msra.mxu1 %v5945_v50  ;;  %v5949_v28 = vld [vmem:[%s8426_s3 + $0x1a0] sm:$0xff]   ;;  %v5950_v50 = vld [vmem:[%s8426_s3 + $0x1e8] sm:$0xff]  }
 0x3eb   : > { %5209 = vmatprep.subr.bf16.mxu1 %v5946_v17 }
 0x3ec   : > { %8539 = vst [vmem:[#allocation59_spill] sm:$0xff] %v7789_v22 }
 0x3ed   : > { %v5019_v56 = vpop.f32.mrb[32].mxu1 }
 0x3ee   : > { %v5020_v30 = vpop.f32.mrb[33].mxu1  ;;  %5210 = vmatpush3.bf16.msra.mxu1 %v5947_v62  ;;  %v5951_v62 = vld [vmem:[%s8426_s3 + $0x1a8] sm:$0xff]  }
 0x3ef   : > { %v5021_v60 = vadd.f32 %v5020_v30, %v5019_v56  ;;  %v5022_v35 = vpop.f32.mrb[34].mxu1  ;;  %5211 = vmatprep.subr.bf16.mxu1 %v5948_v27  ;;  %v5952_v27 = vld [vmem:[%s8426_s3 + $0x1f0] sm:$0xff]  }
 0x3f0   : > { %v5023_v9 = vpop.f32.mrb[35].mxu1 }
 0x3f1   : > { %v7804_v17 = vadd.f32 %v5021_v60, %v2935_v15  ;;  %v5024_v25 = vadd.f32 %v5023_v9, %v5022_v35  ;;  %5412 = vmatmul.mubr.bf16.gmra.mrb[136].mxu1 %v8542_v47  ;;  %v5954_v9 = vld [vmem:[%s8426_s3 + $0x1f8] sm:$0xff]  }
 0x3f2   : > { %5415 = vmatprep.mubr.bf16.mxu1 %v8543_v49  ;;  %5212 = vmatpush3.bf16.msra.mxu1 %v5949_v28 }
 0x3f3   : > { %8541 = vst [vmem:[#allocation60_spill] sm:$0xff] %v7804_v17  ;;  %v7808_v56 = vadd.f32 %v5024_v25, %v2938_v20  ;;  %5213 = vmatprep.subr.bf16.mxu1 %v5950_v50  ;;  %v5953_v20 = vld [vmem:[%s8426_s3 + $0x1b0] sm:$0xff]  }
 0x3f5   : > { %8544 = vst [vmem:[#allocation61_spill] sm:$0xff] %v7808_v56  ;;  %v5025_v30 = vpop.f32.mrb[36].mxu1  ;;  %v5377_v28 = vpop.f32.mrb[132].mxu0 }
 0x3f6   : > { %v5026_v15 = vpop.f32.mrb[37].mxu1  ;;  %5214 = vmatpush3.bf16.msra.mxu1 %v5951_v62  ;;  %v2951_v47 = vpop.f32.mrb[133].mxu0 }
 0x3f7   : > { %v5027_v60 = vadd.f32 %v5026_v15, %v5025_v30  ;;  %v5028_v35 = vpop.f32.mrb[38].mxu1  ;;  %5215 = vmatprep.subr.bf16.mxu1 %v5952_v27  ;;  %v5378_v30 = vpop.f32.mrb[134].mxu0  ;;  %v8547_v15 = vld [vmem:[#allocation36_spill] sm:$0xff] }
 0x3f8   : > { %v5029_v25 = vpop.f32.mrb[39].mxu1  ;;  %v2954_v56 = vpop.f32.mrb[135].mxu0  ;;  %v5955_v27 = vld [vmem:[%s8426_s3 + $0x1b8] sm:$0xff]  }
 0x3f9   : > { %v7822_v50 = vadd.f32 %v5373_v51, %v5027_v60  ;;  %v5030_v49 = vadd.f32 %v5029_v25, %v5028_v35  ;;  %5416 = vmatmul.mubr.bf16.gmra.mrb[140].mxu1 %v8546_v7  ;;  %v5956_v51 = vld [vmem:[%s8426_s3 + $0x200] sm:$0xff]  }
 0x3fa   : > { %5419 = vmatprep.mubr.bf16.mxu1 %v8547_v15  ;;  %5216 = vmatpush3.bf16.msra.mxu1 %v5953_v20 }
 0x3fb   : > { %8545 = vst [vmem:[#allocation62_spill] sm:$0xff] %v7822_v50  ;;  %v7826_v62 = vadd.f32 %v5374_v13, %v5030_v49  ;;  %5217 = vmatprep.subr.bf16.mxu1 %v5954_v9  ;;  %v8549_v49 = vld [vmem:[#allocation37_spill] sm:$0xff] }
 0x3fd   : > { %8548 = vst [vmem:[#allocation63_spill] sm:$0xff] %v7826_v62  ;;  %v5031_v60 = vpop.f32.mrb[40].mxu1  ;;  %v8550_v62 = vld [vmem:[#allocation42_spill] sm:$0xff] }
 0x3fe   : > { %v5032_v35 = vpop.f32.mrb[41].mxu1  ;;  %5218 = vmatpush3.bf16.msra.mxu1 %v5955_v27  ;;  %v8551_v27 = vld [vmem:[#allocation43_spill] sm:$0xff] }
 0x3ff   : > { %v5033_v25 = vadd.f32 %v5032_v35, %v5031_v60  ;;  %v5034_v7 = vpop.f32.mrb[42].mxu1  ;;  %5435 = vmatprep.subr.bf16.mxu1 %v5956_v51 }
 0x400   : > { %v5035_v15 = vpop.f32.mrb[43].mxu1 }
 0x401   : > { %5420 = vmatmul.mubr.bf16.gmra.mrb[144].mxu1 %v8549_v49  ;;  %v7835_v13 = vadd.f32 %v5033_v25, %v2951_v47  ;;  %v5036_v20 = vadd.f32 %v5035_v15, %v5034_v7  ;;  %v3600_v25 = vrot.slane %v7720_v3, 1 }
 0x402   : > { %5423 = vmatprep.mubr.bf16.mxu1 %v8550_v62 }
 0x403   : > { %v7838_v50 = vadd.f32 %v5036_v20, %v2954_v56  ;;  %v3601_v56 = vrot.slane %v7625_v24, 1 }
 0x405   : > { %v5037_v9 = vpop.f32.mrb[44].mxu1  ;;  %v7850_v20 = vsel %vm684_vm2, %v3600_v25, %v3601_v56 }
 0x406   : > { %v5038_v17 = vpop.f32.mrb[45].mxu1  ;;  %v5381_v22 = vpop.f32.mrb[136].mxu0  ;;  %8552 = vst [vmem:[#allocation37_spill] sm:$0xff] %v7850_v20 }
 0x407   : > { %v5039_v43 = vadd.f32 %v5038_v17, %v5037_v9  ;;  %v5040_v23 = vpop.f32.mrb[46].mxu1  ;;  %v2967_v39 = vpop.f32.mrb[137].mxu0 }
 0x408   : > { %v5041_v10 = vpop.f32.mrb[47].mxu1  ;;  %v5382_v47 = vpop.f32.mrb[138].mxu0 }
 0x409   : > { %5424 = vmatmul.mubr.bf16.gmra.mrb[148].mxu1 %v8551_v27  ;;  %v7841_v60 = vadd.f32 %v5377_v28, %v5039_v43  ;;  %v5042_v35 = vadd.f32 %v5041_v10, %v5040_v23  ;;  %v2970_v15 = vpop.f32.mrb[139].mxu0 }
 0x40a   : > { %5427 = vmatprep.mubr.bf16.mxu1 %v7593_v42  ;;  %v3603_v42 = vrot.slane %v7738_v45, 1 }
 0x40b   : > { %v7844_v7 = vadd.f32 %v5378_v30, %v5042_v35 }
 0x40c   : > { %v7859_v27 = vsel %vm684_vm2, %v3601_v56, %v3603_v42  ;;  %v5957_v42 = vld [vmem:[%s8426_s3 + $0x208] sm:$0xff]  }
 0x40f   : > { %v5043_v17 = vpop.f32.mrb[48].mxu1 }
 0x410   : > { %v5044_v43 = vpop.f32.mrb[49].mxu1 }
 0x411   : > { %5428 = vmatmul.mubr.bf16.gmra.mrb[152].mxu1 %v7599_v2  ;;  %v5045_v10 = vadd.f32 %v5044_v43, %v5043_v17  ;;  %v5046_v23 = vpop.f32.mrb[50].mxu1 }
 0x412   : > { %5431 = vmatprep.mubr.bf16.mxu1 %v7850_v20  ;;  %v5047_v28 = vpop.f32.mrb[51].mxu1 }
 0x413   : > { %v7853_v9 = vadd.f32 %v5045_v10, %v2967_v39  ;;  %v5048_v30 = vadd.f32 %v5047_v28, %v5046_v23 }
 0x415   : > { %v7855_v35 = vadd.f32 %v5048_v30, %v2970_v15  ;;  %v5959_v30 = vld [vmem:[%s8426_s3 + $0x218] sm:$0xff]  }
 0x417   : > { %v5049_v2 = vpop.f32.mrb[52].mxu1 }
 0x418   : > { %v5050_v25 = vpop.f32.mrb[53].mxu1 }
 0x419   : > { %5432 = vmatmul.mubr.bf16.gmra.mrb[156].mxu1 %v7859_v27  ;;  %v5051_v20 = vadd.f32 %v5050_v25, %v5049_v2  ;;  %v5052_v17 = vpop.f32.mrb[54].mxu1  ;;  %v5960_v25 = vld [vmem:[%s8426_s3 + $0x220] sm:$0xff]  }
 0x41a   : > { %4046 = vmatprep.mubr.bf16.mxu1 %v7295_v59  ;;  %v5053_v43 = vpop.f32.mrb[55].mxu1  ;;  %v5958_v59 = vld [vmem:[%s8426_s3 + $0x210] sm:$0xff]  }
 0x41b   : > { %v5385_v62 = vpop.f32.mrb[140].mxu0  ;;  %v7863_v39 = vadd.f32 %v5381_v22, %v5051_v20  ;;  %v5054_v10 = vadd.f32 %v5053_v43, %v5052_v17 }
 0x41c   : > { %v2983_v15 = vpop.f32.mrb[141].mxu0 }
 0x41d   : > { %v5386_v23 = vpop.f32.mrb[142].mxu0  ;;  %v7865_v28 = vadd.f32 %v5382_v47, %v5054_v10 }
 0x41e   : > { %v2986_v45 = vpop.f32.mrb[143].mxu0 }
 0x421   : > { %4047 = vmatmul.mubr.bf16.vlgmr.msra.gmra.mrb[160].mxu1 %v7242_v57 }
 0x422   : > { %5436 = vmatpush3.bf16.msra.mxu1 %v5956_v51  ;;  %4054 = vmatprep.mubr.bf16.mxu1 %v7316_v18 }
 0x423   : > { %5437 = vmatprep.subr.bf16.mxu1 %v5957_v42 }
 0x424   : > { %v5055_v2 = vpop.f32.mrb[56].mxu1 }
 0x425   : > { %v5056_v22 = vpop.f32.mrb[57].mxu1 }
 0x426   : > { %v5057_v56 = vadd.f32 %v5056_v22, %v5055_v2  ;;  %v5058_v47 = vpop.f32.mrb[58].mxu1  ;;  %5438 = vmatpush3.bf16.msra.mxu1 %v5957_v42  ;;  %v5962_v2 = vld [vmem:[%s8426_s3 + $0x230] sm:$0xff]  }
 0x427   : > { %v5059_v20 = vpop.f32.mrb[59].mxu1  ;;  %5439 = vmatprep.subr.bf16.mxu1 %v5958_v59 }
 0x428   : > { %v7878_v57 = vadd.f32 %v5057_v56, %v2983_v15  ;;  %v5060_v51 = vadd.f32 %v5059_v20, %v5058_v47 }
 0x429   : > { %4055 = vmatmul.mubr.bf16.gmra.mrb[164].mxu1 %v7220_v58  ;;  %v5961_v58 = vld [vmem:[%s8426_s3 + $0x228] sm:$0xff]  }
 0x42a   : > { %v7881_v18 = vadd.f32 %v5060_v51, %v2986_v45  ;;  %4062 = vmatprep.mubr.bf16.mxu1 %v7358_v0  ;;  %5440 = vmatpush3.bf16.msra.mxu1 %v5958_v59 }
 0x42b   : > { %5441 = vmatprep.subr.bf16.mxu1 %v5959_v30 }
 0x42c   : > { %v5061_v17 = vpop.f32.mrb[60].mxu1 }
 0x42d   : > { %v5062_v43 = vpop.f32.mrb[61].mxu1 }
 0x42e   : > { %v5063_v10 = vadd.f32 %v5062_v43, %v5061_v17  ;;  %v5064_v42 = vpop.f32.mrb[62].mxu1  ;;  %5442 = vmatpush3.bf16.msra.mxu1 %v5959_v30 }
 0x42f   : > { %v5065_v15 = vpop.f32.mrb[63].mxu1  ;;  %5443 = vmatprep.subr.bf16.mxu1 %v5960_v25 }
 0x430   : > { %v7890_v45 = vadd.f32 %v5385_v62, %v5063_v10  ;;  %v5066_v0 = vadd.f32 %v5065_v15, %v5064_v42 }
 0x431   : > { %4063 = vmatmul.mubr.bf16.gmra.mrb[168].mxu1 %v7313_v36  ;;  %v5963_v36 = vld [vmem:[%s8426_s3 + $0x238] sm:$0xff]  }
 0x432   : > { %v7893_v59 = vadd.f32 %v5386_v23, %v5066_v0  ;;  %4070 = vmatprep.mubr.bf16.mxu1 %v7374_v55  ;;  %5444 = vmatpush3.bf16.msra.mxu1 %v5960_v25 }
 0x433   : > { %5445 = vmatprep.subr.bf16.mxu1 %v5961_v58 }
 0x434   : > { %v5083_v22 = vpop.f32.mrb[64].mxu1 }
 0x435   : > { %v5084_v56 = vpop.f32.mrb[65].mxu1 }
 0x436   : > { %v5085_v47 = vadd.f32 %v5084_v56, %v5083_v22  ;;  %v5086_v20 = vpop.f32.mrb[66].mxu1  ;;  %5446 = vmatpush3.bf16.msra.mxu1 %v5961_v58 }
 0x437   : > { %v5087_v62 = vpop.f32.mrb[67].mxu1  ;;  %5447 = vmatprep.subr.bf16.mxu1 %v5962_v2 }
 0x438   : > { %v7903_v23 = vadd.f32 %v5085_v47, %v7702_v14  ;;  %v5088_v55 = vadd.f32 %v5087_v62, %v5086_v20 }
 0x439   : > { %4071 = vmatmul.mubr.bf16.gmra.mrb[172].mxu1 %v7306_v19 }
 0x43a   : > { %v7907_v30 = vadd.f32 %v5088_v55, %v7705_v6  ;;  %4078 = vmatprep.mubr.bf16.mxu1 %v7421_v8  ;;  %5448 = vmatpush3.bf16.msra.mxu1 %v5962_v2 }
 0x43b   : > { %5449 = vmatprep.subr.bf16.mxu1 %v5963_v36 }
 0x43c   : > { %v5089_v51 = vpop.f32.mrb[68].mxu1 }
 0x43d   : > { %v5090_v25 = vpop.f32.mrb[69].mxu1 }
 0x43e   : > { %v5091_v17 = vadd.f32 %v5090_v25, %v5089_v51  ;;  %v5092_v43 = vpop.f32.mrb[70].mxu1  ;;  %5450 = vmatpush3.bf16.msra.mxu1 %v5963_v36 }
 0x43f   : > { %v5093_v10 = vpop.f32.mrb[71].mxu1 }
 0x440   : > { %v7911_v42 = vadd.f32 %v5091_v17, %v7708_v32  ;;  %v5094_v14 = vadd.f32 %v5093_v10, %v5092_v43 }
 0x441   : > { %4079 = vmatmul.mubr.bf16.gmra.mrb[176].mxu1 %v7379_v16 }
 0x442   : > { %v7915_v19 = vadd.f32 %v5094_v14, %v7711_v31  ;;  %4086 = vmatprep.mubr.bf16.mxu1 %v7443_v44 }
 0x444   : > { %v5095_v8 = vpop.f32.mrb[72].mxu1 }
 0x445   : > { %v5096_v6 = vpop.f32.mrb[73].mxu1 }
 0x446   : > { %v5097_v15 = vadd.f32 %v5096_v6, %v5095_v8  ;;  %v5098_v58 = vpop.f32.mrb[74].mxu1 }
 0x447   : > { %v5099_v0 = vpop.f32.mrb[75].mxu1 }
 0x448   : > { %v7919_v2 = vadd.f32 %v5097_v15, %v7722_v1  ;;  %v5100_v22 = vadd.f32 %v5099_v0, %v5098_v58 }
 0x449   : > { %4087 = vmatmul.mubr.bf16.gmra.mrb[180].mxu1 %v7371_v61 }
 0x44a   : > { %v7923_v32 = vadd.f32 %v5100_v22, %v7724_v38  ;;  %4094 = vmatprep.mubr.bf16.mxu1 %v7485_v63 }
 0x44c   : > { %v5101_v16 = vpop.f32.mrb[76].mxu1 }
 0x44d   : > { %v5102_v31 = vpop.f32.mrb[77].mxu1 }
 0x44e   : > { %v5103_v56 = vadd.f32 %v5102_v31, %v5101_v16  ;;  %v5104_v44 = vpop.f32.mrb[78].mxu1 }
 0x44f   : > { %v5105_v47 = vpop.f32.mrb[79].mxu1 }
 0x450   : > { %v7927_v20 = vadd.f32 %v5103_v56, %v7730_v26  ;;  %v5106_v62 = vadd.f32 %v5105_v47, %v5104_v44  ;;  %v8553_v56 = vld [vmem:[#allocation49_spill] sm:$0xff] }
 0x451   : > { %4095 = vmatmul.mubr.bf16.gmra.mrb[184].mxu1 %v7439_v48 }
 0x452   : > { %v7931_v1 = vadd.f32 %v5106_v62, %v7733_v34  ;;  %4102 = vmatprep.mubr.bf16.mxu1 %v7505_v40  ;;  %v8556_v62 = vld [vmem:[#allocation53_spill] sm:$0xff] }
 0x454   : > { %v5107_v61 = vpop.f32.mrb[80].mxu1 }
 0x455   : > { %v5108_v38 = vpop.f32.mrb[81].mxu1 }
 0x456   : > { %v5109_v36 = vadd.f32 %v5108_v38, %v5107_v61  ;;  %v5110_v63 = vpop.f32.mrb[82].mxu1 }
 0x457   : > { %v5111_v55 = vpop.f32.mrb[83].mxu1 }
 0x458   : > { %v7935_v51 = vadd.f32 %v5109_v36, %v7747_v53  ;;  %v5112_v25 = vadd.f32 %v5111_v55, %v5110_v63  ;;  %v8557_v63 = vld [vmem:[#allocation55_spill] sm:$0xff] }
 0x459   : > { %4103 = vmatmul.mubr.bf16.gmra.mrb[188].mxu1 %v7435_v5 }
 0x45a   : > { %v7939_v26 = vadd.f32 %v5112_v25, %v7749_v12  ;;  %4110 = vmatprep.mubr.bf16.mxu1 %v7553_v41  ;;  %v8558_v25 = vld [vmem:[#allocation60_spill] sm:$0xff] }
 0x45c   : > { %v5113_v48 = vpop.f32.mrb[84].mxu1 }
 0x45d   : > { %v5114_v34 = vpop.f32.mrb[85].mxu1 }
 0x45e   : > { %v5115_v17 = vadd.f32 %v5114_v34, %v5113_v48  ;;  %v5116_v40 = vpop.f32.mrb[86].mxu1  ;;  %v8559_v34 = vld [vmem:[#allocation46_spill] sm:$0xff] }
 0x45f   : > { %v5117_v43 = vpop.f32.mrb[87].mxu1 }
 0x460   : > { %v7943_v10 = vadd.f32 %v5115_v17, %v7756_v11  ;;  %v5118_v14 = vadd.f32 %v5117_v43, %v5116_v40  ;;  %v8560_v17 = vld [vmem:[#allocation61_spill] sm:$0xff] }
 0x461   : > { %4111 = vmatmul.mubr.bf16.gmra.mrb[192].mxu1 %v7499_v33  ;;  %v8561_v43 = vld [vmem:[#allocation57_spill] sm:$0xff] }
 0x462   : > { %v7947_v53 = vadd.f32 %v5118_v14, %v7758_v54  ;;  %4118 = vmatprep.mubr.bf16.mxu1 %v7572_v52 }
 0x464   : > { %v5119_v5 = vpop.f32.mrb[88].mxu1 }
 0x465   : > { %v5120_v12 = vpop.f32.mrb[89].mxu1 }
 0x466   : > { %v5121_v8 = vadd.f32 %v5120_v12, %v5119_v5  ;;  %v5122_v41 = vpop.f32.mrb[90].mxu1 }
 0x467   : > { %v5123_v6 = vpop.f32.mrb[91].mxu1 }
 0x468   : > { %v7951_v15 = vadd.f32 %v5121_v8, %v7765_v37  ;;  %v5124_v58 = vadd.f32 %v5123_v6, %v5122_v41  ;;  %v8554_v37 = vld [vmem:[#allocation59_spill] sm:$0xff] }
 0x469   : > { %4119 = vmatmul.mubr.bf16.gmra.mrb[196].mxu1 %v7502_v21  ;;  %v8555_v21 = vld [vmem:[#allocation52_spill] sm:$0xff] }
 0x46a   : > { %v7955_v11 = vadd.f32 %v5124_v58, %v7771_v46  ;;  %4126 = vmatprep.mubr.bf16.mxu1 %v7628_v4  ;;  %v2430_v4 = vshll.u32 %v8556_v62, 16 }
 0x46c   : > { %v5125_v33 = vpop.f32.mrb[92].mxu1  ;;  %v2432_v55 = vor.u32 %v2430_v4, %v8557_v63 }
 0x46d   : > { %v5126_v54 = vpop.f32.mrb[93].mxu1 }
 0x46e   : > { %v5127_v0 = vadd.f32 %v5126_v54, %v5125_v33  ;;  %v5128_v52 = vpop.f32.mrb[94].mxu1  ;;  %v7978_v12 = vsel %vm7050_vm13, 0, %v2432_v55  ;;  %v8563_v54 = vld [vmem:[#allocation62_spill] sm:$0xff] }
 0x46f   : > { %v5129_v22 = vpop.f32.mrb[95].mxu1  ;;  %v3867_v33 = vshll.u32 %v7978_v12, 16  ;;  %v3865_v4 = vshrl.u32 %v7978_v12, 16 }
 0x470   : > { %v7959_v16 = vadd.f32 %v5127_v0, %v7783_v29  ;;  %v5130_v31 = vadd.f32 %v5129_v22, %v5128_v52  ;;  %v8564_v22 = vld [vmem:[#allocation56_spill] sm:$0xff] }
 0x471   : > { %4127 = vmatmul.mubr.bf16.gmra.mrb[200].mxu1 %v8553_v56  ;;  %v8565_v56 = vld [vmem:[#allocation63_spill] sm:$0xff] }
 0x472   : > { %v7963_v44 = vadd.f32 %v5130_v31, %v8554_v37  ;;  %4134 = vmatprep.mubr.bf16.mxu1 %v8555_v21  ;;  %v3872_v31 = vshll.u32 %v8564_v22, 16  ;;  %v8566_v21 = vld [vmem:[#allocation58_spill] sm:$0xff] }
 0x474   : > { %v5131_v46 = vpop.f32.mrb[96].mxu1 }
 0x475   : > { %v5132_v47 = vpop.f32.mrb[97].mxu1 }
 0x476   : > { %v5133_v61 = vadd.f32 %v5132_v47, %v5131_v46  ;;  %v5134_v38 = vpop.f32.mrb[98].mxu1  ;;  %v3869_v46 = vrot.slane %v3867_v33, 1 }
 0x477   : > { %v5135_v36 = vpop.f32.mrb[99].mxu1 }
 0x478   : > { %v7969_v29 = vadd.f32 %v5133_v61, %v8558_v25  ;;  %v5136_v48 = vadd.f32 %v5135_v36, %v5134_v38  ;;  %v3874_v61 = vrot.slane %v3872_v31, 1  ;;  %v3870_v55 = vor.u32 %v3869_v46, %v3865_v4 }
 0x479   : > { %4135 = vmatmul.mubr.bf16.gmra.mrb[204].mxu1 %v8559_v34 }
 0x47a   : > { %v7973_v40 = vadd.f32 %v5136_v48, %v8560_v17  ;;  %4142 = vmatprep.mubr.bf16.mxu1 %v8561_v43  ;;  %v8567_v48 = vld [vmem:[#allocation54_spill] sm:$0xff]  ;;  %v3875_v17 = vsel %vm443_vm1, %v3870_v55, %v3874_v61 }
 0x47b   : > { %v7997_v34 = vsel %vm7050_vm13, %v8567_v48, 0 }
 0x47c   : > { %v5137_v14 = vpop.f32.mrb[100].mxu1 }
 0x47d   : > { %v5138_v8 = vpop.f32.mrb[101].mxu1 }
 0x47e   : > { %v5139_v41 = vadd.f32 %v5138_v8, %v5137_v14  ;;  %v5140_v6 = vpop.f32.mrb[102].mxu1  ;;  %v3876_v14 = vshrl.u32 %v8564_v22, 16  ;;  %v3880_v8 = vshll.u32 %v7997_v34, 16 }
 0x47f   : > { %v5141_v58 = vpop.f32.mrb[103].mxu1 }
 0x480   : > { %v7982_v0 = vadd.f32 %v5139_v41, %v8563_v54  ;;  %v5142_v52 = vadd.f32 %v5141_v58, %v5140_v6  ;;  %v3878_v6 = vor.u32 %v3876_v14, %v3874_v61  ;;  %v3882_v54 = vrot.slane %v3880_v8, 1  ;;  %v8569_v14 = vld [vmem:[#allocation19_spill] sm:$0xff]  ;;  %v8570_v8 = vld [vmem:[#allocation24_spill] sm:$0xff] }
 0x481   : > { %4143 = vmatmul.mubr.bf16.gmra.mrb[208].mxu1 %v7720_v3 }
 0x482   : > { %v7987_v37 = vadd.f32 %v5142_v52, %v8565_v56  ;;  %4150 = vmatprep.mubr.bf16.mxu1 %v8566_v21 }
 0x484   : > { %v5143_v47 = vpop.f32.mrb[104].mxu1 }
 0x485   : > { %v5144_v62 = vpop.f32.mrb[105].mxu1 }
 0x486   : > { %v5145_v38 = vadd.f32 %v5144_v62, %v5143_v47  ;;  %v5146_v36 = vpop.f32.mrb[106].mxu1 }
 0x487   : > { %v5147_v63 = vpop.f32.mrb[107].mxu1 }
 0x488   : > { %v7992_v25 = vadd.f32 %v5145_v38, %v7835_v13  ;;  %v5148_v3 = vadd.f32 %v5147_v63, %v5146_v36  ;;  %v8568_v38 = vld [vmem:[#allocation18_spill] sm:$0xff] }
 0x489   : > { %4151 = vmatmul.mubr.bf16.gmra.mrb[212].mxu1 %v7625_v24 }
 0x48a   : > { %v8002_v43 = vadd.f32 %v5148_v3, %v7838_v50  ;;  %4158 = vmatprep.mubr.bf16.mxu1 %v3875_v17  ;;  %v3883_v50 = vsel %vm443_vm1, %v3878_v6, %v3882_v54  ;;  %v8571_v54 = vld [vmem:[#allocation25_spill] sm:$0xff] }
 0x48c   : > { %v5149_v13 = vpop.f32.mrb[108].mxu1 }
 0x48d   : > { %v5150_v41 = vpop.f32.mrb[109].mxu1 }
 0x48e   : > { %v5151_v58 = vadd.f32 %v5150_v41, %v5149_v13  ;;  %v5152_v33 = vpop.f32.mrb[110].mxu1 }
 0x48f   : > { %v5153_v5 = vpop.f32.mrb[111].mxu1 }
 0x490   : > { %v8007_v52 = vadd.f32 %v5151_v58, %v7841_v60  ;;  %v5154_v24 = vadd.f32 %v5153_v5, %v5152_v33 }
 0x491   : > { %4159 = vmatmul.mubr.bf16.gmra.mrb[216].mxu1 %v7978_v12 }
 0x492   : > { %v8012_v31 = vadd.f32 %v5154_v24, %v7844_v7  ;;  %4166 = vmatprep.mubr.bf16.mxu1 %v3883_v50  ;;  %v8572_v24 = vld [vmem:[#allocation30_spill] sm:$0xff] }
 0x494   : > { %v5155_v56 = vpop.f32.mrb[112].mxu1 }
 0x495   : > { %v5156_v21 = vpop.f32.mrb[113].mxu1 }
 0x496   : > { %v5157_v46 = vadd.f32 %v5156_v21, %v5155_v56  ;;  %v5158_v47 = vpop.f32.mrb[114].mxu1 }
 0x497   : > { %v5159_v62 = vpop.f32.mrb[115].mxu1 }
 0x498   : > { %v8015_v4 = vadd.f32 %v5157_v46, %v7853_v9  ;;  %v5160_v61 = vadd.f32 %v5159_v62, %v5158_v47 }
 0x499   : > { %4167 = vmatmul.mubr.bf16.gmra.mrb[220].mxu1 %v8564_v22 }
 0x49a   : > { %v8019_v60 = vadd.f32 %v5160_v61, %v7855_v35  ;;  %5451 = vmatprep.mubr.bf16.mxu1 %v8568_v38  ;;  %v8573_v61 = vld [vmem:[#allocation31_spill] sm:$0xff]  ;;  %v8574_v38 = vld [vmem:[#allocation36_spill] sm:$0xff] }
 0x49c   : > { %v5161_v36 = vpop.f32.mrb[116].mxu1 }
 0x49d   : > { %v5162_v7 = vpop.f32.mrb[117].mxu1 }
 0x49e   : > { %v5163_v63 = vadd.f32 %v5162_v7, %v5161_v36  ;;  %v5164_v55 = vpop.f32.mrb[118].mxu1  ;;  %v8576_v36 = vld [vmem:[#allocation43_spill] sm:$0xff]  ;;  %v8577_v7 = vld [vmem:[#allocation50_spill] sm:$0xff] }
 0x49f   : > { %v5165_v3 = vpop.f32.mrb[119].mxu1 }
 0x4a0   : > { %v8023_v48 = vadd.f32 %v5163_v63, %v7863_v39  ;;  %v5166_v17 = vadd.f32 %v5165_v3, %v5164_v55  ;;  %v8578_v63 = vld [vmem:[#allocation51_spill] sm:$0xff]  ;;  %v4210_v55 = vrot.slane %v8564_v22, 1  ;;  %v4209_v3 = vrot.slane %v7978_v12, 1 }
 0x4a1   : > { %5452 = vmatmul.mubr.bf16.vlgmr.msra.gmra.mrb[128].mxu1 %v8569_v14 }
 0x4a2   : > { %v8027_v9 = vadd.f32 %v5166_v17, %v7865_v28  ;;  %5455 = vmatprep.mubr.bf16.mxu1 %v8570_v8 }
 0x4a4   : > { %v5167_v35 = vpop.f32.mrb[120].mxu1 }
 0x4a5   : > { %v5168_v13 = vpop.f32.mrb[121].mxu1 }
 0x4a6   : > { %v5169_v41 = vadd.f32 %v5168_v13, %v5167_v35  ;;  %v5170_v6 = vpop.f32.mrb[122].mxu1 }
 0x4a7   : > { %v5171_v58 = vpop.f32.mrb[123].mxu1 }
 0x4a8   : > { %v8031_v33 = vadd.f32 %v5169_v41, %v7878_v57  ;;  %v5172_v5 = vadd.f32 %v5171_v58, %v5170_v6 }
 0x4a9   : > { %5456 = vmatmul.mubr.bf16.gmra.mrb[132].mxu1 %v8571_v54 }
 0x4aa   : > { %v8035_v39 = vadd.f32 %v5172_v5, %v7881_v18  ;;  %5459 = vmatprep.mubr.bf16.mxu1 %v8572_v24  ;;  %v8575_v18 = vld [vmem:[#allocation42_spill] sm:$0xff] }
 0x4ac   : > { %v5173_v28 = vpop.f32.mrb[124].mxu1 }
 0x4ad   : > { %v5174_v50 = vpop.f32.mrb[125].mxu1 }
 0x4ae   : > { %v5175_v56 = vadd.f32 %v5174_v50, %v5173_v28  ;;  %v5176_v21 = vpop.f32.mrb[126].mxu1 }
 0x4af   : > { %v5177_v46 = vpop.f32.mrb[127].mxu1 }
 0x4b0   : > { %v8039_v47 = vadd.f32 %v5175_v56, %v7890_v45  ;;  %v5178_v62 = vadd.f32 %v5177_v46, %v5176_v21  ;;  %v8579_v45 = vld [vmem:[#allocation37_spill] sm:$0xff] }
 0x4b1   : > { %5460 = vmatmul.mubr.bf16.gmra.mrb[136].mxu1 %v8573_v61 }
 0x4b2   : > { %v8043_v57 = vadd.f32 %v5178_v62, %v7893_v59  ;;  %5463 = vmatprep.mubr.bf16.mxu1 %v8574_v38  ;;  %v4211_v59 = vsel %vm684_vm2, %v4209_v3, %v4210_v55 }
 0x4b9   : > { %5464 = vmatmul.mubr.bf16.gmra.mrb[140].mxu1 %v8549_v49  ;;  %v4212_v49 = vrot.slane %v7997_v34, 1 }
 0x4ba   : > { %5467 = vmatprep.mubr.bf16.mxu1 %v8575_v18 }
 0x4bb   : > { %v4213_v17 = vsel %vm684_vm2, %v4210_v55, %v4212_v49 }
 0x4c1   : > { %5468 = vmatmul.mubr.bf16.gmra.mrb[144].mxu1 %v8576_v36 }
 0x4c2   : > { %5471 = vmatprep.mubr.bf16.mxu1 %v8577_v7 }
 0x4c9   : > { %5472 = vmatmul.mubr.bf16.gmra.mrb[148].mxu1 %v8578_v63 }
 0x4ca   : > { %5475 = vmatprep.mubr.bf16.mxu1 %v8579_v45 }
 0x4d1   : > { %5476 = vmatmul.mubr.bf16.gmra.mrb[152].mxu1 %v7859_v27 }
 0x4d2   : > { %5479 = vmatprep.mubr.bf16.mxu1 %v4211_v59 }
 0x4d9   : > { %5480 = vmatmul.mubr.bf16.gmra.mrb[156].mxu1 %v4213_v17 }
 0x4f4   : > { %v5219_v14 = vpop.f32.mrb[160].mxu1 }
 0x4f5   : > { %v5220_v8 = vpop.f32.mrb[161].mxu1 }
 0x4f6   : > { %v5221_v35 = vadd.f32 %v5220_v8, %v5219_v14  ;;  %v5222_v13 = vpop.f32.mrb[162].mxu1 }
 0x4f7   : > { %v5223_v41 = vpop.f32.mrb[163].mxu1 }
 0x4f8   : > { %v5224_v6 = vadd.f32 %v5223_v41, %v5222_v13  ;;  %v8059_v22 = vadd.f32 %v5221_v35, %v7903_v23 }
 0x4fa   : > { %v8062_v12 = vadd.f32 %v5224_v6, %v7907_v30 }
 0x4fc   : > { %v5225_v27 = vpop.f32.mrb[164].mxu1 }
 0x4fd   : > { %v5226_v58 = vpop.f32.mrb[165].mxu1 }
 0x4fe   : > { %v5227_v5 = vadd.f32 %v5226_v58, %v5225_v27  ;;  %v5228_v54 = vpop.f32.mrb[166].mxu1 }
 0x4ff   : > { %v5229_v34 = vpop.f32.mrb[167].mxu1 }
 0x500   : > { %v5230_v24 = vadd.f32 %v5229_v34, %v5228_v54  ;;  %v8065_v28 = vadd.f32 %v5227_v5, %v7911_v42 }
 0x502   : > { %v8068_v50 = vadd.f32 %v5230_v24, %v7915_v19 }
 0x504   : > { %v5231_v56 = vpop.f32.mrb[168].mxu1 }
 0x505   : > { %v5232_v21 = vpop.f32.mrb[169].mxu1 }
 0x506   : > { %v5233_v46 = vadd.f32 %v5232_v21, %v5231_v56  ;;  %v5234_v23 = vpop.f32.mrb[170].mxu1 }
 0x507   : > { %v5235_v62 = vpop.f32.mrb[171].mxu1 }
 0x508   : > { %v5236_v61 = vadd.f32 %v5235_v62, %v5234_v23  ;;  %v8071_v30 = vadd.f32 %v5233_v46, %v7919_v2 }
 0x50a   : > { %v8074_v38 = vadd.f32 %v5236_v61, %v7923_v32 }
 0x50c   : > { %v5237_v18 = vpop.f32.mrb[172].mxu1 }
 0x50d   : > { %v5238_v36 = vpop.f32.mrb[173].mxu1 }
 0x50e   : > { %v5239_v7 = vadd.f32 %v5238_v36, %v5237_v18  ;;  %v5240_v42 = vpop.f32.mrb[174].mxu1 }
 0x50f   : > { %v5241_v63 = vpop.f32.mrb[175].mxu1 }
 0x510   : > { %v5242_v45 = vadd.f32 %v5241_v63, %v5240_v42  ;;  %v8077_v19 = vadd.f32 %v5239_v7, %v7927_v20 }
 0x512   : > { %v8080_v55 = vadd.f32 %v5242_v45, %v7931_v1 }
 0x514   : > { %v5243_v3 = vpop.f32.mrb[176].mxu1 }
 0x515   : > { %v5244_v59 = vpop.f32.mrb[177].mxu1 }
 0x516   : > { %v5245_v49 = vadd.f32 %v5244_v59, %v5243_v3  ;;  %v5246_v2 = vpop.f32.mrb[178].mxu1 }
 0x517   : > { %v5247_v17 = vpop.f32.mrb[179].mxu1 }
 0x518   : > { %v5248_v14 = vadd.f32 %v5247_v17, %v5246_v2  ;;  %v8083_v32 = vadd.f32 %v5245_v49, %v7935_v51 }
 0x51a   : > { %v8086_v8 = vadd.f32 %v5248_v14, %v7939_v26 }
 0x51c   : > { %v5249_v35 = vpop.f32.mrb[180].mxu1 }
 0x51d   : > { %v5250_v13 = vpop.f32.mrb[181].mxu1 }
 0x51e   : > { %v5251_v41 = vadd.f32 %v5250_v13, %v5249_v35  ;;  %v5252_v20 = vpop.f32.mrb[182].mxu1 }
 0x51f   : > { %v5253_v6 = vpop.f32.mrb[183].mxu1 }
 0x520   : > { %v5254_v27 = vadd.f32 %v5253_v6, %v5252_v20  ;;  %v8089_v1 = vadd.f32 %v5251_v41, %v7943_v10  ;;  %v8580_v20 = vld [vmem:[#allocation5_spill] sm:$0xff] }
 0x521   : > { %v1976_v6 = vsub.f32 0.0, %v8580_v20  ;;  %v8587_v20 = vld [vmem:[#allocation13_spill] sm:$0xff] }
 0x522   : > { %v8092_v58 = vadd.f32 %v5254_v27, %v7947_v53  ;;  %v8581_v27 = vld [vmem:[#allocation7_spill] sm:$0xff] }
 0x524   : > { %v5255_v5 = vpop.f32.mrb[184].mxu1 }
 0x525   : > { %v5256_v54 = vpop.f32.mrb[185].mxu1 }
 0x526   : > { %v5257_v34 = vadd.f32 %v5256_v54, %v5255_v5  ;;  %v5258_v51 = vpop.f32.mrb[186].mxu1  ;;  %v1977_v5 = vsub.f32 0.0, %v8581_v27 }
 0x527   : > { %v5259_v24 = vpop.f32.mrb[187].mxu1 }
 0x528   : > { %v5260_v56 = vadd.f32 %v5259_v24, %v5258_v51  ;;  %v8095_v26 = vadd.f32 %v5257_v34, %v7951_v15 }
 0x52a   : > { %v8098_v21 = vadd.f32 %v5260_v56, %v7955_v11  ;;  %v2008_v56 = vmul.f32 1.442695, %v1976_v6  ;;  %v1983_v6 = vsub.f32 0.0, %v8587_v20  ;;  %v8593_v20 = vld [vmem:[#allocation21_spill] sm:$0xff] }
 0x52c   : > { %v5261_v46 = vpop.f32.mrb[188].mxu1  ;;  %5964 = vpow2.f32 %v2008_v56 }
 0x52d   : > { %v5262_v23 = vpop.f32.mrb[189].mxu1 }
 0x52e   : > { %v5263_v62 = vadd.f32 %v5262_v23, %v5261_v46  ;;  %v5264_v10 = vpop.f32.mrb[190].mxu1  ;;  %v8582_v46 = vld [vmem:[#allocation8_spill] sm:$0xff]  ;;  %v2010_v23 = vmul.f32 1.442695, %v1977_v5 }
 0x52f   : > { %v5265_v61 = vpop.f32.mrb[191].mxu1 }
 0x530   : > { %v5266_v18 = vadd.f32 %v5265_v61, %v5264_v10  ;;  %v8101_v53 = vadd.f32 %v5263_v62, %v7959_v16  ;;  %5966 = vpow2.f32 %v2010_v23 }
 0x532   : > { %v8104_v36 = vadd.f32 %v5266_v18, %v7963_v44  ;;  %v8583_v18 = vld [vmem:[#allocation9_spill] sm:$0xff] }
 0x534   : > { %v5267_v7 = vpop.f32.mrb[192].mxu1 }
 0x535   : > { %v5268_v42 = vpop.f32.mrb[193].mxu1 }
 0x536   : > { %v5269_v63 = vadd.f32 %v5268_v42, %v5267_v7  ;;  %v5270_v15 = vpop.f32.mrb[194].mxu1  ;;  %v1979_v7 = vsub.f32 0.0, %v8583_v18 }
 0x537   : > { %v5271_v45 = vpop.f32.mrb[195].mxu1 }
 0x538   : > { %v5272_v3 = vadd.f32 %v5271_v45, %v5270_v15  ;;  %v8107_v11 = vadd.f32 %v5269_v63, %v7969_v29  ;;  %v8584_v15 = vld [vmem:[#allocation10_spill] sm:$0xff] }
 0x539   : > { %v1980_v45 = vsub.f32 0.0, %v8584_v15  ;;  %v8590_v15 = vld [vmem:[#allocation16_spill] sm:$0xff] }
 0x53a   : > { %v8110_v59 = vadd.f32 %v5272_v3, %v7973_v40 }
 0x53c   : > { %v5273_v49 = vpop.f32.mrb[196].mxu1 }
 0x53d   : > { %v5274_v2 = vpop.f32.mrb[197].mxu1 }
 0x53e   : > { %v5275_v17 = vadd.f32 %v5274_v2, %v5273_v49  ;;  %v5276_v16 = vpop.f32.mrb[198].mxu1  ;;  %v2014_v2 = vmul.f32 1.442695, %v1979_v7 }
 0x53f   : > { %v5277_v14 = vpop.f32.mrb[199].mxu1 }
 0x540   : > { %v5278_v35 = vadd.f32 %v5277_v14, %v5276_v16  ;;  %v8113_v44 = vadd.f32 %v5275_v17, %v7982_v0  ;;  %v1978_v0 = vsub.f32 0.0, %v8582_v46  ;;  %v2016_v14 = vmul.f32 1.442695, %v1980_v45 }
 0x541   : > { %v2022_v46 = vmul.f32 1.442695, %v1983_v6  ;;  %v1986_v45 = vsub.f32 0.0, %v8590_v15  ;;  %v1989_v6 = vsub.f32 0.0, %v8593_v20 }
 0x542   : > { %v8116_v13 = vadd.f32 %v5278_v35, %v7987_v37  ;;  %v2012_v10 = vmul.f32 1.442695, %v1978_v0  ;;  %v8586_v35 = vld [vmem:[#allocation12_spill] sm:$0xff]  ;;  %v8588_v0 = vld [vmem:[#allocation14_spill] sm:$0xff] }
 0x544   : > { %v5279_v41 = vpop.f32.mrb[200].mxu1  ;;  %5968 = vpow2.f32 %v2012_v10  ;;  %v8589_v10 = vld [vmem:[#allocation15_spill] sm:$0xff] }
 0x545   : > { %v5280_v29 = vpop.f32.mrb[201].mxu1  ;;  %5970 = vpow2.f32 %v2014_v2 }
 0x546   : > { %v5281_v40 = vadd.f32 %v5280_v29, %v5279_v41  ;;  %v5282_v54 = vpop.f32.mrb[202].mxu1  ;;  %v1982_v41 = vsub.f32 0.0, %v8586_v35  ;;  %5972 = vpow2.f32 %v2016_v14 }
 0x547   : > { %v5283_v34 = vpop.f32.mrb[203].mxu1 }
 0x548   : > { %v5284_v51 = vadd.f32 %v5283_v34, %v5282_v54  ;;  %v8121_v24 = vadd.f32 %v5281_v40, %v7992_v25  ;;  %v2020_v34 = vmul.f32 1.442695, %v1982_v41 }
 0x54a   : > { %v8125_v37 = vadd.f32 %v5284_v51, %v8002_v43  ;;  %v8585_v43 = vld [vmem:[#allocation11_spill] sm:$0xff] }
 0x54b   : > { %v1981_v17 = vsub.f32 0.0, %v8585_v43 }
 0x54c   : > { %v5285_v62 = vpop.f32.mrb[204].mxu1 }
 0x54d   : > { %v5286_v61 = vpop.f32.mrb[205].mxu1  ;;  %v2018_v5 = vmul.f32 1.442695, %v1981_v17 }
 0x54e   : > { %v5287_v42 = vadd.f32 %v5286_v61, %v5285_v62  ;;  %v5288_v63 = vpop.f32.mrb[206].mxu1  ;;  %v1985_v61 = vsub.f32 0.0, %v8589_v10 }
 0x54f   : > { %v5289_v25 = vpop.f32.mrb[207].mxu1  ;;  %5974 = vpow2.f32 %v2018_v5 }
 0x550   : > { %v5290_v3 = vadd.f32 %v5289_v25, %v5288_v63  ;;  %v8130_v49 = vadd.f32 %v5287_v42, %v8007_v52  ;;  %v5965_v52 = vpop.eup %5964  ;;  %5976 = vpow2.f32 %v2020_v34  ;;  %v2026_v17 = vmul.f32 1.442695, %v1985_v61 }
 0x551   : > { %v5967_v56 = vpop.eup %5966  ;;  %v2072_v18 = vadd.f32 1.0, %v5965_v52  ;;  %5978 = vpow2.f32 %v2022_v46  ;;  %v8594_v46 = vld [vmem:[#allocation22_spill] sm:$0xff] }
 0x552   : > { %v8134_v16 = vadd.f32 %v5290_v3, %v8012_v31  ;;  %v1984_v31 = vsub.f32 0.0, %v8588_v0  ;;  %v5969_v42 = vpop.eup %5968  ;;  %v2073_v63 = vadd.f32 1.0, %v5967_v56  ;;  %v8591_v3 = vld [vmem:[#allocation17_spill] sm:$0xff]  ;;  %v1990_v0 = vsub.f32 0.0, %v8594_v46 }
 0x553   : > { %v1987_v2 = vsub.f32 0.0, %v8591_v3  ;;  %5980 = vrcp.f32 %v2072_v18  ;;  %v2074_v41 = vadd.f32 1.0, %v5969_v42 }
 0x554   : > { %v5291_v29 = vpop.f32.mrb[208].mxu1  ;;  %v2024_v25 = vmul.f32 1.442695, %v1984_v31  ;;  %5982 = vrcp.f32 %v2073_v63  ;;  %v2034_v31 = vmul.f32 1.442695, %v1989_v6 }
 0x555   : > { %v5292_v27 = vpop.f32.mrb[209].mxu1 }
 0x556   : > { %v5293_v40 = vadd.f32 %v5292_v27, %v5291_v29  ;;  %v5294_v54 = vpop.f32.mrb[210].mxu1  ;;  %v2028_v27 = vmul.f32 1.442695, %v1986_v45  ;;  %5984 = vpow2.f32 %v2024_v25  ;;  %v2036_v45 = vmul.f32 1.442695, %v1990_v0  ;;  %v8598_v0 = vld [vmem:[#allocation28_spill] sm:$0xff] }
 0x557   : > { %v5295_v51 = vpop.f32.mrb[211].mxu1  ;;  %5986 = vpow2.f32 %v2026_v17 }
 0x558   : > { %v5296_v23 = vadd.f32 %v5295_v51, %v5294_v54  ;;  %v8140_v62 = vadd.f32 %v5293_v40, %v8015_v4  ;;  %v8592_v4 = vld [vmem:[#allocation20_spill] sm:$0xff]  ;;  %v5971_v40 = vpop.eup %5970  ;;  %v2030_v54 = vmul.f32 1.442695, %v1987_v2  ;;  %5988 = vrcp.f32 %v2074_v41 }
 0x559   : > { %v1988_v14 = vsub.f32 0.0, %v8592_v4  ;;  %v5973_v51 = vpop.eup %5972  ;;  %v2075_v18 = vadd.f32 1.0, %v5971_v40  ;;  %5990 = vpow2.f32 %v2028_v27 }
 0x55a   : > { %v8144_v7 = vadd.f32 %v5296_v23, %v8019_v60  ;;  %v8595_v23 = vld [vmem:[#allocation23_spill] sm:$0xff]  ;;  %v5975_v42 = vpop.eup %5974  ;;  %v2076_v63 = vadd.f32 1.0, %v5973_v51  ;;  %5992 = vpow2.f32 %v2030_v54 }
 0x55b   : > { %v2032_v56 = vmul.f32 1.442695, %v1988_v14  ;;  %v1991_v10 = vsub.f32 0.0, %v8595_v23 }
 0x55c   : > { %v5297_v43 = vpop.f32.mrb[212].mxu1 }
 0x55d   : > { %v5298_v35 = vpop.f32.mrb[213].mxu1  ;;  %5994 = vpow2.f32 %v2032_v56  ;;  %v2038_v2 = vmul.f32 1.442695, %v1991_v10 }
 0x55e   : > { %v5299_v60 = vadd.f32 %v5298_v35, %v5297_v43  ;;  %v5300_v29 = vpop.f32.mrb[214].mxu1  ;;  %5996 = vpow2.f32 %v2034_v31  ;;  %v8596_v43 = vld [vmem:[#allocation26_spill] sm:$0xff]  ;;  %v8597_v35 = vld [vmem:[#allocation27_spill] sm:$0xff]  ;;  %v1994_v31 = vsub.f32 0.0, %v8598_v0 }
 0x55f   : > { %v5301_v5 = vpop.f32.mrb[215].mxu1  ;;  %v1992_v17 = vsub.f32 0.0, %v8596_v43  ;;  %5998 = vrcp.f32 %v2075_v18  ;;  %v1993_v41 = vsub.f32 0.0, %v8597_v35 }
 0x560   : > { %v5302_v52 = vadd.f32 %v5301_v5, %v5300_v29  ;;  %v8151_v34 = vadd.f32 %v5299_v60, %v8023_v48  ;;  %v5977_v48 = vpop.eup %5976  ;;  %6000 = vrcp.f32 %v2076_v63 }
 0x561   : > { %v5979_v3 = vpop.eup %5978  ;;  %v2078_v60 = vadd.f32 1.0, %v5977_v48  ;;  %6002 = vpow2.f32 %v2036_v45  ;;  %v2042_v46 = vmul.f32 1.442695, %v1993_v41 }
 0x562   : > { %v8156_v61 = vadd.f32 %v5302_v52, %v8027_v9  ;;  %v2077_v9 = vadd.f32 1.0, %v5975_v42  ;;  %v8160_v6 = vpop.eup %5980  ;;  %v2079_v40 = vadd.f32 1.0, %v5979_v3  ;;  %6004 = vpow2.f32 %v2038_v2 }
 0x563   : > { %v8165_v5 = vpop.eup %5982  ;;  %v2040_v52 = vmul.f32 1.442695, %v1992_v17  ;;  %v8599_v17 = vld [vmem:[#allocation29_spill] sm:$0xff] }
 0x564   : > { %v5303_v15 = vpop.f32.mrb[216].mxu1  ;;  %v5985_v54 = vpop.eup %5984  ;;  %6006 = vrcp.f32 %v2077_v9 }
 0x565   : > { %v5304_v25 = vpop.f32.mrb[217].mxu1  ;;  %v5987_v56 = vpop.eup %5986  ;;  %6008 = vrcp.f32 %v2078_v60  ;;  %v2080_v18 = vadd.f32 1.0, %v5985_v54 }
 0x566   : > { %v5305_v4 = vadd.f32 %v5304_v25, %v5303_v15  ;;  %v5306_v14 = vpop.f32.mrb[218].mxu1  ;;  %v8171_v23 = vpop.eup %5988  ;;  %6010 = vrcp.f32 %v2079_v40  ;;  %v2081_v15 = vadd.f32 1.0, %v5987_v56  ;;  %v2044_v25 = vmul.f32 1.442695, %v1994_v31  ;;  %v8188_v31 = vld [vmem:[%s8427_s4] ss:$0 sm:$0xff] }
 0x567   : > { %v5307_v20 = vpop.f32.mrb[219].mxu1  ;;  %v5991_v10 = vpop.eup %5990  ;;  %6012 = vpow2.f32 %v2040_v52 }
 0x568   : > { %v5308_v29 = vadd.f32 %v5307_v20, %v5306_v14  ;;  %v8163_v27 = vadd.f32 %v5305_v4, %v8031_v33  ;;  %v5993_v63 = vpop.eup %5992  ;;  %6014 = vpow2.f32 %v2042_v46  ;;  %v2082_v43 = vadd.f32 1.0, %v5991_v10  ;;  %v8600_v20 = vld [vmem:[#allocation32_spill] sm:$0xff] }
 0x569   : > { %v1995_v4 = vsub.f32 0.0, %v8599_v17  ;;  %6016 = vrcp.f32 %v2080_v18  ;;  %v2083_v41 = vadd.f32 1.0, %v5993_v63  ;;  %v1996_v60 = vsub.f32 0.0, %v8600_v20  ;;  %v8601_v18 = vld [vmem:[#allocation34_spill] sm:$0xff] }
 0x56a   : > { %v8168_v51 = vadd.f32 %v5308_v29, %v8035_v39  ;;  %v5995_v39 = vpop.eup %5994  ;;  %6018 = vrcp.f32 %v2081_v15 }
 0x56b   : > { %v5997_v2 = vpop.eup %5996  ;;  %v2084_v40 = vadd.f32 1.0, %v5995_v39  ;;  %6020 = vpow2.f32 %v2044_v25  ;;  %v2048_v10 = vmul.f32 1.442695, %v1996_v60 }
 0x56c   : > { %v5309_v33 = vpop.f32.mrb[220].mxu1  ;;  %v8177_v35 = vpop.eup %5998  ;;  %v2085_v56 = vadd.f32 1.0, %v5997_v2  ;;  %6022 = vrcp.f32 %v2082_v43 }
 0x56d   : > { %v5310_v42 = vpop.f32.mrb[221].mxu1  ;;  %v8180_v29 = vpop.eup %6000  ;;  %6024 = vrcp.f32 %v2083_v41 }
 0x56e   : > { %v5311_v48 = vadd.f32 %v5310_v42, %v5309_v33  ;;  %v5312_v45 = vpop.f32.mrb[222].mxu1  ;;  %v6003_v52 = vpop.eup %6002  ;;  %6026 = vrcp.f32 %v2084_v40 }
 0x56f   : > { %v5313_v3 = vpop.f32.mrb[223].mxu1  ;;  %v6005_v46 = vpop.eup %6004  ;;  %6028 = vrcp.f32 %v2085_v56  ;;  %v8602_v56 = vld [vmem:[#allocation35_spill] sm:$0xff] }
 0x570   : > { %v5314_v14 = vadd.f32 %v5313_v3, %v5312_v45  ;;  %v8175_v9 = vadd.f32 %v5311_v48, %v8039_v47  ;;  %v2046_v47 = vmul.f32 1.442695, %v1995_v4  ;;  %v8190_v33 = vpop.eup %6006  ;;  %v2086_v48 = vadd.f32 1.0, %v6003_v52 }
 0x571   : > { %v8194_v15 = vpop.eup %6008  ;;  %v2087_v3 = vadd.f32 1.0, %v6005_v46  ;;  %v1999_v46 = vsub.f32 0.0, %v8602_v56 }
 0x572   : > { %v8183_v54 = vadd.f32 %v5314_v14, %v8043_v57  ;;  %v1998_v57 = vsub.f32 0.0, %v8601_v18  ;;  %v8198_v25 = vpop.eup %6010  ;;  %6030 = vpow2.f32 %v2046_v47 }
 0x573   : > { %6032 = vpow2.f32 %v2048_v10  ;;  %v2054_v56 = vmul.f32 1.442695, %v1999_v46 }
 0x574   : > { %v5453_v0 = vpop.f32.mrb[128].mxu1  ;;  %v2052_v20 = vmul.f32 1.442695, %v1998_v57  ;;  %6034 = vrcp.f32 %v2086_v48 }
 0x575   : > { %v5486_v42 = vadd.f32 %v8065_v28, %v5453_v0  ;;  %v4314_v63 = vpop.f32.mrb[129].mxu1  ;;  %v6013_v28 = vpop.eup %6012  ;;  %6036 = vrcp.f32 %v2087_v3 }
 0x576   : > { %v5490_v45 = vadd.f32 %v8059_v22, %v4314_v63  ;;  %v5454_v39 = vpop.f32.mrb[130].mxu1  ;;  %v6015_v41 = vpop.eup %6014  ;;  %v2088_v10 = vadd.f32 1.0, %v6013_v28  ;;  %6038 = vpow2.f32 %v2052_v20 }
 0x577   : > { %v4482_v2 = vadd.f32 %v5486_v42, %v8188_v31  ;;  %v5494_v43 = vadd.f32 %v8068_v50, %v5454_v39  ;;  %v4317_v17 = vpop.f32.mrb[131].mxu1  ;;  %v8210_v52 = vpop.eup %6016  ;;  %v2089_v18 = vadd.f32 1.0, %v6015_v41 }
 0x578   : > { %v4480_v4 = vadd.f32 %v5490_v45, %v8188_v31  ;;  %v5498_v14 = vadd.f32 %v8062_v12, %v4317_v17  ;;  %v8213_v0 = vpop.eup %6018  ;;  %6040 = vrcp.f32 %v2088_v10 }
 0x579   : > { %v4514_v22 = vmul.f32 0.2, %v4482_v2  ;;  %v4483_v60 = vadd.f32 %v5494_v43, %v8188_v31  ;;  %v6021_v45 = vpop.eup %6020  ;;  %6042 = vrcp.f32 %v2089_v18 }
 0x57a   : > { %v4512_v40 = vmul.f32 0.2, %v4480_v4  ;;  %v4481_v50 = vadd.f32 %v5498_v14, %v8188_v31  ;;  %v8217_v17 = vpop.eup %6022  ;;  %6044 = vpow2.f32 %v2054_v56 }
 0x57b   : > { %v4546_v47 = vmax.f32 %v4482_v2, %v4514_v22  ;;  %v4515_v12 = vmul.f32 0.2, %v4483_v60  ;;  %v8603_v2 = vld [vmem:[#allocation33_spill] sm:$0xff] }
 0x57c   : > { %v4544_v57 = vmax.f32 %v4480_v4, %v4512_v40  ;;  %v4513_v42 = vmul.f32 0.2, %v4481_v50  ;;  %v5457_v63 = vpop.f32.mrb[132].mxu1  ;;  %v1997_v14 = vsub.f32 0.0, %v8603_v2  ;;  %v8222_v40 = vpop.eup %6024 }
 0x57d   : > { %v4578_v48 = vmul.f32 %v8171_v23, %v4546_v47  ;;  %v4547_v39 = vmax.f32 %v4483_v60, %v4515_v12  ;;  %v5502_v43 = vadd.f32 %v8077_v19, %v5457_v63  ;;  %v4330_v3 = vpop.f32.mrb[133].mxu1  ;;  %v8231_v60 = vpop.eup %6026 }
 0x57e   : > { %v4576_v22 = vmul.f32 %v8160_v6, %v4544_v57  ;;  %v4545_v28 = vmax.f32 %v4481_v50, %v4513_v42  ;;  %v5506_v4 = vadd.f32 %v8071_v30, %v4330_v3  ;;  %v5458_v41 = vpop.f32.mrb[134].mxu1  ;;  %v2090_v30 = vadd.f32 1.0, %v6021_v45  ;;  %v8237_v12 = vpop.eup %6028 }
 0x57f   : > { %4610 = vst [vmem:[%s8225_s26 + $0x10] sm:$0xff] %v4578_v48  ;;  %v4579_v19 = vmul.f32 %v8177_v35, %v4547_v39  ;;  %v4486_v23 = vadd.f32 %v5502_v43, %v8188_v31  ;;  %v5510_v6 = vadd.f32 %v8080_v55, %v5458_v41  ;;  %v4333_v20 = vpop.f32.mrb[135].mxu1  ;;  %v6031_v42 = vpop.eup %6030  ;;  %v2050_v10 = vmul.f32 1.442695, %v1997_v14 }
 0x580   : > { %4608 = vst [vmem:[%s8225_s26] sm:$0xff] %v4576_v22  ;;  %v4577_v50 = vmul.f32 %v8165_v5, %v4545_v28  ;;  %v4484_v46 = vadd.f32 %v5506_v4, %v8188_v31  ;;  %v5514_v47 = vadd.f32 %v8074_v38, %v4333_v20  ;;  %v6033_v45 = vpop.eup %6032  ;;  %v8604_v5 = vld [vmem:[#allocation38_spill] sm:$0xff]  ;;  %6046 = vrcp.f32 %v2090_v30 }
 0x581   : > { %4611 = vst [vmem:[%s8225_s26 + $0x18] sm:$0xff] %v4579_v19  ;;  %v4518_v35 = vmul.f32 0.2, %v4486_v23  ;;  %v4487_v57 = vadd.f32 %v5510_v6, %v8188_v31  ;;  %v2000_v48 = vsub.f32 0.0, %v8604_v5  ;;  %v8244_v38 = vpop.eup %6034  ;;  %v2091_v18 = vadd.f32 1.0, %v6031_v42 }
 0x582   : > { %4609 = vst [vmem:[%s8225_s26 + $0x8] sm:$0xff] %v4577_v50  ;;  %v4516_v55 = vmul.f32 0.2, %v4484_v46  ;;  %v4485_v63 = vadd.f32 %v5514_v47, %v8188_v31  ;;  %v8246_v28 = vpop.eup %6036  ;;  %6048 = vpow2.f32 %v2050_v10 }
 0x583   : > { %v4550_v39 = vmax.f32 %v4486_v23, %v4518_v35  ;;  %v4519_v43 = vmul.f32 0.2, %v4487_v57  ;;  %v2092_v23 = vadd.f32 1.0, %v6033_v45  ;;  %v6039_v50 = vpop.eup %6038  ;;  %6050 = vrcp.f32 %v2091_v18 }
 0x584   : > { %v4548_v3 = vmax.f32 %v4484_v46, %v4516_v55  ;;  %v4517_v2 = vmul.f32 0.2, %v4485_v63  ;;  %v5461_v22 = vpop.f32.mrb[136].mxu1  ;;  %v2056_v46 = vmul.f32 1.442695, %v2000_v48  ;;  %v2094_v48 = vadd.f32 1.0, %v6039_v50 }
 0x585   : > { %v4582_v4 = vmul.f32 %v8194_v15, %v4550_v39  ;;  %v4551_v41 = vmax.f32 %v4487_v57, %v4519_v43  ;;  %v5518_v56 = vadd.f32 %v8089_v1, %v5461_v22  ;;  %v4346_v19 = vpop.f32.mrb[137].mxu1  ;;  %v8605_v57 = vld [vmem:[#allocation39_spill] sm:$0xff]  ;;  %v8266_v43 = vpop.eup %6040  ;;  %6052 = vrcp.f32 %v2092_v23 }
 0x586   : > { %v4580_v6 = vmul.f32 %v8180_v29, %v4548_v3  ;;  %v4549_v20 = vmax.f32 %v4485_v63, %v4517_v2  ;;  %v5522_v14 = vadd.f32 %v8083_v32, %v4346_v19  ;;  %v5462_v30 = vpop.f32.mrb[138].mxu1  ;;  %v2001_v42 = vsub.f32 0.0, %v8605_v57  ;;  %v8606_v63 = vld [vmem:[#allocation40_spill] sm:$0xff]  ;;  %v8269_v10 = vpop.eup %6042 }
 0x587   : > { %4614 = vst [vmem:[%s8225_s26 + $0x30] sm:$0xff] %v4582_v4  ;;  %v4583_v47 = vmul.f32 %v8198_v25, %v4551_v41  ;;  %v4490_v15 = vadd.f32 %v5518_v56, %v8188_v31  ;;  %v5526_v35 = vadd.f32 %v8092_v58, %v5462_v30  ;;  %v4349_v1 = vpop.f32.mrb[139].mxu1  ;;  %v2002_v45 = vsub.f32 0.0, %v8606_v63  ;;  %v6045_v56 = vpop.eup %6044 }
 0x588   : > { %4612 = vst [vmem:[%s8225_s26 + $0x20] sm:$0xff] %v4580_v6  ;;  %v4581_v29 = vmul.f32 %v8190_v33, %v4549_v20  ;;  %v4488_v32 = vadd.f32 %v5522_v14, %v8188_v31  ;;  %v5530_v55 = vadd.f32 %v8086_v8, %v4349_v1  ;;  %v8607_v33 = vld [vmem:[#allocation41_spill] sm:$0xff]  ;;  %6054 = vpow2.f32 %v2056_v46 }
 0x589   : > { %4615 = vst [vmem:[%s8225_s26 + $0x38] sm:$0xff] %v4583_v47  ;;  %v4522_v25 = vmul.f32 0.2, %v4490_v15  ;;  %v4491_v5 = vadd.f32 %v5526_v35, %v8188_v31  ;;  %v2003_v3 = vsub.f32 0.0, %v8607_v33  ;;  %v2058_v22 = vmul.f32 1.442695, %v2001_v42 }
 0x58a   : > { %4613 = vst [vmem:[%s8225_s26 + $0x28] sm:$0xff] %v4581_v29  ;;  %v4520_v58 = vmul.f32 0.2, %v4488_v32  ;;  %v4489_v39 = vadd.f32 %v5530_v55, %v8188_v31  ;;  %v2060_v19 = vmul.f32 1.442695, %v2002_v45  ;;  %v8273_v30 = vpop.eup %6046  ;;  %6056 = vrcp.f32 %v2094_v48  ;;  %v8609_v45 = vld [vmem:[#allocation44_spill] sm:$0xff] }
 0x58b   : > { %v4554_v2 = vmax.f32 %v4490_v15, %v4522_v25  ;;  %v4523_v8 = vmul.f32 0.2, %v4491_v5  ;;  %v2062_v35 = vmul.f32 1.442695, %v2003_v3  ;;  %v2095_v42 = vadd.f32 1.0, %v6045_v56  ;;  %v8611_v3 = vld [vmem:[#allocation45_spill] sm:$0xff] }
 0x58c   : > { %v4552_v4 = vmax.f32 %v4488_v32, %v4520_v58  ;;  %v4521_v41 = vmul.f32 0.2, %v4489_v39  ;;  %v5465_v18 = vpop.f32.mrb[140].mxu1  ;;  %6058 = vpow2.f32 %v2060_v19  ;;  %v2004_v25 = vsub.f32 0.0, %v8609_v45  ;;  %v6049_v48 = vpop.eup %6048 }
 0x58d   : > { %v4586_v6 = vmul.f32 %v8217_v17, %v4554_v2  ;;  %v4555_v20 = vmax.f32 %v4491_v5, %v4523_v8  ;;  %v5534_v23 = vadd.f32 %v8101_v53, %v5465_v18  ;;  %v4362_v14 = vpop.f32.mrb[141].mxu1  ;;  %6060 = vpow2.f32 %v2058_v22  ;;  %v6051_v33 = vpop.eup %6050 }
 0x58e   : > { %v4584_v50 = vmul.f32 %v8210_v52, %v4552_v4  ;;  %v4553_v46 = vmax.f32 %v4489_v39, %v4521_v41  ;;  %v5538_v47 = vadd.f32 %v8095_v26, %v4362_v14  ;;  %v5466_v15 = vpop.f32.mrb[142].mxu1  ;;  %v8608_v26 = vld [vmem:[#allocation47_spill] sm:$0xff]  ;;  %6062 = vpow2.f32 %v2062_v35 }
 0x58f   : > { %4618 = vst [vmem:[%s8225_s26 + $0x50] sm:$0xff] %v4586_v6  ;;  %v4587_v1 = vmul.f32 %v8222_v40, %v4555_v20  ;;  %v4494_v17 = vadd.f32 %v5534_v23, %v8188_v31  ;;  %v5542_v53 = vadd.f32 %v8104_v36, %v5466_v15  ;;  %v4365_v57 = vpop.f32.mrb[143].mxu1  ;;  %v2006_v55 = vsub.f32 0.0, %v8608_v26  ;;  %v8293_v41 = vpop.eup %6052 }
 0x590   : > { %4616 = vst [vmem:[%s8225_s26 + $0x40] sm:$0xff] %v4584_v50  ;;  %v4585_v29 = vmul.f32 %v8213_v0, %v4553_v46  ;;  %v4492_v52 = vadd.f32 %v5538_v47, %v8188_v31  ;;  %v5546_v32 = vadd.f32 %v8098_v21, %v4365_v57  ;;  %v8610_v0 = vld [vmem:[#allocation48_spill] sm:$0xff]  ;;  %6064 = vrcp.f32 %v2095_v42 }
 0x591   : > { %4619 = vst [vmem:[%s8225_s26 + $0x58] sm:$0xff] %v4587_v1  ;;  %v4526_v63 = vmul.f32 0.2, %v4494_v17  ;;  %v4495_v40 = vadd.f32 %v5542_v53, %v8188_v31  ;;  %v2007_v58 = vsub.f32 0.0, %v8610_v0  ;;  %v2005_v2 = vsub.f32 0.0, %v8611_v3 }
 0x592   : > { %4617 = vst [vmem:[%s8225_s26 + $0x48] sm:$0xff] %v4585_v29  ;;  %v4524_v36 = vmul.f32 0.2, %v4492_v52  ;;  %v4493_v5 = vadd.f32 %v5546_v32, %v8188_v31  ;;  %v2068_v18 = vmul.f32 1.442695, %v2006_v55  ;;  %v6055_v23 = vpop.eup %6054  ;;  %v2093_v29 = vadd.f32 1.0, %v6049_v48 }
 0x593   : > { %v4558_v39 = vmax.f32 %v4494_v17, %v4526_v63  ;;  %v4527_v21 = vmul.f32 0.2, %v4495_v40  ;;  %v2064_v14 = vmul.f32 1.442695, %v2004_v25  ;;  %v2070_v35 = vmul.f32 1.442695, %v2007_v58 }
 0x594   : > { %v4556_v8 = vmax.f32 %v4492_v52, %v4524_v36  ;;  %v4525_v4 = vmul.f32 0.2, %v4493_v5  ;;  %v5469_v22 = vpop.f32.mrb[144].mxu1  ;;  %v8303_v53 = vpop.eup %6056  ;;  %v2066_v57 = vmul.f32 1.442695, %v2005_v2  ;;  %6066 = vpow2.f32 %v2068_v18 }
 0x595   : > { %v4590_v56 = vmul.f32 %v8244_v38, %v4558_v39  ;;  %v4559_v19 = vmax.f32 %v4495_v40, %v4527_v21  ;;  %v5550_v6 = vadd.f32 %v8113_v44, %v5469_v22  ;;  %v4378_v20 = vpop.f32.mrb[145].mxu1  ;;  %6068 = vpow2.f32 %v2064_v14 }
 0x596   : > { %v4588_v50 = vmul.f32 %v8231_v60, %v4556_v8  ;;  %v4557_v46 = vmax.f32 %v4493_v5, %v4525_v4  ;;  %v5554_v47 = vadd.f32 %v8107_v11, %v4378_v20  ;;  %v5470_v15 = vpop.f32.mrb[146].mxu1  ;;  %v6059_v26 = vpop.eup %6058  ;;  %6070 = vpow2.f32 %v2070_v35 }
 0x597   : > { %4622 = vst [vmem:[%s8225_s26 + $0x70] sm:$0xff] %v4590_v56  ;;  %v4591_v1 = vmul.f32 %v8246_v28, %v4559_v19  ;;  %v4498_v38 = vadd.f32 %v5550_v6, %v8188_v31  ;;  %v5558_v44 = vadd.f32 %v8116_v13, %v5470_v15  ;;  %v4381_v17 = vpop.f32.mrb[147].mxu1  ;;  %6072 = vpow2.f32 %v2066_v57 }
 0x598   : > { %4620 = vst [vmem:[%s8225_s26 + $0x60] sm:$0xff] %v4588_v50  ;;  %v4589_v60 = vmul.f32 %v8237_v12, %v4557_v46  ;;  %v4496_v11 = vadd.f32 %v5554_v47, %v8188_v31  ;;  %v5562_v42 = vadd.f32 %v8110_v59, %v4381_v17  ;;  %v6061_v12 = vpop.eup %6060  ;;  %6074 = vrcp.f32 %v2093_v29 }
 0x599   : > { %4623 = vst [vmem:[%s8225_s26 + $0x78] sm:$0xff] %v4591_v1  ;;  %v4530_v28 = vmul.f32 0.2, %v4498_v38  ;;  %v4499_v52 = vadd.f32 %v5558_v44, %v8188_v31  ;;  %v6063_v25 = vpop.eup %6062  ;;  %v2098_v39 = vadd.f32 1.0, %v6059_v26  ;;  %v2096_v4 = vadd.f32 1.0, %v6055_v23 }
 0x59a   : > { %4621 = vst [vmem:[%s8225_s26 + $0x68] sm:$0xff] %v4589_v60  ;;  %v4528_v13 = vmul.f32 0.2, %v4496_v11  ;;  %v4497_v32 = vadd.f32 %v5562_v42, %v8188_v31  ;;  %v6065_v58 = vpop.eup %6064  ;;  %v2097_v20 = vadd.f32 1.0, %v6061_v12 }
 0x59b   : > { %v4562_v55 = vmax.f32 %v4498_v38, %v4530_v28  ;;  %v4531_v63 = vmul.f32 0.2, %v4499_v52  ;;  %6076 = vrcp.f32 %v2098_v39 }
 0x59c   : > { %v4560_v40 = vmax.f32 %v4496_v11, %v4528_v13  ;;  %v4529_v59 = vmul.f32 0.2, %v4497_v32  ;;  %v5473_v45 = vpop.f32.mrb[148].mxu1  ;;  %6078 = vrcp.f32 %v2096_v4 }
 0x59d   : > { %v4594_v36 = vmul.f32 %v8273_v30, %v4562_v55  ;;  %v4563_v5 = vmax.f32 %v4499_v52, %v4531_v63  ;;  %v5566_v48 = vadd.f32 %v8130_v49, %v5473_v45  ;;  %v4394_v0 = vpop.f32.mrb[149].mxu1  ;;  %v2099_v49 = vadd.f32 1.0, %v6063_v25 }
 0x59e   : > { %v4592_v21 = vmul.f32 %v8266_v43, %v4560_v40  ;;  %v4561_v3 = vmax.f32 %v4497_v32, %v4529_v59  ;;  %v5570_v2 = vadd.f32 %v8121_v24, %v4394_v0  ;;  %v5474_v8 = vpop.f32.mrb[150].mxu1 }
 0x59f   : > { %4626 = vst [vmem:[%s8225_s26 + $0x90] sm:$0xff] %v4594_v36  ;;  %v4595_v22 = vmul.f32 %v6051_v33, %v4563_v5  ;;  %v4502_v30 = vadd.f32 %v5566_v48, %v8188_v31  ;;  %v5574_v18 = vadd.f32 %v8134_v16, %v5474_v8  ;;  %v4397_v56 = vpop.f32.mrb[151].mxu1  ;;  %v6067_v16 = vpop.eup %6066  ;;  %6080 = vrcp.f32 %v2099_v49 }
 0x5a0   : > { %4624 = vst [vmem:[%s8225_s26 + $0x80] sm:$0xff] %v4592_v21  ;;  %v4593_v19 = vmul.f32 %v8269_v10, %v4561_v3  ;;  %v4500_v43 = vadd.f32 %v5570_v2, %v8188_v31  ;;  %v5578_v6 = vadd.f32 %v8125_v37, %v4397_v56  ;;  %v6069_v47 = vpop.eup %6068  ;;  %6082 = vrcp.f32 %v2097_v20 }
 0x5a1   : > { %4627 = vst [vmem:[%s8225_s26 + $0x98] sm:$0xff] %v4595_v22  ;;  %v4534_v24 = vmul.f32 0.2, %v4502_v30  ;;  %v4503_v23 = vadd.f32 %v5574_v18, %v8188_v31  ;;  %v6071_v35 = vpop.eup %6070  ;;  %v2102_v60 = vadd.f32 1.0, %v6067_v16  ;;  %v2100_v13 = vadd.f32 1.0, %v6069_v47 }
 0x5a2   : > { %4625 = vst [vmem:[%s8225_s26 + $0x88] sm:$0xff] %v4593_v19  ;;  %v4532_v33 = vmul.f32 0.2, %v4500_v43  ;;  %v4501_v14 = vadd.f32 %v5578_v6, %v8188_v31  ;;  %v6073_v57 = vpop.eup %6072  ;;  %v2103_v55 = vadd.f32 1.0, %v6071_v35 }
 0x5a3   : > { %v4566_v50 = vmax.f32 %v4502_v30, %v4534_v24  ;;  %v4535_v46 = vmul.f32 0.2, %v4503_v23  ;;  %v6075_v52 = vpop.eup %6074  ;;  %v2101_v40 = vadd.f32 1.0, %v6073_v57  ;;  %6084 = vrcp.f32 %v2102_v60 }
 0x5a4   : > { %v4564_v10 = vmax.f32 %v4500_v43, %v4532_v33  ;;  %v4533_v15 = vmul.f32 0.2, %v4501_v14  ;;  %v5477_v37 = vpop.f32.mrb[152].mxu1  ;;  %6086 = vrcp.f32 %v2100_v13 }
 0x5a5   : > { %v4598_v1 = vmul.f32 %v8303_v53, %v4566_v50  ;;  %v4567_v38 = vmax.f32 %v4503_v23, %v4535_v46  ;;  %v5582_v44 = vadd.f32 %v8151_v34, %v5477_v37  ;;  %v4410_v17 = vpop.f32.mrb[153].mxu1  ;;  %v6077_v5 = vpop.eup %6076  ;;  %6088 = vrcp.f32 %v2103_v55 }
 0x5a6   : > { %v4596_v11 = vmul.f32 %v8293_v41, %v4564_v10  ;;  %v4565_v42 = vmax.f32 %v4501_v14, %v4533_v15  ;;  %v5586_v29 = vadd.f32 %v8140_v62, %v4410_v17  ;;  %v5478_v28 = vpop.f32.mrb[154].mxu1  ;;  %6090 = vrcp.f32 %v2101_v40 }
 0x5a7   : > { %4630 = vst [vmem:[%s8225_s26 + $0xb0] sm:$0xff] %v4598_v1  ;;  %v4599_v32 = vmul.f32 %v6065_v58, %v4567_v38  ;;  %v4506_v53 = vadd.f32 %v5582_v44, %v8188_v31  ;;  %v5590_v34 = vadd.f32 %v8156_v61, %v5478_v28  ;;  %v4413_v26 = vpop.f32.mrb[155].mxu1 }
 0x5a8   : > { %4628 = vst [vmem:[%s8225_s26 + $0xa0] sm:$0xff] %v4596_v11  ;;  %v4597_v63 = vmul.f32 %v6075_v52, %v4565_v42  ;;  %v4504_v41 = vadd.f32 %v5586_v29, %v8188_v31  ;;  %v5594_v12 = vadd.f32 %v8144_v7, %v4413_v26  ;;  %v6079_v7 = vpop.eup %6078 }
 0x5a9   : > { %4631 = vst [vmem:[%s8225_s26 + $0xb8] sm:$0xff] %v4599_v32  ;;  %v4538_v62 = vmul.f32 0.2, %v4506_v53  ;;  %v4507_v59 = vadd.f32 %v5590_v34, %v8188_v31  ;;  %v6081_v8 = vpop.eup %6080 }
 0x5aa   : > { %4629 = vst [vmem:[%s8225_s26 + $0xa8] sm:$0xff] %v4597_v63  ;;  %v4536_v45 = vmul.f32 0.2, %v4504_v41  ;;  %v4505_v25 = vadd.f32 %v5594_v12, %v8188_v31  ;;  %v6083_v56 = vpop.eup %6082 }
 0x5ab   : > { %v4570_v61 = vmax.f32 %v4506_v53, %v4538_v62  ;;  %v4539_v36 = vmul.f32 0.2, %v4507_v59 }
 0x5ac   : > { %v4568_v48 = vmax.f32 %v4504_v41, %v4536_v45  ;;  %v4537_v0 = vmul.f32 0.2, %v4505_v25  ;;  %v5481_v58 = vpop.f32.mrb[156].mxu1 }
 0x5ad   : > { %v4602_v39 = vmul.f32 %v6077_v5, %v4570_v61  ;;  %v4571_v21 = vmax.f32 %v4507_v59, %v4539_v36  ;;  %v5598_v3 = vadd.f32 %v8175_v9, %v5481_v58  ;;  %v4426_v2 = vpop.f32.mrb[157].mxu1  ;;  %v6085_v50 = vpop.eup %6084 }
 0x5ae   : > { %v4600_v4 = vmul.f32 %v6079_v7, %v4568_v48  ;;  %v4569_v22 = vmax.f32 %v4505_v25, %v4537_v0  ;;  %v5602_v30 = vadd.f32 %v8163_v27, %v4426_v2  ;;  %v5482_v18 = vpop.f32.mrb[158].mxu1 }
 0x5af   : > { %4634 = vst [vmem:[%s8225_s26 + $0xd0] sm:$0xff] %v4602_v39  ;;  %v4603_v49 = vmul.f32 %v6081_v8, %v4571_v21  ;;  %v4510_v19 = vadd.f32 %v5598_v3, %v8188_v31  ;;  %v5606_v43 = vadd.f32 %v8183_v54, %v5482_v18  ;;  %v4429_v6 = vpop.f32.mrb[159].mxu1 }
 0x5b0   : > { %4632 = vst [vmem:[%s8225_s26 + $0xc0] sm:$0xff] %v4600_v4  ;;  %v4601_v9 = vmul.f32 %v6083_v56, %v4569_v22  ;;  %v4508_v20 = vadd.f32 %v5602_v30, %v8188_v31  ;;  %v5610_v24 = vadd.f32 %v8168_v51, %v4429_v6  ;;  %v6087_v51 = vpop.eup %6086 }
 0x5b1   : > { %4635 = vst [vmem:[%s8225_s26 + $0xd8] sm:$0xff] %v4603_v49  ;;  %v4542_v27 = vmul.f32 0.2, %v4510_v19  ;;  %v4511_v23 = vadd.f32 %v5606_v43, %v8188_v31  ;;  %v6089_v37 = vpop.eup %6088 }
 0x5b2   : > { %4633 = vst [vmem:[%s8225_s26 + $0xc8] sm:$0xff] %v4601_v9  ;;  %v4540_v33 = vmul.f32 0.2, %v4508_v20  ;;  %v4509_v14 = vadd.f32 %v5610_v24, %v8188_v31  ;;  %v6091_v1 = vpop.eup %6090 }
 0x5b3   : > { %v4574_v54 = vmax.f32 %v4510_v19, %v4542_v27  ;;  %v4543_v16 = vmul.f32 0.2, %v4511_v23 }
 0x5b4   : > { %v4572_v46 = vmax.f32 %v4508_v20, %v4540_v33  ;;  %v4541_v47 = vmul.f32 0.2, %v4509_v14 }
 0x5b5   : > { %v4606_v10 = vmul.f32 %v6085_v50, %v4574_v54  ;;  %v4575_v15 = vmax.f32 %v4511_v23, %v4543_v16 }
 0x5b6   : > { %v4604_v35 = vmul.f32 %v6087_v51, %v4572_v46  ;;  %v4573_v31 = vmax.f32 %v4509_v14, %v4541_v47 }
 0x5b7   : > { %4638 = vst [vmem:[%s8225_s26 + $0xf0] sm:$0xff] %v4606_v10  ;;  %v4607_v38 = vmul.f32 %v6089_v37, %v4575_v15 }
 0x5b8   : > { %4636 = vst [vmem:[%s8225_s26 + $0xe0] sm:$0xff] %v4604_v35  ;;  %v4605_v44 = vmul.f32 %v6091_v1, %v4573_v31 }
 0x5b9   : > { %4639 = vst [vmem:[%s8225_s26 + $0xf8] sm:$0xff] %v4607_v38 }
 0x5ba   : > { %4637 = vst [vmem:[%s8225_s26 + $0xe8] sm:$0xff] %v4605_v44 }
 0x5bb   : > { %6105 = shalt.err (!%p6102_p6)
}
 0x5bc   : > { %s6106_s16 = scalar_lea.hbm %s8364_s13, 4096  ;;  %s6110_s22 = scalar_lea.hbm %s8428_s5, 32768 }
 0x5bd   : > { %p6107_p7 = scmp.ne.s32.totalorder %s8364_s13, %s6106_s16  ;;  %p6111_p11 = scmp.lt.u32.totalorder %s8364_s13, %s8428_s5 }
 0x5be   : > { %p6112_p12 = scmp.lt.u32.totalorder %s6110_s22, %s6106_s16  ;;  %p6114_p0 = scmp.lt.u32.totalorder %s6106_s16, %s8364_s13 }
 0x5bf   : > { %p6108_p9 = pnand %p6107_p7, %p6274_p3 }
 0x5c0   : > { %p6113_p13 = por %p6112_p12, %p6111_p11 }
 0x5c1   : > { %p6109_p10 = pneg %p6108_p9 }
 0x5c2   : > { %p6115_p1 = por %p6114_p0, %p6113_p13 }
 0x5c4   : > { %p6116_p2 = pnand %p6115_p1, %p6109_p10 }
 0x5c6   : > { %6119 = shalt.err (!%p6116_p2)
}
 0x5c7   : > { %s6192_s15 = smov 128  }
 0x5c8   : > { %5772 = dma.vmem_to_hbm [thread:$0]  (%p6274_p3), %s8358_s21, 4096, %s8364_s13, %s8370_s14, %s6192_s15, %s6192_s15, %s6190_s10  }
 0x5c9 PF: > { %p5778_p4 = scmp.ge.s32.totalorder %s6186_s25, 2  ;;  %s4672_s17 = sand.u32 1, %s6158_s18  }
 0x5ca   : > { %s4673_s27 = scalar_lea.sflag [#allocation3], %s4672_s17 }
 0x5cb   : > { %p5775_p5 = pnand %p5778_p4, %p6283_p8 }
 0x5cd   : > { %6153 = dma.done.wait (!%p5775_p5), %s4673_s27, 4096  }
 0x5ce   : > { %6155 = vsyncadd (!%p5775_p5), %s4673_s27, 4294963200  ;;  %s18_s25 = sadd.s32 1, %s6186_s25   ;;  %s8612_s18 = smov %s6162_s19 }
 0x5cf   : > { %p15_p6 = scmp.ge.s32.totalorder %s18_s25, 10   ;;  %s8613_s19 = smov %s6166_s20 }
 0x5d0   : > { %s8614_s20 = smov %s6292_s11  ;;  %s8615_s21 = smov %s6178_s23 }
 0x5d1   : > { %s8616_s22 = smov %s6182_s24  ;;  %s8617_s23 = smov %s8620_s28 }
 0x5d2   : > { %s8618_s24 = smov %s8624_s29  ;;  %17 = sbr.rel (!%p15_p6) target bundleno = 5 (0x5), region = 75 }
 0x5d9   :  { %4678 = vsyncpa [#allocation3], 1 }
 0x5da   :  { %4680 = vsyncpa [#allocation3 + $0x1], 1 }

</bundles_post_ra>
